<compile_context>
chip_gen: v5e
topology: v5e:2x2
jax: 0.10.0
libtpu: 0.0.40
codegen_flags: <defaults>
</compile_context>

<pallas_src>
import jax
import jax.numpy as jnp
from jax.experimental import pallas as pl
from jax.experimental.pallas import tpu as pltpu

LATENT = 10           # mu / std width
LAT_PAD = 128         # latent padded to one full lane tile
D_IN = 784            # MNIST pixels
D_IN_PAD = 896        # 784 padded to 7 * 128 (lane-dense first-matmul LHS)
D_OUT_PAD = 896       # decoder output padded to 7 * 128

# lane-aligned offsets / widths of each bias inside the packed (1, 2816) row
_B_OFF = dict(eb1=0, eb2=512, eb3=768, eb4=896, db1=1152, db2=1408, db3=1920)
_B_LEN = dict(eb1=400, eb2=200, eb3=20, eb4=2 * LAT_PAD, db1=200, db2=400, db3=D_OUT_PAD)
BIAS_TOTAL = 2816

_LAYER_DIMS = [(784, 400), (400, 200), (200, 20), (20, 20),    # encoder
               (10, 200), (200, 400), (400, 784)]              # decoder


def _sigmoid(x):
    # sigmoid(x) == 0.5 * tanh(0.5 * x) + 0.5  -> single EUP op (no exp + divide)
    return 0.5 * jnp.tanh(0.5 * x) + 0.5


def _silu(x):
    return x * _sigmoid(x)


def _softplus(x):
    # numerically stable softplus: max(x,0) + log1p(exp(-|x|))
    return jnp.maximum(x, 0.0) + jnp.log1p(jnp.exp(-jnp.abs(x)))


# ----------------------------------------------------------------------------
# Kernel
# ----------------------------------------------------------------------------
def _make_kernel(prefetch_decoder):
    """prefetch_decoder=True is only used when the grid has a single step."""

    def kernel(x_ref, z_ref, b_ref,
               ew1, ew2, ew3, ew4, dw1, dw2, dw3,
               xpred_ref, mustd_ref, *scratch):
        if prefetch_decoder:
            dw2_vmem, dw3_vmem, sems = scratch
            # Fire the two big decoder-weight DMAs now; they land while the
            # encoder matmuls run (single grid step, so no re-issue).
            pltpu.make_async_copy(dw2, dw2_vmem, sems.at[0]).start()
            pltpu.make_async_copy(dw3, dw3_vmem, sems.at[1]).start()

        def dense(h, w_ref, bias_name):
            off = _B_OFF[bias_name]
            b = b_ref[:, off:off + _B_LEN[bias_name]]          # (1, n) f32 view
            return jnp.dot(h.astype(jnp.bfloat16), w_ref[...],
                           preferred_element_type=jnp.float32) + b

        # ---- encoder ----
        h = _silu(dense(x_ref[...], ew1, "eb1"))               # (tb, 400)
        h = _silu(dense(h, ew2, "eb2"))                        # (tb, 200)
        h = _silu(dense(h, ew3, "eb3"))                        # (tb, 20)
        hidden = dense(h, ew4, "eb4")                          # (tb, 256)
        # mu in lanes [0,10), log_std in lanes [128,138), everything else == 0

        mu_full = hidden[:, :LAT_PAD]                          # tile-aligned view
        std_full = _softplus(hidden[:, LAT_PAD:])              # tile-aligned view

        # ---- reparameterization (full 128-lane width; junk lanes stay 0) ----
        z_lat = mu_full + z_ref[...] * std_full

        # ---- decoder ----
        d = _silu(dense(z_lat, dw1, "db1"))                    # (tb, 200)

        if prefetch_decoder:
            pltpu.make_async_copy(dw2, dw2_vmem, sems.at[0]).wait()
            pltpu.make_async_copy(dw3, dw3_vmem, sems.at[1]).wait()
            w2, w3 = dw2_vmem, dw3_vmem
        else:
            w2, w3 = dw2, dw3

        d = _silu(dense(d, w2, "db2"))                         # (tb, 400)
        logits = dense(d, w3, "db3")                           # (tb, 896); pad bias = -30

        xpred_ref[...] = _sigmoid(logits)                      # pad lanes -> exactly 0
        # two tile-aligned unmasked stores instead of a concatenate
        mustd_ref[:, :LAT_PAD] = mu_full
        mustd_ref[:, LAT_PAD:] = std_full

    return kernel


# ----------------------------------------------------------------------------
# Parameter init / packing
# ----------------------------------------------------------------------------
def init_raw_params(key):
    """PyTorch-Linear-equivalent params: weight stored transposed as (in, out) f32, bias (out,) f32."""
    params = []
    for fan_in, fan_out in _LAYER_DIMS:
        key, kw, kb = jax.random.split(key, 3)
        bound = 1.0 / jnp.sqrt(fan_in)
        w = jax.random.uniform(kw, (fan_in, fan_out), jnp.float32, -bound, bound)
        b = jax.random.uniform(kb, (fan_out,), jnp.float32, -bound, bound)
        params.append((w, b))
    return params


def pack_params(raw):
    """bf16-cast + lane-align the weights, pack all biases into one f32 row."""
    (ew1, eb1), (ew2, eb2), (ew3, eb3), (ew4, eb4), (dw1, db1), (dw2, db2), (dw3, db3) = raw
    bf = lambda w: w.astype(jnp.bfloat16)

    # first encoder layer: accept the 896-lane-padded input (pad rows are zero)
    ew1p = jnp.zeros((D_IN_PAD, 400), jnp.float32).at[:D_IN, :].set(ew1)

    # final encoder layer: mu columns at lane 0, log_std columns at lane 128
    ew4p = jnp.zeros((20, 2 * LAT_PAD), jnp.float32)
    ew4p = ew4p.at[:, :LATENT].set(ew4[:, :LATENT])
    ew4p = ew4p.at[:, LAT_PAD:LAT_PAD + LATENT].set(ew4[:, LATENT:])
    eb4p = jnp.zeros((2 * LAT_PAD,), jnp.float32)
    eb4p = eb4p.at[:LATENT].set(eb4[:LATENT]).at[LAT_PAD:LAT_PAD + LATENT].set(eb4[LATENT:])

    # first decoder layer: accept the 128-lane-padded latent
    dw1p = jnp.zeros((LAT_PAD, 200), jnp.float32).at[:LATENT, :].set(dw1)

    # last decoder layer: pad 784 -> 896 output columns; pad bias = -30 so the
    # padded sigmoid lanes come out exactly 0 (loss can run on the padded slab)
    dw3p = jnp.zeros((400, D_OUT_PAD), jnp.float32).at[:, :D_IN].set(dw3)
    db3p = jnp.full((D_OUT_PAD,), -30.0, jnp.float32).at[:D_IN].set(db3)

    # pack all biases (kept f32) into one lane-aligned row -> single DMA
    b_packed = jnp.zeros((1, BIAS_TOTAL), jnp.float32)
    for name, vec in (("eb1", eb1), ("eb2", eb2), ("eb3", eb3), ("eb4", eb4p),
                      ("db1", db1), ("db2", db2), ("db3", db3p)):
        off = _B_OFF[name]
        b_packed = b_packed.at[0, off:off + vec.shape[0]].set(vec)

    return (bf(ew1p), bf(ew2), bf(ew3), bf(ew4p), bf(dw1p), bf(dw2), bf(dw3p), b_packed)


# ----------------------------------------------------------------------------
# Wrapper
# ----------------------------------------------------------------------------
def _pick_tile(B, max_single_tile):
    if B <= max_single_tile:
        return B                       # one grid step: no per-step overhead
    for cand in (256, 128, 64, 32, 16, 8):
        if B % cand == 0:
            return cand                # grid >= 2 for large batches (v7x: both TCs)
    return B                           # fallback: single full-extent block


def mnist_vae_forward(x, z, packed, *, max_single_tile=256):
    """Returns (x_pred_pad, mu, std).

    x_pred_pad is (B, 896) f32 with lanes [784, 896) exactly 0; keeping it padded
    avoids a separate HBM slice-copy. Slice [:, :784] only if the unpadded form
    is truly required (e.g. comparing against the PyTorch module output).
    """
    B = x.shape[0]
    ew1, ew2, ew3, ew4, dw1, dw2, dw3, b_packed = packed

    # pad + cast x to a lane-dense bf16 slab (halves the dominant input stream)
    if x.shape[1] == D_IN:
        x_in = jnp.zeros((B, D_IN_PAD), jnp.bfloat16).at[:, :D_IN].set(x.astype(jnp.bfloat16))
    else:
        x_in = x.astype(jnp.bfloat16)

    # pad z (torch.randn_like(mu) equivalent) to a full 128-lane tile
    z_pad = jnp.zeros((B, LAT_PAD), jnp.float32).at[:, :LATENT].set(z)

    tile_b = _pick_tile(B, max_single_tile)
    grid = (B // tile_b,)
    prefetch_decoder = (grid[0] == 1)

    row_spec = lambda width: pl.BlockSpec((tile_b, width), lambda i: (i, 0))
    resident = lambda arr: pl.BlockSpec(arr.shape, lambda i: (0, 0))   # DMA'd once

    weight_specs = [resident(w) for w in (ew1, ew2, ew3, ew4, dw1)]
    if prefetch_decoder:
        dw_specs = [pl.BlockSpec(memory_space=pl.ANY),
                    pl.BlockSpec(memory_space=pl.ANY)]
        scratch_shapes = [pltpu.VMEM(dw2.shape, dw2.dtype),
                          pltpu.VMEM(dw3.shape, dw3.dtype),
                          pltpu.SemaphoreType.DMA((2,))]
    else:
        dw_specs = [resident(dw2), resident(dw3)]
        scratch_shapes = []

    in_specs = [row_spec(D_IN_PAD), row_spec(LAT_PAD), resident(b_packed)] + weight_specs + dw_specs
    out_specs = (row_spec(D_OUT_PAD), row_spec(2 * LAT_PAD))
    out_shape = (jax.ShapeDtypeStruct((B, D_OUT_PAD), jnp.float32),
                 jax.ShapeDtypeStruct((B, 2 * LAT_PAD), jnp.float32))

    flops = 2 * B * sum(fi * fo for fi, fo in _LAYER_DIMS)
    weight_bytes = sum(int(w.size) * w.dtype.itemsize
                       for w in (ew1, ew2, ew3, ew4, dw1, dw2, dw3))
    io_bytes = (int(x_in.size) * 2 + int(z_pad.size) * 4 + int(b_packed.size) * 4
                + B * (D_OUT_PAD + 2 * LAT_PAD) * 4)
    transcendentals = B * (400 + 200 + 20 + LAT_PAD + 200 + 400 + D_OUT_PAD)

    x_pred_pad, mustd = pl.pallas_call(
        _make_kernel(prefetch_decoder),
        out_shape=out_shape,
        grid=grid,
        in_specs=in_specs,
        out_specs=out_specs,
        scratch_shapes=scratch_shapes,
        compiler_params=pltpu.CompilerParams(
            dimension_semantics=("parallel",),
            vmem_limit_bytes=32 * 1024 * 1024),
        cost_estimate=pl.CostEstimate(flops=int(flops),
                                      transcendentals=int(transcendentals),
                                      bytes_accessed=int(weight_bytes + io_bytes)),
    )(x_in, z_pad, b_packed, ew1, ew2, ew3, ew4, dw1, dw2, dw3)

    mu = mustd[:, :LATENT]
    std = mustd[:, LAT_PAD:LAT_PAD + LATENT]
    return x_pred_pad, mu, std


# ----------------------------------------------------------------------------
# Pure-JAX reference (same bf16 weights / f32 accumulation as the kernel)
# ----------------------------------------------------------------------------
def reference_forward(x, z, raw):
    def lin(h, wb):
        w, b = wb
        return jnp.dot(h.astype(jnp.bfloat16), w.astype(jnp.bfloat16),
                       preferred_element_type=jnp.float32) + b

    def silu(v):
        return v * jax.nn.sigmoid(v)

    e1, e2, e3, e4, d1, d2, d3 = raw
    h = silu(lin(x, e1))
    h = silu(lin(h, e2))
    h = silu(lin(h, e3))
    hidden = lin(h, e4)
    mu, log_std = hidden[:, :LATENT], hidden[:, LATENT:]
    std = _softplus(log_std)
    zl = mu + z * std
    d = silu(lin(zl, d1))
    d = silu(lin(d, d2))
    return jax.nn.sigmoid(lin(d, d3)), mu, std


def kl_loss(mu, std):
    log_std = jnp.log(std)
    return -0.5 * jnp.sum(1.0 + 2.0 * log_std - mu ** 2 - std ** 2, axis=1)


if __name__ == "__main__":
    key = jax.random.PRNGKey(0)
    k_params, k_x, k_z = jax.random.split(key, 3)

    raw = init_raw_params(k_params)
    packed = pack_params(raw)

    # --- small batch: single grid step, manual decoder-weight prefetch path ---
    B = 8
    x = jax.random.uniform(k_x, (B, D_IN), jnp.float32)       # MNIST-like input in [0,1)
    z = jax.random.normal(k_z, (B, LATENT), jnp.float32)      # torch.randn_like(mu)

    x_pred_pad, mu, std = jax.block_until_ready(mnist_vae_forward(x, z, packed))
    xr, mr, sr = reference_forward(x, z, raw)
    # slice to 784 ONLY for the reference comparison (fast path keeps the padded slab)
    assert jnp.allclose(x_pred_pad[:, :D_IN], xr, atol=2e-3, rtol=2e-3)
    assert jnp.allclose(mu, mr, atol=2e-3, rtol=2e-3)
    assert jnp.allclose(std, sr, atol=2e-3, rtol=2e-3)
    assert float(jnp.max(jnp.abs(x_pred_pad[:, D_IN:]))) < 1e-6   # pad lanes ~ 0

    # --- larger batch: exercises the tiled (grid >= 2) resident-weight path ---
    B2 = 512
    x2 = jax.random.uniform(k_x, (B2, D_IN), jnp.float32)
    z2 = jax.random.normal(k_z, (B2, LATENT), jnp.float32)
    xp2, mu2, std2 = jax.block_until_ready(mnist_vae_forward(x2, z2, packed))
    xr2, mr2, sr2 = reference_forward(x2, z2, raw)
    assert jnp.allclose(xp2[:, :D_IN], xr2, atol=2e-3, rtol=2e-3)
    assert jnp.allclose(mu2, mr2, atol=2e-3, rtol=2e-3)
    assert jnp.allclose(std2, sr2, atol=2e-3, rtol=2e-3)

    # loss helpers (plain JAX glue, same math as the module's compute_loss);
    # reconstruction loss runs on the padded slabs (pad lanes contribute ~0)
    x_pad_f32 = jnp.zeros((B, D_OUT_PAD), jnp.float32).at[:, :D_IN].set(x)
    rec_loss = jnp.sum((x_pad_f32 - x_pred_pad) ** 2, axis=1)
    kl = kl_loss(mu, std)
    loss = jnp.mean(rec_loss + kl)
    jax.block_until_ready(loss)

    print("KERNEL_OK")
</pallas_src>

<mosaic_0001>
module attributes {stable_mosaic.version = 11 : i64} {
  func.func @kernel(%arg0: i32, %arg1: memref<8x896xbf16, #tpu.memory_space<vmem>>, %arg2: memref<8x128xf32, #tpu.memory_space<vmem>>, %arg3: memref<1x2816xf32, #tpu.memory_space<vmem>>, %arg4: memref<896x400xbf16, #tpu.memory_space<vmem>>, %arg5: memref<400x200xbf16, #tpu.memory_space<vmem>>, %arg6: memref<200x20xbf16, #tpu.memory_space<vmem>>, %arg7: memref<20x256xbf16, #tpu.memory_space<vmem>>, %arg8: memref<128x200xbf16, #tpu.memory_space<vmem>>, %arg9: memref<200x400xbf16, #tpu.memory_space<any>>, %arg10: memref<400x896xbf16, #tpu.memory_space<any>>, %arg11: memref<8x896xf32, #tpu.memory_space<vmem>>, %arg12: memref<8x256xf32, #tpu.memory_space<vmem>>, %arg13: memref<200x400xbf16, #tpu.memory_space<vmem>>, %arg14: memref<400x896xbf16, #tpu.memory_space<vmem>>, %arg15: memref<2x!tpu.dma_semaphore, #tpu.memory_space<semaphore_mem>>) attributes {dimension_semantics = [#tpu.dimension_semantics<parallel>], iteration_bounds = array<i64: 1>, scalar_prefetch = 0 : i64, scratch_operands = 3 : i64, tpu.core_type = #tpu.core_type<tc>, window_params = [{transform_indices = @transform_0, window_bounds = array<i64: 8, 896>}, {transform_indices = @transform_1, window_bounds = array<i64: 8, 128>}, {pipeline_mode = #tpu.pipeline_mode<synchronous>, transform_indices = @transform_2, window_bounds = array<i64: 1, 2816>}, {pipeline_mode = #tpu.pipeline_mode<synchronous>, transform_indices = @transform_3, window_bounds = array<i64: 896, 400>}, {pipeline_mode = #tpu.pipeline_mode<synchronous>, transform_indices = @transform_4, window_bounds = array<i64: 400, 200>}, {pipeline_mode = #tpu.pipeline_mode<synchronous>, transform_indices = @transform_5, window_bounds = array<i64: 200, 20>}, {pipeline_mode = #tpu.pipeline_mode<synchronous>, transform_indices = @transform_6, window_bounds = array<i64: 20, 256>}, {pipeline_mode = #tpu.pipeline_mode<synchronous>, transform_indices = @transform_7, window_bounds = array<i64: 128, 200>}, {}, {}, {transform_indices = @transform_10, window_bounds = array<i64: 8, 896>}, {transform_indices = @transform_11, window_bounds = array<i64: 8, 256>}]} {
    %c0_i32 = arith.constant 0 : i32
    %0 = tpu.memref_slice %arg15[%c0_i32] : memref<2x!tpu.dma_semaphore, #tpu.memory_space<semaphore_mem>> -> memref<1x!tpu.dma_semaphore, #tpu.memory_space<semaphore_mem>>
    %1 = tpu.memref_squeeze %0 : memref<1x!tpu.dma_semaphore, #tpu.memory_space<semaphore_mem>> -> memref<!tpu.dma_semaphore, #tpu.memory_space<semaphore_mem>>
    tpu.enqueue_dma source(%arg9 : memref<200x400xbf16, #tpu.memory_space<any>>) target(%arg13 : memref<200x400xbf16, #tpu.memory_space<vmem>>) target_semaphore(%1 : memref<!tpu.dma_semaphore, #tpu.memory_space<semaphore_mem>>)
    %c1_i32 = arith.constant 1 : i32
    %2 = tpu.memref_slice %arg15[%c1_i32] : memref<2x!tpu.dma_semaphore, #tpu.memory_space<semaphore_mem>> -> memref<1x!tpu.dma_semaphore, #tpu.memory_space<semaphore_mem>>
    %3 = tpu.memref_squeeze %2 : memref<1x!tpu.dma_semaphore, #tpu.memory_space<semaphore_mem>> -> memref<!tpu.dma_semaphore, #tpu.memory_space<semaphore_mem>>
    tpu.enqueue_dma source(%arg10 : memref<400x896xbf16, #tpu.memory_space<any>>) target(%arg14 : memref<400x896xbf16, #tpu.memory_space<vmem>>) target_semaphore(%3 : memref<!tpu.dma_semaphore, #tpu.memory_space<semaphore_mem>>)
    %c0 = arith.constant 0 : index
    %c0_0 = arith.constant 0 : index
    %4 = vector.load %arg1[%c0, %c0_0] : memref<8x896xbf16, #tpu.memory_space<vmem>>, vector<8x896xbf16>
    %c0_1 = arith.constant 0 : index
    %c0_2 = arith.constant 0 : index
    %5 = vector.load %arg3[%c0_1, %c0_2] : memref<1x2816xf32, #tpu.memory_space<vmem>>, vector<1x400xf32>
    %c0_3 = arith.constant 0 : index
    %c0_4 = arith.constant 0 : index
    %6 = vector.load %arg4[%c0_3, %c0_4] : memref<896x400xbf16, #tpu.memory_space<vmem>>, vector<896x400xbf16>
    %cst = arith.constant dense<0.000000e+00> : vector<8x400xf32>
    %7 = tpu.matmul %4, %6, %cst {dimension_numbers = #tpu.dot_dimension_numbers<[1], [0], [0], [1], [0, 0, 1, 1], [], []>} : vector<8x896xbf16>, vector<896x400xbf16>, vector<8x400xf32> -> vector<8x400xf32>
    %8 = vector.broadcast %5 : vector<1x400xf32> to vector<8x400xf32>
    %9 = arith.addf %7, %8 : vector<8x400xf32>
    %cst_5 = arith.constant 5.000000e-01 : f32
    %10 = vector.broadcast %cst_5 : f32 to vector<8x400xf32>
    %11 = arith.mulf %10, %9 : vector<8x400xf32>
    %12 = math.tanh %11 : vector<8x400xf32>
    %cst_6 = arith.constant 5.000000e-01 : f32
    %13 = vector.broadcast %cst_6 : f32 to vector<8x400xf32>
    %14 = arith.mulf %13, %12 : vector<8x400xf32>
    %cst_7 = arith.constant 5.000000e-01 : f32
    %15 = vector.broadcast %cst_7 : f32 to vector<8x400xf32>
    %16 = arith.addf %14, %15 : vector<8x400xf32>
    %17 = arith.mulf %9, %16 : vector<8x400xf32>
    %c0_8 = arith.constant 0 : index
    %c512 = arith.constant 512 : index
    %18 = vector.load %arg3[%c0_8, %c512] : memref<1x2816xf32, #tpu.memory_space<vmem>>, vector<1x200xf32>
    %19 = arith.truncf %17 : vector<8x400xf32> to vector<8x400xbf16>
    %c0_9 = arith.constant 0 : index
    %c0_10 = arith.constant 0 : index
    %20 = vector.load %arg5[%c0_9, %c0_10] : memref<400x200xbf16, #tpu.memory_space<vmem>>, vector<400x200xbf16>
    %cst_11 = arith.constant dense<0.000000e+00> : vector<8x200xf32>
    %21 = tpu.matmul %19, %20, %cst_11 {dimension_numbers = #tpu.dot_dimension_numbers<[1], [0], [0], [1], [0, 0, 1, 1], [], []>} : vector<8x400xbf16>, vector<400x200xbf16>, vector<8x200xf32> -> vector<8x200xf32>
    %22 = vector.broadcast %18 : vector<1x200xf32> to vector<8x200xf32>
    %23 = arith.addf %21, %22 : vector<8x200xf32>
    %cst_12 = arith.constant 5.000000e-01 : f32
    %24 = vector.broadcast %cst_12 : f32 to vector<8x200xf32>
    %25 = arith.mulf %24, %23 : vector<8x200xf32>
    %26 = math.tanh %25 : vector<8x200xf32>
    %cst_13 = arith.constant 5.000000e-01 : f32
    %27 = vector.broadcast %cst_13 : f32 to vector<8x200xf32>
    %28 = arith.mulf %27, %26 : vector<8x200xf32>
    %cst_14 = arith.constant 5.000000e-01 : f32
    %29 = vector.broadcast %cst_14 : f32 to vector<8x200xf32>
    %30 = arith.addf %28, %29 : vector<8x200xf32>
    %31 = arith.mulf %23, %30 : vector<8x200xf32>
    %c0_15 = arith.constant 0 : index
    %c768 = arith.constant 768 : index
    %32 = vector.load %arg3[%c0_15, %c768] : memref<1x2816xf32, #tpu.memory_space<vmem>>, vector<1x20xf32>
    %33 = arith.truncf %31 : vector<8x200xf32> to vector<8x200xbf16>
    %c0_16 = arith.constant 0 : index
    %c0_17 = arith.constant 0 : index
    %34 = vector.load %arg6[%c0_16, %c0_17] : memref<200x20xbf16, #tpu.memory_space<vmem>>, vector<200x20xbf16>
    %cst_18 = arith.constant dense<0.000000e+00> : vector<8x20xf32>
    %35 = tpu.matmul %33, %34, %cst_18 {dimension_numbers = #tpu.dot_dimension_numbers<[1], [0], [0], [1], [0, 0, 1, 1], [], []>} : vector<8x200xbf16>, vector<200x20xbf16>, vector<8x20xf32> -> vector<8x20xf32>
    %36 = vector.broadcast %32 : vector<1x20xf32> to vector<8x20xf32>
    %37 = arith.addf %35, %36 : vector<8x20xf32>
    %cst_19 = arith.constant 5.000000e-01 : f32
    %38 = vector.broadcast %cst_19 : f32 to vector<8x20xf32>
    %39 = arith.mulf %38, %37 : vector<8x20xf32>
    %40 = math.tanh %39 : vector<8x20xf32>
    %cst_20 = arith.constant 5.000000e-01 : f32
    %41 = vector.broadcast %cst_20 : f32 to vector<8x20xf32>
    %42 = arith.mulf %41, %40 : vector<8x20xf32>
    %cst_21 = arith.constant 5.000000e-01 : f32
    %43 = vector.broadcast %cst_21 : f32 to vector<8x20xf32>
    %44 = arith.addf %42, %43 : vector<8x20xf32>
    %45 = arith.mulf %37, %44 : vector<8x20xf32>
    %c0_22 = arith.constant 0 : index
    %c896 = arith.constant 896 : index
    %46 = vector.load %arg3[%c0_22, %c896] : memref<1x2816xf32, #tpu.memory_space<vmem>>, vector<1x256xf32>
    %47 = arith.truncf %45 : vector<8x20xf32> to vector<8x20xbf16>
    %c0_23 = arith.constant 0 : index
    %c0_24 = arith.constant 0 : index
    %48 = vector.load %arg7[%c0_23, %c0_24] : memref<20x256xbf16, #tpu.memory_space<vmem>>, vector<20x256xbf16>
    %cst_25 = arith.constant dense<0.000000e+00> : vector<8x256xf32>
    %49 = tpu.matmul %47, %48, %cst_25 {dimension_numbers = #tpu.dot_dimension_numbers<[1], [0], [0], [1], [0, 0, 1, 1], [], []>} : vector<8x20xbf16>, vector<20x256xbf16>, vector<8x256xf32> -> vector<8x256xf32>
    %50 = vector.broadcast %46 : vector<1x256xf32> to vector<8x256xf32>
    %51 = arith.addf %49, %50 : vector<8x256xf32>
    %52 = vector.extract_strided_slice %51 {offsets = [0, 0], sizes = [8, 128], strides = [1, 1]} : vector<8x256xf32> to vector<8x128xf32>
    %53 = vector.extract_strided_slice %51 {offsets = [0, 128], sizes = [8, 128], strides = [1, 1]} : vector<8x256xf32> to vector<8x128xf32>
    %cst_26 = arith.constant 0.000000e+00 : f32
    %54 = vector.broadcast %cst_26 : f32 to vector<8x128xf32>
    %55 = arith.maximumf %53, %54 : vector<8x128xf32>
    %56 = math.absf %53 : vector<8x128xf32>
    %cst_27 = arith.constant 0.000000e+00 : f32
    %57 = vector.broadcast %cst_27 : f32 to vector<8x128xf32>
    %58 = arith.subf %57, %56 : vector<8x128xf32>
    %59 = math.exp %58 : vector<8x128xf32>
    %60 = math.log1p %59 : vector<8x128xf32>
    %61 = arith.addf %55, %60 : vector<8x128xf32>
    %c0_28 = arith.constant 0 : index
    %c0_29 = arith.constant 0 : index
    %62 = vector.load %arg2[%c0_28, %c0_29] : memref<8x128xf32, #tpu.memory_space<vmem>>, vector<8x128xf32>
    %63 = arith.mulf %62, %61 : vector<8x128xf32>
    %64 = arith.addf %52, %63 : vector<8x128xf32>
    %c0_30 = arith.constant 0 : index
    %c1152 = arith.constant 1152 : index
    %65 = vector.load %arg3[%c0_30, %c1152] : memref<1x2816xf32, #tpu.memory_space<vmem>>, vector<1x200xf32>
    %66 = arith.truncf %64 : vector<8x128xf32> to vector<8x128xbf16>
    %c0_31 = arith.constant 0 : index
    %c0_32 = arith.constant 0 : index
    %67 = vector.load %arg8[%c0_31, %c0_32] : memref<128x200xbf16, #tpu.memory_space<vmem>>, vector<128x200xbf16>
    %cst_33 = arith.constant dense<0.000000e+00> : vector<8x200xf32>
    %68 = tpu.matmul %66, %67, %cst_33 {dimension_numbers = #tpu.dot_dimension_numbers<[1], [0], [0], [1], [0, 0, 1, 1], [], []>} : vector<8x128xbf16>, vector<128x200xbf16>, vector<8x200xf32> -> vector<8x200xf32>
    %69 = vector.broadcast %65 : vector<1x200xf32> to vector<8x200xf32>
    %70 = arith.addf %68, %69 : vector<8x200xf32>
    %cst_34 = arith.constant 5.000000e-01 : f32
    %71 = vector.broadcast %cst_34 : f32 to vector<8x200xf32>
    %72 = arith.mulf %71, %70 : vector<8x200xf32>
    %73 = math.tanh %72 : vector<8x200xf32>
    %cst_35 = arith.constant 5.000000e-01 : f32
    %74 = vector.broadcast %cst_35 : f32 to vector<8x200xf32>
    %75 = arith.mulf %74, %73 : vector<8x200xf32>
    %cst_36 = arith.constant 5.000000e-01 : f32
    %76 = vector.broadcast %cst_36 : f32 to vector<8x200xf32>
    %77 = arith.addf %75, %76 : vector<8x200xf32>
    %78 = arith.mulf %70, %77 : vector<8x200xf32>
    %c0_i32_37 = arith.constant 0 : i32
    %79 = tpu.memref_slice %arg15[%c0_i32_37] : memref<2x!tpu.dma_semaphore, #tpu.memory_space<semaphore_mem>> -> memref<1x!tpu.dma_semaphore, #tpu.memory_space<semaphore_mem>>
    %80 = tpu.memref_squeeze %79 : memref<1x!tpu.dma_semaphore, #tpu.memory_space<semaphore_mem>> -> memref<!tpu.dma_semaphore, #tpu.memory_space<semaphore_mem>>
    tpu.wait_dma2 semaphore(%80 : memref<!tpu.dma_semaphore, #tpu.memory_space<semaphore_mem>>) src(%arg9 : memref<200x400xbf16, #tpu.memory_space<any>>) dst(%arg13 : memref<200x400xbf16, #tpu.memory_space<vmem>>)
    %c1_i32_38 = arith.constant 1 : i32
    %81 = tpu.memref_slice %arg15[%c1_i32_38] : memref<2x!tpu.dma_semaphore, #tpu.memory_space<semaphore_mem>> -> memref<1x!tpu.dma_semaphore, #tpu.memory_space<semaphore_mem>>
    %82 = tpu.memref_squeeze %81 : memref<1x!tpu.dma_semaphore, #tpu.memory_space<semaphore_mem>> -> memref<!tpu.dma_semaphore, #tpu.memory_space<semaphore_mem>>
    tpu.wait_dma2 semaphore(%82 : memref<!tpu.dma_semaphore, #tpu.memory_space<semaphore_mem>>) src(%arg10 : memref<400x896xbf16, #tpu.memory_space<any>>) dst(%arg14 : memref<400x896xbf16, #tpu.memory_space<vmem>>)
    %c0_39 = arith.constant 0 : index
    %c1408 = arith.constant 1408 : index
    %83 = vector.load %arg3[%c0_39, %c1408] : memref<1x2816xf32, #tpu.memory_space<vmem>>, vector<1x400xf32>
    %84 = arith.truncf %78 : vector<8x200xf32> to vector<8x200xbf16>
    %c0_40 = arith.constant 0 : index
    %c0_41 = arith.constant 0 : index
    %85 = vector.load %arg13[%c0_40, %c0_41] : memref<200x400xbf16, #tpu.memory_space<vmem>>, vector<200x400xbf16>
    %cst_42 = arith.constant dense<0.000000e+00> : vector<8x400xf32>
    %86 = tpu.matmul %84, %85, %cst_42 {dimension_numbers = #tpu.dot_dimension_numbers<[1], [0], [0], [1], [0, 0, 1, 1], [], []>} : vector<8x200xbf16>, vector<200x400xbf16>, vector<8x400xf32> -> vector<8x400xf32>
    %87 = vector.broadcast %83 : vector<1x400xf32> to vector<8x400xf32>
    %88 = arith.addf %86, %87 : vector<8x400xf32>
    %cst_43 = arith.constant 5.000000e-01 : f32
    %89 = vector.broadcast %cst_43 : f32 to vector<8x400xf32>
    %90 = arith.mulf %89, %88 : vector<8x400xf32>
    %91 = math.tanh %90 : vector<8x400xf32>
    %cst_44 = arith.constant 5.000000e-01 : f32
    %92 = vector.broadcast %cst_44 : f32 to vector<8x400xf32>
    %93 = arith.mulf %92, %91 : vector<8x400xf32>
    %cst_45 = arith.constant 5.000000e-01 : f32
    %94 = vector.broadcast %cst_45 : f32 to vector<8x400xf32>
    %95 = arith.addf %93, %94 : vector<8x400xf32>
    %96 = arith.mulf %88, %95 : vector<8x400xf32>
    %c0_46 = arith.constant 0 : index
    %c1920 = arith.constant 1920 : index
    %97 = vector.load %arg3[%c0_46, %c1920] : memref<1x2816xf32, #tpu.memory_space<vmem>>, vector<1x896xf32>
    %98 = arith.truncf %96 : vector<8x400xf32> to vector<8x400xbf16>
    %c0_47 = arith.constant 0 : index
    %c0_48 = arith.constant 0 : index
    %99 = vector.load %arg14[%c0_47, %c0_48] : memref<400x896xbf16, #tpu.memory_space<vmem>>, vector<400x896xbf16>
    %cst_49 = arith.constant dense<0.000000e+00> : vector<8x896xf32>
    %100 = tpu.matmul %98, %99, %cst_49 {dimension_numbers = #tpu.dot_dimension_numbers<[1], [0], [0], [1], [0, 0, 1, 1], [], []>} : vector<8x400xbf16>, vector<400x896xbf16>, vector<8x896xf32> -> vector<8x896xf32>
    %101 = vector.broadcast %97 : vector<1x896xf32> to vector<8x896xf32>
    %102 = arith.addf %100, %101 : vector<8x896xf32>
    %cst_50 = arith.constant 5.000000e-01 : f32
    %103 = vector.broadcast %cst_50 : f32 to vector<8x896xf32>
    %104 = arith.mulf %103, %102 : vector<8x896xf32>
    %105 = math.tanh %104 : vector<8x896xf32>
    %cst_51 = arith.constant 5.000000e-01 : f32
    %106 = vector.broadcast %cst_51 : f32 to vector<8x896xf32>
    %107 = arith.mulf %106, %105 : vector<8x896xf32>
    %cst_52 = arith.constant 5.000000e-01 : f32
    %108 = vector.broadcast %cst_52 : f32 to vector<8x896xf32>
    %109 = arith.addf %107, %108 : vector<8x896xf32>
    %c0_53 = arith.constant 0 : index
    %c0_54 = arith.constant 0 : index
    %110 = vector.load %arg11[%c0_53, %c0_54] : memref<8x896xf32, #tpu.memory_space<vmem>>, vector<8x896xf32>
    tpu.vector_store %arg11[%c0_53, %c0_54], %109 {strides = array<i32>} : memref<8x896xf32, #tpu.memory_space<vmem>>, vector<8x896xf32>,
    %c0_55 = arith.constant 0 : index
    %c0_56 = arith.constant 0 : index
    %111 = vector.load %arg12[%c0_55, %c0_56] : memref<8x256xf32, #tpu.memory_space<vmem>>, vector<8x128xf32>
    tpu.vector_store %arg12[%c0_55, %c0_56], %52 {strides = array<i32>} : memref<8x256xf32, #tpu.memory_space<vmem>>, vector<8x128xf32>,
    %c0_57 = arith.constant 0 : index
    %c128 = arith.constant 128 : index
    %112 = vector.load %arg12[%c0_57, %c128] : memref<8x256xf32, #tpu.memory_space<vmem>>, vector<8x128xf32>
    tpu.vector_store %arg12[%c0_57, %c128], %61 {strides = array<i32>} : memref<8x256xf32, #tpu.memory_space<vmem>>, vector<8x128xf32>,
    return
  }
  func.func @transform_0(%arg0: i32) -> (i32, i32) {
    %c0_i32 = arith.constant 0 : i32
    %c0_i32_0 = arith.constant 0 : i32
    return %arg0, %c0_i32 : i32, i32
  }
  func.func @transform_1(%arg0: i32) -> (i32, i32) {
    %c0_i32 = arith.constant 0 : i32
    %c0_i32_0 = arith.constant 0 : i32
    return %arg0, %c0_i32 : i32, i32
  }
  func.func @transform_2(%arg0: i32) -> (i32, i32) {
    %c0_i32 = arith.constant 0 : i32
    %c0_i32_0 = arith.constant 0 : i32
    %c0_i32_1 = arith.constant 0 : i32
    return %c0_i32, %c0_i32_0 : i32, i32
  }
  func.func @transform_3(%arg0: i32) -> (i32, i32) {
    %c0_i32 = arith.constant 0 : i32
    %c0_i32_0 = arith.constant 0 : i32
    %c0_i32_1 = arith.constant 0 : i32
    return %c0_i32, %c0_i32_0 : i32, i32
  }
  func.func @transform_4(%arg0: i32) -> (i32, i32) {
    %c0_i32 = arith.constant 0 : i32
    %c0_i32_0 = arith.constant 0 : i32
    %c0_i32_1 = arith.constant 0 : i32
    return %c0_i32, %c0_i32_0 : i32, i32
  }
  func.func @transform_5(%arg0: i32) -> (i32, i32) {
    %c0_i32 = arith.constant 0 : i32
    %c0_i32_0 = arith.constant 0 : i32
    %c0_i32_1 = arith.constant 0 : i32
    return %c0_i32, %c0_i32_0 : i32, i32
  }
  func.func @transform_6(%arg0: i32) -> (i32, i32) {
    %c0_i32 = arith.constant 0 : i32
    %c0_i32_0 = arith.constant 0 : i32
    %c0_i32_1 = arith.constant 0 : i32
    return %c0_i32, %c0_i32_0 : i32, i32
  }
  func.func @transform_7(%arg0: i32) -> (i32, i32) {
    %c0_i32 = arith.constant 0 : i32
    %c0_i32_0 = arith.constant 0 : i32
    %c0_i32_1 = arith.constant 0 : i32
    return %c0_i32, %c0_i32_0 : i32, i32
  }
  func.func @transform_10(%arg0: i32) -> (i32, i32) {
    %c0_i32 = arith.constant 0 : i32
    %c0_i32_0 = arith.constant 0 : i32
    return %arg0, %c0_i32 : i32, i32
  }
  func.func @transform_11(%arg0: i32) -> (i32, i32) {
    %c0_i32 = arith.constant 0 : i32
    %c0_i32_0 = arith.constant 0 : i32
    return %arg0, %c0_i32 : i32, i32
  }
}

</mosaic_0001>

<bundles_post_ra>
// kernel: tpu_custom_call.1
= control target key start
LH: loop header
LB: loop body
LE: loop exit
PB: predicated region body
PF: predicated region fallthrough
CT: control target
= control target key end

     0   :  { %17 = vsyncpa [#allocation6], 0  ;;  %s10620_s0 = inlined_call_operand.vmem [shape: bf16[8,896], index: 0, kind: input, shape index: {}]   ;;  %s10621_s1 = inlined_call_operand.vmem [shape: f32[8,128], index: 1, kind: input, shape index: {}]   ;;  %s10622_s2 = inlined_call_operand.vmem [shape: f32[1,2816], index: 2, kind: input, shape index: {}]   ;;  %s10623_s3 = inlined_call_operand.vmem [shape: bf16[896,400], index: 3, kind: input, shape index: {}]   ;;  %s10624_s4 = inlined_call_operand.vmem [shape: bf16[400,200], index: 4, kind: input, shape index: {}]   ;;  %s10625_s5 = inlined_call_operand.vmem [shape: bf16[200,20], index: 5, kind: input, shape index: {}]   ;;  %s10626_s6 = inlined_call_operand.vmem [shape: bf16[20,256], index: 6, kind: input, shape index: {}]   ;;  %s10627_s7 = inlined_call_operand.vmem [shape: bf16[128,200], index: 7, kind: input, shape index: {}]   ;;  %s10628_s8 = inlined_call_operand.vmem [shape: bf16[200,400], index: 8, kind: input, shape index: {}]   ;;  %s10629_s9 = inlined_call_operand.vmem [shape: bf16[400,896], index: 9, kind: input, shape index: {}]   ;;  %s10630_s10 = inlined_call_operand.hbm [shape: f32[8,896], index: 10, kind: output, shape index: {0}]   ;;  %s10631_s11 = inlined_call_operand.hbm [shape: f32[8,256], index: 11, kind: output, shape index: {1}]  }
   0x1   :  { %18 = vsyncpa [#allocation8], 0  ;;  %v46_v0 = vld [vmem:[%s10628_s8] sm:$0xff]  ;;  %v48_v1 = vld [vmem:[%s10628_s8 + $0x8] sm:$0xff] }
   0x2   :  { %47 = vst [vmem:[#allocation2] sm:$0xff] %v46_v0  ;;  %v50_v2 = vld [vmem:[%s10628_s8 + $0x10] sm:$0xff]  ;;  %v52_v3 = vld [vmem:[%s10628_s8 + $0x18] sm:$0xff]  ;;  %v54_v4 = vld [vmem:[%s10628_s8 + $0x20] sm:$0xff] }
   0x3   :  { %49 = vst [vmem:[#allocation2 + $0x8] sm:$0xff] %v48_v1  ;;  %v56_v5 = vld [vmem:[%s10628_s8 + $0x28] sm:$0xff]  ;;  %v58_v6 = vld [vmem:[%s10628_s8 + $0x30] sm:$0xff]  ;;  %v60_v7 = vld [vmem:[%s10628_s8 + $0x38] sm:$0xff] }
   0x4   :  { %51 = vst [vmem:[#allocation2 + $0x10] sm:$0xff] %v50_v2  ;;  %v62_v8 = vld [vmem:[%s10628_s8 + $0x40] sm:$0xff]  ;;  %v64_v9 = vld [vmem:[%s10628_s8 + $0x48] sm:$0xff]  ;;  %v66_v10 = vld [vmem:[%s10628_s8 + $0x50] sm:$0xff] }
   0x5   :  { %53 = vst [vmem:[#allocation2 + $0x18] sm:$0xff] %v52_v3  ;;  %v68_v11 = vld [vmem:[%s10628_s8 + $0x58] sm:$0xff]  ;;  %v70_v12 = vld [vmem:[%s10628_s8 + $0x60] sm:$0xff]  ;;  %v72_v13 = vld [vmem:[%s10628_s8 + $0x68] sm:$0xff] }
   0x6   :  { %55 = vst [vmem:[#allocation2 + $0x20] sm:$0xff] %v54_v4  ;;  %v74_v14 = vld [vmem:[%s10628_s8 + $0x70] sm:$0xff]  ;;  %v76_v15 = vld [vmem:[%s10628_s8 + $0x78] sm:$0xff]  ;;  %v78_v16 = vld [vmem:[%s10628_s8 + $0x80] sm:$0xff] }
   0x7   :  { %57 = vst [vmem:[#allocation2 + $0x28] sm:$0xff] %v56_v5  ;;  %v80_v17 = vld [vmem:[%s10628_s8 + $0x88] sm:$0xff]  ;;  %v82_v18 = vld [vmem:[%s10628_s8 + $0x90] sm:$0xff]  ;;  %v84_v19 = vld [vmem:[%s10628_s8 + $0x98] sm:$0xff] }
   0x8   :  { %59 = vst [vmem:[#allocation2 + $0x30] sm:$0xff] %v58_v6  ;;  %v86_v20 = vld [vmem:[%s10628_s8 + $0xa0] sm:$0xff]  ;;  %v88_v21 = vld [vmem:[%s10628_s8 + $0xa8] sm:$0xff]  ;;  %v90_v22 = vld [vmem:[%s10628_s8 + $0xb0] sm:$0xff] }
   0x9   :  { %61 = vst [vmem:[#allocation2 + $0x38] sm:$0xff] %v60_v7  ;;  %v92_v23 = vld [vmem:[%s10628_s8 + $0xb8] sm:$0xff]  ;;  %v94_v24 = vld [vmem:[%s10628_s8 + $0xc0] sm:$0xff]  ;;  %v96_v25 = vld [vmem:[%s10628_s8 + $0xc8] sm:$0xff] }
   0xa   :  { %63 = vst [vmem:[#allocation2 + $0x40] sm:$0xff] %v62_v8  ;;  %v98_v26 = vld [vmem:[%s10628_s8 + $0xd0] sm:$0xff]  ;;  %v100_v27 = vld [vmem:[%s10628_s8 + $0xd8] sm:$0xff]  ;;  %v102_v28 = vld [vmem:[%s10628_s8 + $0xe0] sm:$0xff] }
   0xb   :  { %65 = vst [vmem:[#allocation2 + $0x48] sm:$0xff] %v64_v9  ;;  %v104_v29 = vld [vmem:[%s10628_s8 + $0xe8] sm:$0xff]  ;;  %v106_v30 = vld [vmem:[%s10628_s8 + $0xf0] sm:$0xff]  ;;  %v108_v31 = vld [vmem:[%s10628_s8 + $0xf8] sm:$0xff] }
   0xc   :  { %67 = vst [vmem:[#allocation2 + $0x50] sm:$0xff] %v66_v10  ;;  %v110_v32 = vld [vmem:[%s10628_s8 + $0x100] sm:$0xff]  ;;  %v112_v33 = vld [vmem:[%s10628_s8 + $0x108] sm:$0xff]  ;;  %v114_v34 = vld [vmem:[%s10628_s8 + $0x110] sm:$0xff] }
   0xd   :  { %69 = vst [vmem:[#allocation2 + $0x58] sm:$0xff] %v68_v11  ;;  %v116_v35 = vld [vmem:[%s10628_s8 + $0x118] sm:$0xff]  ;;  %v118_v36 = vld [vmem:[%s10628_s8 + $0x120] sm:$0xff]  ;;  %v120_v37 = vld [vmem:[%s10628_s8 + $0x128] sm:$0xff] }
   0xe   :  { %71 = vst [vmem:[#allocation2 + $0x60] sm:$0xff] %v70_v12  ;;  %v122_v38 = vld [vmem:[%s10628_s8 + $0x130] sm:$0xff]  ;;  %v124_v39 = vld [vmem:[%s10628_s8 + $0x138] sm:$0xff]  ;;  %v126_v40 = vld [vmem:[%s10628_s8 + $0x140] sm:$0xff] }
   0xf   :  { %73 = vst [vmem:[#allocation2 + $0x68] sm:$0xff] %v72_v13  ;;  %v128_v41 = vld [vmem:[%s10628_s8 + $0x148] sm:$0xff]  ;;  %v130_v42 = vld [vmem:[%s10628_s8 + $0x150] sm:$0xff]  ;;  %v132_v43 = vld [vmem:[%s10628_s8 + $0x158] sm:$0xff] }
  0x10   :  { %75 = vst [vmem:[#allocation2 + $0x70] sm:$0xff] %v74_v14  ;;  %v134_v44 = vld [vmem:[%s10628_s8 + $0x160] sm:$0xff]  ;;  %v136_v45 = vld [vmem:[%s10628_s8 + $0x168] sm:$0xff]  ;;  %v138_v46 = vld [vmem:[%s10628_s8 + $0x170] sm:$0xff] }
  0x11   :  { %77 = vst [vmem:[#allocation2 + $0x78] sm:$0xff] %v76_v15  ;;  %v140_v47 = vld [vmem:[%s10628_s8 + $0x178] sm:$0xff]  ;;  %v142_v48 = vld [vmem:[%s10628_s8 + $0x180] sm:$0xff]  ;;  %v144_v49 = vld [vmem:[%s10628_s8 + $0x188] sm:$0xff] }
  0x12   :  { %79 = vst [vmem:[#allocation2 + $0x80] sm:$0xff] %v78_v16 }
  0x13   :  { %81 = vst [vmem:[#allocation2 + $0x88] sm:$0xff] %v80_v17 }
  0x14   :  { %83 = vst [vmem:[#allocation2 + $0x90] sm:$0xff] %v82_v18 }
  0x15   :  { %85 = vst [vmem:[#allocation2 + $0x98] sm:$0xff] %v84_v19 }
  0x16   :  { %87 = vst [vmem:[#allocation2 + $0xa0] sm:$0xff] %v86_v20 }
  0x17   :  { %89 = vst [vmem:[#allocation2 + $0xa8] sm:$0xff] %v88_v21 }
  0x18   :  { %91 = vst [vmem:[#allocation2 + $0xb0] sm:$0xff] %v90_v22 }
  0x19   :  { %93 = vst [vmem:[#allocation2 + $0xb8] sm:$0xff] %v92_v23 }
  0x1a   :  { %95 = vst [vmem:[#allocation2 + $0xc0] sm:$0xff] %v94_v24 }
  0x1b   :  { %97 = vst [vmem:[#allocation2 + $0xc8] sm:$0xff] %v96_v25 }
  0x1c   :  { %99 = vst [vmem:[#allocation2 + $0xd0] sm:$0xff] %v98_v26 }
  0x1d   :  { %101 = vst [vmem:[#allocation2 + $0xd8] sm:$0xff] %v100_v27 }
  0x1e   :  { %103 = vst [vmem:[#allocation2 + $0xe0] sm:$0xff] %v102_v28 }
  0x1f   :  { %105 = vst [vmem:[#allocation2 + $0xe8] sm:$0xff] %v104_v29 }
  0x20   :  { %107 = vst [vmem:[#allocation2 + $0xf0] sm:$0xff] %v106_v30 }
  0x21   :  { %109 = vst [vmem:[#allocation2 + $0xf8] sm:$0xff] %v108_v31 }
  0x22   :  { %111 = vst [vmem:[#allocation2 + $0x100] sm:$0xff] %v110_v32 }
  0x23   :  { %113 = vst [vmem:[#allocation2 + $0x108] sm:$0xff] %v112_v33 }
  0x24   :  { %115 = vst [vmem:[#allocation2 + $0x110] sm:$0xff] %v114_v34 }
  0x25   :  { %117 = vst [vmem:[#allocation2 + $0x118] sm:$0xff] %v116_v35 }
  0x26   :  { %119 = vst [vmem:[#allocation2 + $0x120] sm:$0xff] %v118_v36 }
  0x27   :  { %121 = vst [vmem:[#allocation2 + $0x128] sm:$0xff] %v120_v37 }
  0x28   :  { %123 = vst [vmem:[#allocation2 + $0x130] sm:$0xff] %v122_v38 }
  0x29   :  { %125 = vst [vmem:[#allocation2 + $0x138] sm:$0xff] %v124_v39 }
  0x2a   :  { %127 = vst [vmem:[#allocation2 + $0x140] sm:$0xff] %v126_v40 }
  0x2b   :  { %129 = vst [vmem:[#allocation2 + $0x148] sm:$0xff] %v128_v41 }
  0x2c   :  { %131 = vst [vmem:[#allocation2 + $0x150] sm:$0xff] %v130_v42 }
  0x2d   :  { %133 = vst [vmem:[#allocation2 + $0x158] sm:$0xff] %v132_v43 }
  0x2e   :  { %135 = vst [vmem:[#allocation2 + $0x160] sm:$0xff] %v134_v44 }
  0x2f   :  { %137 = vst [vmem:[#allocation2 + $0x168] sm:$0xff] %v136_v45 }
  0x30   :  { %139 = vst [vmem:[#allocation2 + $0x170] sm:$0xff] %v138_v46 }
  0x31   :  { %141 = vst [vmem:[#allocation2 + $0x178] sm:$0xff] %v140_v47 }
  0x32   :  { %143 = vst [vmem:[#allocation2 + $0x180] sm:$0xff] %v142_v48 }
  0x33   :  { %145 = vst [vmem:[#allocation2 + $0x188] sm:$0xff] %v144_v49 }
  0x34   :  { %151 = vsyncadd [#allocation4], 6400  ;;  %v163_v50 = vld [vmem:[%s10629_s9] sm:$0xff]  ;;  %v165_v51 = vld [vmem:[%s10629_s9 + $0x8] sm:$0xff] }
  0x35   :  { %164 = vst [vmem:[#allocation3] sm:$0xff] %v163_v50  ;;  %v167_v52 = vld [vmem:[%s10629_s9 + $0x10] sm:$0xff]  ;;  %v169_v53 = vld [vmem:[%s10629_s9 + $0x18] sm:$0xff]  ;;  %v171_v54 = vld [vmem:[%s10629_s9 + $0x20] sm:$0xff] }
  0x36   :  { %166 = vst [vmem:[#allocation3 + $0x8] sm:$0xff] %v165_v51  ;;  %v173_v55 = vld [vmem:[%s10629_s9 + $0x28] sm:$0xff]  ;;  %v175_v56 = vld [vmem:[%s10629_s9 + $0x30] sm:$0xff]  ;;  %v177_v57 = vld [vmem:[%s10629_s9 + $0x38] sm:$0xff] }
  0x37   :  { %168 = vst [vmem:[#allocation3 + $0x10] sm:$0xff] %v167_v52  ;;  %v179_v58 = vld [vmem:[%s10629_s9 + $0x40] sm:$0xff]  ;;  %v181_v59 = vld [vmem:[%s10629_s9 + $0x48] sm:$0xff]  ;;  %v183_v60 = vld [vmem:[%s10629_s9 + $0x50] sm:$0xff] }
  0x38   :  { %170 = vst [vmem:[#allocation3 + $0x18] sm:$0xff] %v169_v53  ;;  %v185_v61 = vld [vmem:[%s10629_s9 + $0x58] sm:$0xff]  ;;  %v187_v62 = vld [vmem:[%s10629_s9 + $0x60] sm:$0xff]  ;;  %v189_v63 = vld [vmem:[%s10629_s9 + $0x68] sm:$0xff] }
  0x39   :  { %172 = vst [vmem:[#allocation3 + $0x20] sm:$0xff] %v171_v54  ;;  %v191_v0 = vld [vmem:[%s10629_s9 + $0x70] sm:$0xff]  ;;  %v193_v1 = vld [vmem:[%s10629_s9 + $0x78] sm:$0xff]  ;;  %v195_v2 = vld [vmem:[%s10629_s9 + $0x80] sm:$0xff] }
  0x3a   :  { %174 = vst [vmem:[#allocation3 + $0x28] sm:$0xff] %v173_v55  ;;  %v197_v3 = vld [vmem:[%s10629_s9 + $0x88] sm:$0xff]  ;;  %v199_v4 = vld [vmem:[%s10629_s9 + $0x90] sm:$0xff]  ;;  %v201_v5 = vld [vmem:[%s10629_s9 + $0x98] sm:$0xff] }
  0x3b   :  { %176 = vst [vmem:[#allocation3 + $0x30] sm:$0xff] %v175_v56  ;;  %v203_v6 = vld [vmem:[%s10629_s9 + $0xa0] sm:$0xff]  ;;  %v205_v7 = vld [vmem:[%s10629_s9 + $0xa8] sm:$0xff]  ;;  %v207_v8 = vld [vmem:[%s10629_s9 + $0xb0] sm:$0xff] }
  0x3c   :  { %178 = vst [vmem:[#allocation3 + $0x38] sm:$0xff] %v177_v57  ;;  %v209_v9 = vld [vmem:[%s10629_s9 + $0xb8] sm:$0xff]  ;;  %v211_v10 = vld [vmem:[%s10629_s9 + $0xc0] sm:$0xff]  ;;  %v213_v11 = vld [vmem:[%s10629_s9 + $0xc8] sm:$0xff] }
  0x3d   :  { %180 = vst [vmem:[#allocation3 + $0x40] sm:$0xff] %v179_v58  ;;  %v215_v12 = vld [vmem:[%s10629_s9 + $0xd0] sm:$0xff]  ;;  %v217_v13 = vld [vmem:[%s10629_s9 + $0xd8] sm:$0xff]  ;;  %v219_v14 = vld [vmem:[%s10629_s9 + $0xe0] sm:$0xff] }
  0x3e   :  { %182 = vst [vmem:[#allocation3 + $0x48] sm:$0xff] %v181_v59  ;;  %v221_v15 = vld [vmem:[%s10629_s9 + $0xe8] sm:$0xff]  ;;  %v223_v16 = vld [vmem:[%s10629_s9 + $0xf0] sm:$0xff]  ;;  %v225_v17 = vld [vmem:[%s10629_s9 + $0xf8] sm:$0xff] }
  0x3f   :  { %184 = vst [vmem:[#allocation3 + $0x50] sm:$0xff] %v183_v60  ;;  %v227_v18 = vld [vmem:[%s10629_s9 + $0x100] sm:$0xff]  ;;  %v229_v19 = vld [vmem:[%s10629_s9 + $0x108] sm:$0xff]  ;;  %v231_v20 = vld [vmem:[%s10629_s9 + $0x110] sm:$0xff] }
  0x40   :  { %186 = vst [vmem:[#allocation3 + $0x58] sm:$0xff] %v185_v61  ;;  %v233_v21 = vld [vmem:[%s10629_s9 + $0x118] sm:$0xff]  ;;  %v235_v22 = vld [vmem:[%s10629_s9 + $0x120] sm:$0xff]  ;;  %v237_v23 = vld [vmem:[%s10629_s9 + $0x128] sm:$0xff] }
  0x41   :  { %188 = vst [vmem:[#allocation3 + $0x60] sm:$0xff] %v187_v62  ;;  %v239_v24 = vld [vmem:[%s10629_s9 + $0x130] sm:$0xff]  ;;  %v241_v25 = vld [vmem:[%s10629_s9 + $0x138] sm:$0xff]  ;;  %v243_v26 = vld [vmem:[%s10629_s9 + $0x140] sm:$0xff] }
  0x42   :  { %190 = vst [vmem:[#allocation3 + $0x68] sm:$0xff] %v189_v63  ;;  %v245_v27 = vld [vmem:[%s10629_s9 + $0x148] sm:$0xff]  ;;  %v247_v28 = vld [vmem:[%s10629_s9 + $0x150] sm:$0xff]  ;;  %v249_v29 = vld [vmem:[%s10629_s9 + $0x158] sm:$0xff] }
  0x43   :  { %192 = vst [vmem:[#allocation3 + $0x70] sm:$0xff] %v191_v0  ;;  %v251_v30 = vld [vmem:[%s10629_s9 + $0x160] sm:$0xff]  ;;  %v253_v31 = vld [vmem:[%s10629_s9 + $0x168] sm:$0xff]  ;;  %v255_v32 = vld [vmem:[%s10629_s9 + $0x170] sm:$0xff] }
  0x44   :  { %194 = vst [vmem:[#allocation3 + $0x78] sm:$0xff] %v193_v1  ;;  %v257_v33 = vld [vmem:[%s10629_s9 + $0x178] sm:$0xff]  ;;  %v259_v34 = vld [vmem:[%s10629_s9 + $0x180] sm:$0xff]  ;;  %v261_v35 = vld [vmem:[%s10629_s9 + $0x188] sm:$0xff] }
  0x45   :  { %196 = vst [vmem:[#allocation3 + $0x80] sm:$0xff] %v195_v2  ;;  %v263_v36 = vld [vmem:[%s10629_s9 + $0x190] sm:$0xff]  ;;  %v265_v37 = vld [vmem:[%s10629_s9 + $0x198] sm:$0xff]  ;;  %v267_v38 = vld [vmem:[%s10629_s9 + $0x1a0] sm:$0xff] }
  0x46   :  { %198 = vst [vmem:[#allocation3 + $0x88] sm:$0xff] %v197_v3  ;;  %v269_v39 = vld [vmem:[%s10629_s9 + $0x1a8] sm:$0xff]  ;;  %v271_v40 = vld [vmem:[%s10629_s9 + $0x1b0] sm:$0xff]  ;;  %v273_v41 = vld [vmem:[%s10629_s9 + $0x1b8] sm:$0xff] }
  0x47   :  { %200 = vst [vmem:[#allocation3 + $0x90] sm:$0xff] %v199_v4  ;;  %v275_v42 = vld [vmem:[%s10629_s9 + $0x1c0] sm:$0xff]  ;;  %v277_v43 = vld [vmem:[%s10629_s9 + $0x1c8] sm:$0xff]  ;;  %v279_v44 = vld [vmem:[%s10629_s9 + $0x1d0] sm:$0xff] }
  0x48   :  { %202 = vst [vmem:[#allocation3 + $0x98] sm:$0xff] %v201_v5  ;;  %v281_v45 = vld [vmem:[%s10629_s9 + $0x1d8] sm:$0xff]  ;;  %v283_v46 = vld [vmem:[%s10629_s9 + $0x1e0] sm:$0xff]  ;;  %v285_v47 = vld [vmem:[%s10629_s9 + $0x1e8] sm:$0xff] }
  0x49   :  { %204 = vst [vmem:[#allocation3 + $0xa0] sm:$0xff] %v203_v6  ;;  %v287_v48 = vld [vmem:[%s10629_s9 + $0x1f0] sm:$0xff]  ;;  %v289_v49 = vld [vmem:[%s10629_s9 + $0x1f8] sm:$0xff]  ;;  %v291_v50 = vld [vmem:[%s10629_s9 + $0x200] sm:$0xff] }
  0x4a   :  { %206 = vst [vmem:[#allocation3 + $0xa8] sm:$0xff] %v205_v7  ;;  %v293_v51 = vld [vmem:[%s10629_s9 + $0x208] sm:$0xff]  ;;  %v295_v52 = vld [vmem:[%s10629_s9 + $0x210] sm:$0xff]  ;;  %v297_v53 = vld [vmem:[%s10629_s9 + $0x218] sm:$0xff] }
  0x4b   :  { %208 = vst [vmem:[#allocation3 + $0xb0] sm:$0xff] %v207_v8  ;;  %v299_v54 = vld [vmem:[%s10629_s9 + $0x220] sm:$0xff]  ;;  %v301_v55 = vld [vmem:[%s10629_s9 + $0x228] sm:$0xff]  ;;  %v303_v56 = vld [vmem:[%s10629_s9 + $0x230] sm:$0xff] }
  0x4c   :  { %210 = vst [vmem:[#allocation3 + $0xb8] sm:$0xff] %v209_v9  ;;  %v305_v57 = vld [vmem:[%s10629_s9 + $0x238] sm:$0xff]  ;;  %v307_v58 = vld [vmem:[%s10629_s9 + $0x240] sm:$0xff]  ;;  %v309_v59 = vld [vmem:[%s10629_s9 + $0x248] sm:$0xff] }
  0x4d   :  { %212 = vst [vmem:[#allocation3 + $0xc0] sm:$0xff] %v211_v10  ;;  %v311_v60 = vld [vmem:[%s10629_s9 + $0x250] sm:$0xff]  ;;  %v313_v61 = vld [vmem:[%s10629_s9 + $0x258] sm:$0xff]  ;;  %v315_v62 = vld [vmem:[%s10629_s9 + $0x260] sm:$0xff] }
  0x4e   :  { %214 = vst [vmem:[#allocation3 + $0xc8] sm:$0xff] %v213_v11  ;;  %v317_v63 = vld [vmem:[%s10629_s9 + $0x268] sm:$0xff]  ;;  %v319_v0 = vld [vmem:[%s10629_s9 + $0x270] sm:$0xff]  ;;  %v321_v1 = vld [vmem:[%s10629_s9 + $0x278] sm:$0xff] }
  0x4f   :  { %216 = vst [vmem:[#allocation3 + $0xd0] sm:$0xff] %v215_v12  ;;  %v323_v2 = vld [vmem:[%s10629_s9 + $0x280] sm:$0xff]  ;;  %v325_v3 = vld [vmem:[%s10629_s9 + $0x288] sm:$0xff]  ;;  %v327_v4 = vld [vmem:[%s10629_s9 + $0x290] sm:$0xff] }
  0x50   :  { %218 = vst [vmem:[#allocation3 + $0xd8] sm:$0xff] %v217_v13  ;;  %v329_v5 = vld [vmem:[%s10629_s9 + $0x298] sm:$0xff]  ;;  %v331_v6 = vld [vmem:[%s10629_s9 + $0x2a0] sm:$0xff]  ;;  %v333_v7 = vld [vmem:[%s10629_s9 + $0x2a8] sm:$0xff] }
  0x51   :  { %220 = vst [vmem:[#allocation3 + $0xe0] sm:$0xff] %v219_v14  ;;  %v335_v8 = vld [vmem:[%s10629_s9 + $0x2b0] sm:$0xff]  ;;  %v337_v9 = vld [vmem:[%s10629_s9 + $0x2b8] sm:$0xff]  ;;  %v339_v10 = vld [vmem:[%s10629_s9 + $0x2c0] sm:$0xff] }
  0x52   :  { %222 = vst [vmem:[#allocation3 + $0xe8] sm:$0xff] %v221_v15  ;;  %v341_v11 = vld [vmem:[%s10629_s9 + $0x2c8] sm:$0xff]  ;;  %v343_v12 = vld [vmem:[%s10629_s9 + $0x2d0] sm:$0xff]  ;;  %v345_v13 = vld [vmem:[%s10629_s9 + $0x2d8] sm:$0xff] }
  0x53   :  { %224 = vst [vmem:[#allocation3 + $0xf0] sm:$0xff] %v223_v16  ;;  %v347_v14 = vld [vmem:[%s10629_s9 + $0x2e0] sm:$0xff]  ;;  %v349_v15 = vld [vmem:[%s10629_s9 + $0x2e8] sm:$0xff]  ;;  %v351_v16 = vld [vmem:[%s10629_s9 + $0x2f0] sm:$0xff] }
  0x54   :  { %226 = vst [vmem:[#allocation3 + $0xf8] sm:$0xff] %v225_v17  ;;  %v353_v17 = vld [vmem:[%s10629_s9 + $0x2f8] sm:$0xff] }
  0x55   :  { %228 = vst [vmem:[#allocation3 + $0x100] sm:$0xff] %v227_v18  ;;  %v355_v18 = vld [vmem:[%s10629_s9 + $0x300] sm:$0xff] }
  0x56   :  { %230 = vst [vmem:[#allocation3 + $0x108] sm:$0xff] %v229_v19  ;;  %v357_v19 = vld [vmem:[%s10629_s9 + $0x308] sm:$0xff] }
  0x57   :  { %232 = vst [vmem:[#allocation3 + $0x110] sm:$0xff] %v231_v20  ;;  %v359_v20 = vld [vmem:[%s10629_s9 + $0x310] sm:$0xff] }
  0x58   :  { %234 = vst [vmem:[#allocation3 + $0x118] sm:$0xff] %v233_v21  ;;  %v361_v21 = vld [vmem:[%s10629_s9 + $0x318] sm:$0xff] }
  0x59   :  { %236 = vst [vmem:[#allocation3 + $0x120] sm:$0xff] %v235_v22  ;;  %v363_v22 = vld [vmem:[%s10629_s9 + $0x320] sm:$0xff] }
  0x5a   :  { %238 = vst [vmem:[#allocation3 + $0x128] sm:$0xff] %v237_v23  ;;  %v365_v23 = vld [vmem:[%s10629_s9 + $0x328] sm:$0xff] }
  0x5b   :  { %240 = vst [vmem:[#allocation3 + $0x130] sm:$0xff] %v239_v24  ;;  %v367_v24 = vld [vmem:[%s10629_s9 + $0x330] sm:$0xff] }
  0x5c   :  { %242 = vst [vmem:[#allocation3 + $0x138] sm:$0xff] %v241_v25  ;;  %v369_v25 = vld [vmem:[%s10629_s9 + $0x338] sm:$0xff] }
  0x5d   :  { %244 = vst [vmem:[#allocation3 + $0x140] sm:$0xff] %v243_v26  ;;  %v371_v26 = vld [vmem:[%s10629_s9 + $0x340] sm:$0xff] }
  0x5e   :  { %246 = vst [vmem:[#allocation3 + $0x148] sm:$0xff] %v245_v27  ;;  %v373_v27 = vld [vmem:[%s10629_s9 + $0x348] sm:$0xff] }
  0x5f   :  { %248 = vst [vmem:[#allocation3 + $0x150] sm:$0xff] %v247_v28  ;;  %v375_v28 = vld [vmem:[%s10629_s9 + $0x350] sm:$0xff] }
  0x60   :  { %250 = vst [vmem:[#allocation3 + $0x158] sm:$0xff] %v249_v29  ;;  %v377_v29 = vld [vmem:[%s10629_s9 + $0x358] sm:$0xff] }
  0x61   :  { %252 = vst [vmem:[#allocation3 + $0x160] sm:$0xff] %v251_v30  ;;  %v379_v30 = vld [vmem:[%s10629_s9 + $0x360] sm:$0xff] }
  0x62   :  { %254 = vst [vmem:[#allocation3 + $0x168] sm:$0xff] %v253_v31  ;;  %v381_v31 = vld [vmem:[%s10629_s9 + $0x368] sm:$0xff] }
  0x63   :  { %256 = vst [vmem:[#allocation3 + $0x170] sm:$0xff] %v255_v32  ;;  %v383_v32 = vld [vmem:[%s10629_s9 + $0x370] sm:$0xff] }
  0x64   :  { %258 = vst [vmem:[#allocation3 + $0x178] sm:$0xff] %v257_v33  ;;  %v385_v33 = vld [vmem:[%s10629_s9 + $0x378] sm:$0xff] }
  0x65   :  { %260 = vst [vmem:[#allocation3 + $0x180] sm:$0xff] %v259_v34  ;;  %v387_v34 = vld [vmem:[%s10629_s9 + $0x380] sm:$0xff] }
  0x66   :  { %262 = vst [vmem:[#allocation3 + $0x188] sm:$0xff] %v261_v35  ;;  %v389_v35 = vld [vmem:[%s10629_s9 + $0x388] sm:$0xff] }
  0x67   :  { %264 = vst [vmem:[#allocation3 + $0x190] sm:$0xff] %v263_v36  ;;  %v391_v36 = vld [vmem:[%s10629_s9 + $0x390] sm:$0xff] }
  0x68   :  { %266 = vst [vmem:[#allocation3 + $0x198] sm:$0xff] %v265_v37  ;;  %v393_v37 = vld [vmem:[%s10629_s9 + $0x398] sm:$0xff] }
  0x69   :  { %268 = vst [vmem:[#allocation3 + $0x1a0] sm:$0xff] %v267_v38  ;;  %v395_v38 = vld [vmem:[%s10629_s9 + $0x3a0] sm:$0xff] }
  0x6a   :  { %270 = vst [vmem:[#allocation3 + $0x1a8] sm:$0xff] %v269_v39  ;;  %v397_v39 = vld [vmem:[%s10629_s9 + $0x3a8] sm:$0xff] }
  0x6b   :  { %272 = vst [vmem:[#allocation3 + $0x1b0] sm:$0xff] %v271_v40  ;;  %v399_v40 = vld [vmem:[%s10629_s9 + $0x3b0] sm:$0xff] }
  0x6c   :  { %274 = vst [vmem:[#allocation3 + $0x1b8] sm:$0xff] %v273_v41  ;;  %v401_v41 = vld [vmem:[%s10629_s9 + $0x3b8] sm:$0xff] }
  0x6d   :  { %276 = vst [vmem:[#allocation3 + $0x1c0] sm:$0xff] %v275_v42  ;;  %v403_v42 = vld [vmem:[%s10629_s9 + $0x3c0] sm:$0xff] }
  0x6e   :  { %278 = vst [vmem:[#allocation3 + $0x1c8] sm:$0xff] %v277_v43  ;;  %v405_v43 = vld [vmem:[%s10629_s9 + $0x3c8] sm:$0xff] }
  0x6f   :  { %280 = vst [vmem:[#allocation3 + $0x1d0] sm:$0xff] %v279_v44  ;;  %v407_v44 = vld [vmem:[%s10629_s9 + $0x3d0] sm:$0xff] }
  0x70   :  { %282 = vst [vmem:[#allocation3 + $0x1d8] sm:$0xff] %v281_v45  ;;  %v409_v45 = vld [vmem:[%s10629_s9 + $0x3d8] sm:$0xff] }
  0x71   :  { %284 = vst [vmem:[#allocation3 + $0x1e0] sm:$0xff] %v283_v46  ;;  %v411_v46 = vld [vmem:[%s10629_s9 + $0x3e0] sm:$0xff] }
  0x72   :  { %286 = vst [vmem:[#allocation3 + $0x1e8] sm:$0xff] %v285_v47  ;;  %v413_v47 = vld [vmem:[%s10629_s9 + $0x3e8] sm:$0xff] }
  0x73   :  { %288 = vst [vmem:[#allocation3 + $0x1f0] sm:$0xff] %v287_v48  ;;  %v415_v48 = vld [vmem:[%s10629_s9 + $0x3f0] sm:$0xff] }
  0x74   :  { %290 = vst [vmem:[#allocation3 + $0x1f8] sm:$0xff] %v289_v49  ;;  %v417_v49 = vld [vmem:[%s10629_s9 + $0x3f8] sm:$0xff] }
  0x75   :  { %292 = vst [vmem:[#allocation3 + $0x200] sm:$0xff] %v291_v50  ;;  %v419_v50 = vld [vmem:[%s10629_s9 + $0x400] sm:$0xff] }
  0x76   :  { %294 = vst [vmem:[#allocation3 + $0x208] sm:$0xff] %v293_v51  ;;  %v421_v51 = vld [vmem:[%s10629_s9 + $0x408] sm:$0xff] }
  0x77   :  { %296 = vst [vmem:[#allocation3 + $0x210] sm:$0xff] %v295_v52  ;;  %v423_v52 = vld [vmem:[%s10629_s9 + $0x410] sm:$0xff] }
  0x78   :  { %298 = vst [vmem:[#allocation3 + $0x218] sm:$0xff] %v297_v53  ;;  %v425_v53 = vld [vmem:[%s10629_s9 + $0x418] sm:$0xff] }
  0x79   :  { %300 = vst [vmem:[#allocation3 + $0x220] sm:$0xff] %v299_v54  ;;  %v427_v54 = vld [vmem:[%s10629_s9 + $0x420] sm:$0xff] }
  0x7a   :  { %302 = vst [vmem:[#allocation3 + $0x228] sm:$0xff] %v301_v55  ;;  %v429_v55 = vld [vmem:[%s10629_s9 + $0x428] sm:$0xff] }
  0x7b   :  { %304 = vst [vmem:[#allocation3 + $0x230] sm:$0xff] %v303_v56  ;;  %v431_v56 = vld [vmem:[%s10629_s9 + $0x430] sm:$0xff] }
  0x7c   :  { %306 = vst [vmem:[#allocation3 + $0x238] sm:$0xff] %v305_v57  ;;  %v433_v57 = vld [vmem:[%s10629_s9 + $0x438] sm:$0xff] }
  0x7d   :  { %308 = vst [vmem:[#allocation3 + $0x240] sm:$0xff] %v307_v58  ;;  %v435_v58 = vld [vmem:[%s10629_s9 + $0x440] sm:$0xff] }
  0x7e   :  { %310 = vst [vmem:[#allocation3 + $0x248] sm:$0xff] %v309_v59  ;;  %v437_v59 = vld [vmem:[%s10629_s9 + $0x448] sm:$0xff] }
  0x7f   :  { %312 = vst [vmem:[#allocation3 + $0x250] sm:$0xff] %v311_v60  ;;  %v439_v60 = vld [vmem:[%s10629_s9 + $0x450] sm:$0xff] }
  0x80   :  { %314 = vst [vmem:[#allocation3 + $0x258] sm:$0xff] %v313_v61  ;;  %v441_v61 = vld [vmem:[%s10629_s9 + $0x458] sm:$0xff] }
  0x81   :  { %316 = vst [vmem:[#allocation3 + $0x260] sm:$0xff] %v315_v62  ;;  %v443_v62 = vld [vmem:[%s10629_s9 + $0x460] sm:$0xff] }
  0x82   :  { %318 = vst [vmem:[#allocation3 + $0x268] sm:$0xff] %v317_v63  ;;  %v445_v63 = vld [vmem:[%s10629_s9 + $0x468] sm:$0xff] }
  0x83   :  { %320 = vst [vmem:[#allocation3 + $0x270] sm:$0xff] %v319_v0  ;;  %v447_v0 = vld [vmem:[%s10629_s9 + $0x470] sm:$0xff] }
  0x84   :  { %322 = vst [vmem:[#allocation3 + $0x278] sm:$0xff] %v321_v1  ;;  %v449_v1 = vld [vmem:[%s10629_s9 + $0x478] sm:$0xff] }
  0x85   :  { %324 = vst [vmem:[#allocation3 + $0x280] sm:$0xff] %v323_v2  ;;  %v451_v2 = vld [vmem:[%s10629_s9 + $0x480] sm:$0xff] }
  0x86   :  { %326 = vst [vmem:[#allocation3 + $0x288] sm:$0xff] %v325_v3  ;;  %v453_v3 = vld [vmem:[%s10629_s9 + $0x488] sm:$0xff] }
  0x87   :  { %328 = vst [vmem:[#allocation3 + $0x290] sm:$0xff] %v327_v4  ;;  %v455_v4 = vld [vmem:[%s10629_s9 + $0x490] sm:$0xff] }
  0x88   :  { %330 = vst [vmem:[#allocation3 + $0x298] sm:$0xff] %v329_v5  ;;  %v457_v5 = vld [vmem:[%s10629_s9 + $0x498] sm:$0xff] }
  0x89   :  { %332 = vst [vmem:[#allocation3 + $0x2a0] sm:$0xff] %v331_v6  ;;  %v459_v6 = vld [vmem:[%s10629_s9 + $0x4a0] sm:$0xff] }
  0x8a   :  { %334 = vst [vmem:[#allocation3 + $0x2a8] sm:$0xff] %v333_v7  ;;  %v461_v7 = vld [vmem:[%s10629_s9 + $0x4a8] sm:$0xff] }
  0x8b   :  { %336 = vst [vmem:[#allocation3 + $0x2b0] sm:$0xff] %v335_v8  ;;  %v463_v8 = vld [vmem:[%s10629_s9 + $0x4b0] sm:$0xff] }
  0x8c   :  { %338 = vst [vmem:[#allocation3 + $0x2b8] sm:$0xff] %v337_v9  ;;  %v465_v9 = vld [vmem:[%s10629_s9 + $0x4b8] sm:$0xff] }
  0x8d   :  { %340 = vst [vmem:[#allocation3 + $0x2c0] sm:$0xff] %v339_v10  ;;  %v467_v10 = vld [vmem:[%s10629_s9 + $0x4c0] sm:$0xff] }
  0x8e   :  { %342 = vst [vmem:[#allocation3 + $0x2c8] sm:$0xff] %v341_v11  ;;  %v469_v11 = vld [vmem:[%s10629_s9 + $0x4c8] sm:$0xff] }
  0x8f   :  { %344 = vst [vmem:[#allocation3 + $0x2d0] sm:$0xff] %v343_v12  ;;  %v471_v12 = vld [vmem:[%s10629_s9 + $0x4d0] sm:$0xff] }
  0x90   :  { %346 = vst [vmem:[#allocation3 + $0x2d8] sm:$0xff] %v345_v13  ;;  %v473_v13 = vld [vmem:[%s10629_s9 + $0x4d8] sm:$0xff] }
  0x91   :  { %348 = vst [vmem:[#allocation3 + $0x2e0] sm:$0xff] %v347_v14  ;;  %v475_v14 = vld [vmem:[%s10629_s9 + $0x4e0] sm:$0xff] }
  0x92   :  { %350 = vst [vmem:[#allocation3 + $0x2e8] sm:$0xff] %v349_v15  ;;  %v477_v15 = vld [vmem:[%s10629_s9 + $0x4e8] sm:$0xff] }
  0x93   :  { %352 = vst [vmem:[#allocation3 + $0x2f0] sm:$0xff] %v351_v16  ;;  %v479_v16 = vld [vmem:[%s10629_s9 + $0x4f0] sm:$0xff] }
  0x94   :  { %354 = vst [vmem:[#allocation3 + $0x2f8] sm:$0xff] %v353_v17  ;;  %v481_v17 = vld [vmem:[%s10629_s9 + $0x4f8] sm:$0xff] }
  0x95   :  { %356 = vst [vmem:[#allocation3 + $0x300] sm:$0xff] %v355_v18  ;;  %v483_v18 = vld [vmem:[%s10629_s9 + $0x500] sm:$0xff] }
  0x96   :  { %358 = vst [vmem:[#allocation3 + $0x308] sm:$0xff] %v357_v19  ;;  %v485_v19 = vld [vmem:[%s10629_s9 + $0x508] sm:$0xff] }
  0x97   :  { %360 = vst [vmem:[#allocation3 + $0x310] sm:$0xff] %v359_v20  ;;  %v487_v20 = vld [vmem:[%s10629_s9 + $0x510] sm:$0xff] }
  0x98   :  { %362 = vst [vmem:[#allocation3 + $0x318] sm:$0xff] %v361_v21  ;;  %v489_v21 = vld [vmem:[%s10629_s9 + $0x518] sm:$0xff] }
  0x99   :  { %364 = vst [vmem:[#allocation3 + $0x320] sm:$0xff] %v363_v22  ;;  %v491_v22 = vld [vmem:[%s10629_s9 + $0x520] sm:$0xff] }
  0x9a   :  { %366 = vst [vmem:[#allocation3 + $0x328] sm:$0xff] %v365_v23  ;;  %v493_v23 = vld [vmem:[%s10629_s9 + $0x528] sm:$0xff] }
  0x9b   :  { %368 = vst [vmem:[#allocation3 + $0x330] sm:$0xff] %v367_v24  ;;  %v495_v24 = vld [vmem:[%s10629_s9 + $0x530] sm:$0xff] }
  0x9c   :  { %370 = vst [vmem:[#allocation3 + $0x338] sm:$0xff] %v369_v25  ;;  %v497_v25 = vld [vmem:[%s10629_s9 + $0x538] sm:$0xff] }
  0x9d   :  { %372 = vst [vmem:[#allocation3 + $0x340] sm:$0xff] %v371_v26  ;;  %v499_v26 = vld [vmem:[%s10629_s9 + $0x540] sm:$0xff] }
  0x9e   :  { %374 = vst [vmem:[#allocation3 + $0x348] sm:$0xff] %v373_v27  ;;  %v501_v27 = vld [vmem:[%s10629_s9 + $0x548] sm:$0xff] }
  0x9f   :  { %376 = vst [vmem:[#allocation3 + $0x350] sm:$0xff] %v375_v28  ;;  %v503_v28 = vld [vmem:[%s10629_s9 + $0x550] sm:$0xff] }
  0xa0   :  { %378 = vst [vmem:[#allocation3 + $0x358] sm:$0xff] %v377_v29  ;;  %v505_v29 = vld [vmem:[%s10629_s9 + $0x558] sm:$0xff] }
  0xa1   :  { %380 = vst [vmem:[#allocation3 + $0x360] sm:$0xff] %v379_v30  ;;  %v507_v30 = vld [vmem:[%s10629_s9 + $0x560] sm:$0xff] }
  0xa2   :  { %382 = vst [vmem:[#allocation3 + $0x368] sm:$0xff] %v381_v31  ;;  %v509_v31 = vld [vmem:[%s10629_s9 + $0x568] sm:$0xff] }
  0xa3   :  { %384 = vst [vmem:[#allocation3 + $0x370] sm:$0xff] %v383_v32  ;;  %v511_v32 = vld [vmem:[%s10629_s9 + $0x570] sm:$0xff] }
  0xa4   :  { %386 = vst [vmem:[#allocation3 + $0x378] sm:$0xff] %v385_v33 }
  0xa5   :  { %388 = vst [vmem:[#allocation3 + $0x380] sm:$0xff] %v387_v34 }
  0xa6   :  { %390 = vst [vmem:[#allocation3 + $0x388] sm:$0xff] %v389_v35 }
  0xa7   :  { %392 = vst [vmem:[#allocation3 + $0x390] sm:$0xff] %v391_v36 }
  0xa8   :  { %394 = vst [vmem:[#allocation3 + $0x398] sm:$0xff] %v393_v37 }
  0xa9   :  { %396 = vst [vmem:[#allocation3 + $0x3a0] sm:$0xff] %v395_v38 }
  0xaa   :  { %398 = vst [vmem:[#allocation3 + $0x3a8] sm:$0xff] %v397_v39 }
  0xab   :  { %400 = vst [vmem:[#allocation3 + $0x3b0] sm:$0xff] %v399_v40 }
  0xac   :  { %402 = vst [vmem:[#allocation3 + $0x3b8] sm:$0xff] %v401_v41 }
  0xad   :  { %404 = vst [vmem:[#allocation3 + $0x3c0] sm:$0xff] %v403_v42 }
  0xae   :  { %406 = vst [vmem:[#allocation3 + $0x3c8] sm:$0xff] %v405_v43 }
  0xaf   :  { %408 = vst [vmem:[#allocation3 + $0x3d0] sm:$0xff] %v407_v44 }
  0xb0   :  { %410 = vst [vmem:[#allocation3 + $0x3d8] sm:$0xff] %v409_v45 }
  0xb1   :  { %412 = vst [vmem:[#allocation3 + $0x3e0] sm:$0xff] %v411_v46 }
  0xb2   :  { %414 = vst [vmem:[#allocation3 + $0x3e8] sm:$0xff] %v413_v47 }
  0xb3   :  { %416 = vst [vmem:[#allocation3 + $0x3f0] sm:$0xff] %v415_v48 }
  0xb4   :  { %418 = vst [vmem:[#allocation3 + $0x3f8] sm:$0xff] %v417_v49 }
  0xb5   :  { %420 = vst [vmem:[#allocation3 + $0x400] sm:$0xff] %v419_v50 }
  0xb6   :  { %422 = vst [vmem:[#allocation3 + $0x408] sm:$0xff] %v421_v51 }
  0xb7   :  { %424 = vst [vmem:[#allocation3 + $0x410] sm:$0xff] %v423_v52 }
  0xb8   :  { %426 = vst [vmem:[#allocation3 + $0x418] sm:$0xff] %v425_v53 }
  0xb9   :  { %428 = vst [vmem:[#allocation3 + $0x420] sm:$0xff] %v427_v54 }
  0xba   :  { %430 = vst [vmem:[#allocation3 + $0x428] sm:$0xff] %v429_v55 }
  0xbb   :  { %432 = vst [vmem:[#allocation3 + $0x430] sm:$0xff] %v431_v56 }
  0xbc   :  { %434 = vst [vmem:[#allocation3 + $0x438] sm:$0xff] %v433_v57 }
  0xbd   :  { %436 = vst [vmem:[#allocation3 + $0x440] sm:$0xff] %v435_v58 }
  0xbe   :  { %438 = vst [vmem:[#allocation3 + $0x448] sm:$0xff] %v437_v59 }
  0xbf   :  { %440 = vst [vmem:[#allocation3 + $0x450] sm:$0xff] %v439_v60 }
  0xc0   :  { %442 = vst [vmem:[#allocation3 + $0x458] sm:$0xff] %v441_v61 }
  0xc1   :  { %444 = vst [vmem:[#allocation3 + $0x460] sm:$0xff] %v443_v62 }
  0xc2   :  { %446 = vst [vmem:[#allocation3 + $0x468] sm:$0xff] %v445_v63 }
  0xc3   :  { %448 = vst [vmem:[#allocation3 + $0x470] sm:$0xff] %v447_v0 }
  0xc4   :  { %450 = vst [vmem:[#allocation3 + $0x478] sm:$0xff] %v449_v1 }
  0xc5   :  { %452 = vst [vmem:[#allocation3 + $0x480] sm:$0xff] %v451_v2 }
  0xc6   :  { %454 = vst [vmem:[#allocation3 + $0x488] sm:$0xff] %v453_v3 }
  0xc7   :  { %456 = vst [vmem:[#allocation3 + $0x490] sm:$0xff] %v455_v4 }
  0xc8   :  { %458 = vst [vmem:[#allocation3 + $0x498] sm:$0xff] %v457_v5 }
  0xc9   :  { %460 = vst [vmem:[#allocation3 + $0x4a0] sm:$0xff] %v459_v6 }
  0xca   :  { %462 = vst [vmem:[#allocation3 + $0x4a8] sm:$0xff] %v461_v7 }
  0xcb   :  { %464 = vst [vmem:[#allocation3 + $0x4b0] sm:$0xff] %v463_v8 }
  0xcc   :  { %466 = vst [vmem:[#allocation3 + $0x4b8] sm:$0xff] %v465_v9 }
  0xcd   :  { %468 = vst [vmem:[#allocation3 + $0x4c0] sm:$0xff] %v467_v10 }
  0xce   :  { %470 = vst [vmem:[#allocation3 + $0x4c8] sm:$0xff] %v469_v11 }
  0xcf   :  { %472 = vst [vmem:[#allocation3 + $0x4d0] sm:$0xff] %v471_v12 }
  0xd0   :  { %474 = vst [vmem:[#allocation3 + $0x4d8] sm:$0xff] %v473_v13 }
  0xd1   :  { %476 = vst [vmem:[#allocation3 + $0x4e0] sm:$0xff] %v475_v14 }
  0xd2   :  { %478 = vst [vmem:[#allocation3 + $0x4e8] sm:$0xff] %v477_v15 }
  0xd3   :  { %480 = vst [vmem:[#allocation3 + $0x4f0] sm:$0xff] %v479_v16 }
  0xd4   :  { %482 = vst [vmem:[#allocation3 + $0x4f8] sm:$0xff] %v481_v17 }
  0xd5   :  { %484 = vst [vmem:[#allocation3 + $0x500] sm:$0xff] %v483_v18 }
  0xd6   :  { %486 = vst [vmem:[#allocation3 + $0x508] sm:$0xff] %v485_v19 }
  0xd7   :  { %488 = vst [vmem:[#allocation3 + $0x510] sm:$0xff] %v487_v20 }
  0xd8   :  { %490 = vst [vmem:[#allocation3 + $0x518] sm:$0xff] %v489_v21 }
  0xd9   :  { %492 = vst [vmem:[#allocation3 + $0x520] sm:$0xff] %v491_v22 }
  0xda   :  { %494 = vst [vmem:[#allocation3 + $0x528] sm:$0xff] %v493_v23 }
  0xdb   :  { %496 = vst [vmem:[#allocation3 + $0x530] sm:$0xff] %v495_v24 }
  0xdc   :  { %498 = vst [vmem:[#allocation3 + $0x538] sm:$0xff] %v497_v25 }
  0xdd   :  { %500 = vst [vmem:[#allocation3 + $0x540] sm:$0xff] %v499_v26 }
  0xde   :  { %502 = vst [vmem:[#allocation3 + $0x548] sm:$0xff] %v501_v27 }
  0xdf   :  { %504 = vst [vmem:[#allocation3 + $0x550] sm:$0xff] %v503_v28 }
  0xe0   :  { %506 = vst [vmem:[#allocation3 + $0x558] sm:$0xff] %v505_v29 }
  0xe1   :  { %508 = vst [vmem:[#allocation3 + $0x560] sm:$0xff] %v507_v30 }
  0xe2   :  { %510 = vst [vmem:[#allocation3 + $0x568] sm:$0xff] %v509_v31 }
  0xe3   :  { %512 = vst [vmem:[#allocation3 + $0x570] sm:$0xff] %v511_v32 }
  0xe4   :  { %518 = vsyncadd [#allocation4 + $0x1], 22400  ;;  %v5228_v33 = vld [vmem:[%s10623_s3 + $0xe0] sm:$0xf]  ;;  %v7270_v34 = vld [vmem:[%s10623_s3 + $0xec] sm:$0xf0] }
  0xe5   :  { %v5229_v35 = vor.u32 %v7270_v34, %v5228_v33  ;;  %v5356_v36 = vld [vmem:[%s10623_s3 + $0x1e0] sm:$0xf]  ;;  %v7302_v37 = vld [vmem:[%s10623_s3 + $0x1ec] sm:$0xf0]  ;;  %vm2596_vm0 = vcmask 130048   ;;  %vm2824_vm1 = vcmask 1043456  }
  0xe6   :  { %v5484_v38 = vld [vmem:[%s10623_s3 + $0x2e0] sm:$0xf]  ;;  %v5357_v39 = vor.u32 %v7302_v37, %v5356_v36  ;;  %v7334_v40 = vld [vmem:[%s10623_s3 + $0x2ec] sm:$0xf0]  ;;  %vm2820_vm2 = vcmask 588800   ;;  %vm2888_vm3 = vcmask 1041408  }
  0xe7   :  { %v5612_v41 = vld [vmem:[%s10623_s3 + $0x3e0] sm:$0xf]  ;;  %v7366_v42 = vld [vmem:[%s10623_s3 + $0x3ec] sm:$0xf0]  ;;  %1902 = vmatpush.bf16.msra.mxu0 %v5229_v35  ;;  %v5485_v43 = vor.u32 %v7334_v40, %v5484_v38  ;;  %vm2884_vm4 = vcmask 162816  }
  0xe8   :  { %v5613_v44 = vor.u32 %v7366_v42, %v5612_v41  ;;  %v5212_v45 = vld [vmem:[%s10623_s3 + $0xc0] sm:$0xf]  ;;  %v7266_v46 = vld [vmem:[%s10623_s3 + $0xcc] sm:$0xf0]  ;;  %1915 = vmatpush.bf16.msra.mxu1 %v5357_v39 }
  0xe9   :  { %v5340_v47 = vld [vmem:[%s10623_s3 + $0x1c0] sm:$0xf]  ;;  %v5213_v48 = vor.u32 %v7266_v46, %v5212_v45  ;;  %v7298_v49 = vld [vmem:[%s10623_s3 + $0x1cc] sm:$0xf0]  ;;  %1928 = vmatpush.bf16.msra.mxu2 %v5485_v43 }
  0xea   :  { %v5468_v50 = vld [vmem:[%s10623_s3 + $0x2c0] sm:$0xf]  ;;  %v7330_v51 = vld [vmem:[%s10623_s3 + $0x2cc] sm:$0xf0]  ;;  %1941 = vmatpush.bf16.msra.mxu3 %v5613_v44  ;;  %v5341_v52 = vor.u32 %v7298_v49, %v5340_v47 }
  0xeb   :  { %v5469_v53 = vor.u32 %v7330_v51, %v5468_v50  ;;  %v5596_v54 = vld [vmem:[%s10623_s3 + $0x3c0] sm:$0xf]  ;;  %v7362_v55 = vld [vmem:[%s10623_s3 + $0x3cc] sm:$0xf0]  ;;  %1903 = vmatpush.bf16.msra.mxu0 %v5213_v48 }
  0xec   :  { %v5196_v56 = vld [vmem:[%s10623_s3 + $0xa0] sm:$0xf]  ;;  %v5597_v57 = vor.u32 %v7362_v55, %v5596_v54  ;;  %v7262_v58 = vld [vmem:[%s10623_s3 + $0xac] sm:$0xf0]  ;;  %1916 = vmatpush.bf16.msra.mxu1 %v5341_v52 }
  0xed   :  { %v5324_v59 = vld [vmem:[%s10623_s3 + $0x1a0] sm:$0xf]  ;;  %v7294_v60 = vld [vmem:[%s10623_s3 + $0x1ac] sm:$0xf0]  ;;  %v5197_v61 = vor.u32 %v7262_v58, %v5196_v56  ;;  %1929 = vmatpush.bf16.msra.mxu2 %v5469_v53 }
  0xee   :  { %v5452_v62 = vld [vmem:[%s10623_s3 + $0x2a0] sm:$0xf]  ;;  %v7326_v63 = vld [vmem:[%s10623_s3 + $0x2ac] sm:$0xf0]  ;;  %v5325_v1 = vor.u32 %v7294_v60, %v5324_v59  ;;  %1942 = vmatpush.bf16.msra.mxu3 %v5597_v57 }
  0xef   :  { %v5580_v0 = vld [vmem:[%s10623_s3 + $0x3a0] sm:$0xf]  ;;  %v7358_v2 = vld [vmem:[%s10623_s3 + $0x3ac] sm:$0xf0]  ;;  %v5453_v5 = vor.u32 %v7326_v63, %v5452_v62  ;;  %1904 = vmatpush.bf16.msra.mxu0 %v5197_v61 }
  0xf0   :  { %v5180_v3 = vld [vmem:[%s10623_s3 + $0x80] sm:$0xf]  ;;  %v7258_v4 = vld [vmem:[%s10623_s3 + $0x8c] sm:$0xf0]  ;;  %v5581_v6 = vor.u32 %v7358_v2, %v5580_v0  ;;  %1917 = vmatpush.bf16.msra.mxu1 %v5325_v1 }
  0xf1   :  { %v5308_v7 = vld [vmem:[%s10623_s3 + $0x180] sm:$0xf]  ;;  %v7290_v8 = vld [vmem:[%s10623_s3 + $0x18c] sm:$0xf0]  ;;  %v5181_v13 = vor.u32 %v7258_v4, %v5180_v3  ;;  %1930 = vmatpush.bf16.msra.mxu2 %v5453_v5 }
  0xf2   :  { %v5436_v9 = vld [vmem:[%s10623_s3 + $0x280] sm:$0xf]  ;;  %v7322_v10 = vld [vmem:[%s10623_s3 + $0x28c] sm:$0xf0]  ;;  %v5309_v14 = vor.u32 %v7290_v8, %v5308_v7  ;;  %1943 = vmatpush.bf16.msra.mxu3 %v5581_v6  ;;  %v7268_v6 = vld [vmem:[%s10623_s3 + $0xe4] sm:$0xf] }
  0xf3   :  { %v5564_v11 = vld [vmem:[%s10623_s3 + $0x380] sm:$0xf]  ;;  %v7354_v12 = vld [vmem:[%s10623_s3 + $0x38c] sm:$0xf0]  ;;  %v5437_v17 = vor.u32 %v7322_v10, %v5436_v9  ;;  %1905 = vmatpush.bf16.msra.mxu0 %v5181_v13  ;;  %v5230_v7 = vld [vmem:[%s10623_s3 + $0xf0] sm:$0xf0] }
  0xf4   :  { %v5164_v15 = vld [vmem:[%s10623_s3 + $0x60] sm:$0xf]  ;;  %v7254_v16 = vld [vmem:[%s10623_s3 + $0x6c] sm:$0xf0]  ;;  %v5565_v18 = vor.u32 %v7354_v12, %v5564_v11  ;;  %1918 = vmatpush.bf16.msra.mxu1 %v5309_v14 }
  0xf5   :  { %v5292_v19 = vld [vmem:[%s10623_s3 + $0x160] sm:$0xf]  ;;  %v7286_v20 = vld [vmem:[%s10623_s3 + $0x16c] sm:$0xf0]  ;;  %v5165_v25 = vor.u32 %v7254_v16, %v5164_v15  ;;  %1931 = vmatpush.bf16.msra.mxu2 %v5437_v17  ;;  %v5233_v15 = vor.u32 %v7268_v6, %v5230_v7 }
  0xf6   :  { %v5420_v21 = vld [vmem:[%s10623_s3 + $0x260] sm:$0xf]  ;;  %v7318_v22 = vld [vmem:[%s10623_s3 + $0x26c] sm:$0xf0]  ;;  %v5293_v26 = vor.u32 %v7286_v20, %v5292_v19  ;;  %1944 = vmatpush.bf16.msra.mxu3 %v5565_v18  ;;  %v7264_v20 = vld [vmem:[%s10623_s3 + $0xc4] sm:$0xf] }
  0xf7   :  { %v5548_v23 = vld [vmem:[%s10623_s3 + $0x360] sm:$0xf]  ;;  %v7350_v24 = vld [vmem:[%s10623_s3 + $0x36c] sm:$0xf0]  ;;  %v5421_v29 = vor.u32 %v7318_v22, %v5420_v21  ;;  %1906 = vmatpush.bf16.msra.mxu0 %v5165_v25  ;;  %v5214_v21 = vld [vmem:[%s10623_s3 + $0xd0] sm:$0xf0] }
  0xf8   :  { %v5148_v27 = vld [vmem:[%s10623_s3 + $0x40] sm:$0xf]  ;;  %v7250_v28 = vld [vmem:[%s10623_s3 + $0x4c] sm:$0xf0]  ;;  %v5549_v30 = vor.u32 %v7350_v24, %v5548_v23  ;;  %1919 = vmatpush.bf16.msra.mxu1 %v5293_v26  ;;  %v520_v22 = vld [vmem:[%s10620_s0 + $0x8] sm:$0xff] }
  0xf9   :  { %v5276_v31 = vld [vmem:[%s10623_s3 + $0x140] sm:$0xf]  ;;  %v7282_v32 = vld [vmem:[%s10623_s3 + $0x14c] sm:$0xf0]  ;;  %v5149_v37 = vor.u32 %v7250_v28, %v5148_v27  ;;  %1932 = vmatpush.bf16.msra.mxu2 %v5421_v29  ;;  %v763_v25 = vunpack.c.l.b16 %v520_v22  ;;  %v764_v26 = vunpack.c.h.b16 %v520_v22 }
  0xfa   :  { %v5404_v33 = vld [vmem:[%s10623_s3 + $0x240] sm:$0xf]  ;;  %v7314_v34 = vld [vmem:[%s10623_s3 + $0x24c] sm:$0xf0]  ;;  %v5277_v38 = vor.u32 %v7282_v32, %v5276_v31  ;;  %1945 = vmatpush.bf16.msra.mxu3 %v5549_v30  ;;  %v5217_v31 = vor.u32 %v7264_v20, %v5214_v21 }
  0xfb   :  { %v5532_v35 = vld [vmem:[%s10623_s3 + $0x340] sm:$0xf]  ;;  %v7346_v36 = vld [vmem:[%s10623_s3 + $0x34c] sm:$0xf0]  ;;  %v5405_v41 = vor.u32 %v7314_v34, %v5404_v33  ;;  %1907 = vmatpush.bf16.msra.mxu0 %v5149_v37  ;;  %v8868_v34 = vpack.c.b16 %v763_v25, %v763_v25  ;;  %v7244_v25 = vld [vmem:[%s10623_s3 + $0x24] sm:$0xf] }
  0xfc   :  { %v5132_v39 = vld [vmem:[%s10623_s3 + $0x20] sm:$0xf]  ;;  %v7246_v40 = vld [vmem:[%s10623_s3 + $0x2c] sm:$0xf0]  ;;  %v5533_v42 = vor.u32 %v7346_v36, %v5532_v35  ;;  %1920 = vmatpush.bf16.msra.mxu1 %v5277_v38  ;;  %v8873_v36 = vpack.c.b16 %v764_v26, %v764_v26  ;;  %v7260_v38 = vld [vmem:[%s10623_s3 + $0xa4] sm:$0xf] }
  0xfd   :  { %v5260_v43 = vld [vmem:[%s10623_s3 + $0x120] sm:$0xf]  ;;  %v7278_v44 = vld [vmem:[%s10623_s3 + $0x12c] sm:$0xf0]  ;;  %v5133_v49 = vor.u32 %v7246_v40, %v5132_v39  ;;  %1933 = vmatpush.bf16.msra.mxu2 %v5405_v41  ;;  %v5198_v39 = vld [vmem:[%s10623_s3 + $0xb0] sm:$0xf0] }
  0xfe   :  { %v5388_v45 = vld [vmem:[%s10623_s3 + $0x220] sm:$0xf]  ;;  %v7310_v46 = vld [vmem:[%s10623_s3 + $0x22c] sm:$0xf0]  ;;  %v5261_v52 = vor.u32 %v7278_v44, %v5260_v43  ;;  %1946 = vmatpush.bf16.msra.mxu3 %v5533_v42 }
  0xff   :  { %v5516_v47 = vld [vmem:[%s10623_s3 + $0x320] sm:$0xf]  ;;  %v7342_v48 = vld [vmem:[%s10623_s3 + $0x32c] sm:$0xf0]  ;;  %v5389_v56 = vor.u32 %v7310_v46, %v5388_v45  ;;  %1908 = vmatpush.bf16.msra.mxu0 %v5133_v49  ;;  %v5201_v49 = vor.u32 %v7260_v38, %v5198_v39  ;;  %v5358_v38 = vld [vmem:[%s10623_s3 + $0x1f0] sm:$0xf0] }
 0x100   :  { %v5116_v50 = vld [vmem:[%s10623_s3] sm:$0xf]  ;;  %v7242_v51 = vld [vmem:[%s10623_s3 + $0xc] sm:$0xf0]  ;;  %v5517_v57 = vor.u32 %v7342_v48, %v5516_v47  ;;  %1921 = vmatpush.bf16.msra.mxu1 %v5261_v52  ;;  %v522_v39 = vld [vmem:[%s10620_s0 + $0x18] sm:$0xf] }
 0x101   :  { %v5244_v53 = vld [vmem:[%s10623_s3 + $0x100] sm:$0xf]  ;;  %v7274_v54 = vld [vmem:[%s10623_s3 + $0x10c] sm:$0xf0]  ;;  %v5117_v0 = vor.u32 %v7242_v51, %v5116_v50  ;;  %1934 = vmatpush.bf16.msra.mxu2 %v5389_v56 }
 0x102   :  { %v5372_v55 = vld [vmem:[%s10623_s3 + $0x200] sm:$0xf]  ;;  %v7306_v58 = vld [vmem:[%s10623_s3 + $0x20c] sm:$0xf0]  ;;  %v5245_v4 = vor.u32 %v7274_v54, %v5244_v53  ;;  %1947 = vmatpush.bf16.msra.mxu3 %v5517_v57  ;;  %v7256_v54 = vld [vmem:[%s10623_s3 + $0x84] sm:$0xf] }
 0x103   :  { %v5740_v59 = vld [vmem:[%s10623_s3 + $0x4e0] sm:$0xf]  ;;  %v7398_v60 = vld [vmem:[%s10623_s3 + $0x4ec] sm:$0xf0]  ;;  %v5373_v8 = vor.u32 %v7306_v58, %v5372_v55  ;;  %1909 = vmatpush.bf16.msra.mxu0 %v5117_v0  ;;  %v5182_v55 = vld [vmem:[%s10623_s3 + $0x90] sm:$0xf0] }
 0x104   :  { %v5500_v61 = vld [vmem:[%s10623_s3 + $0x300] sm:$0xf]  ;;  %v7338_v62 = vld [vmem:[%s10623_s3 + $0x30c] sm:$0xf0]  ;;  %v5741_v5 = vor.u32 %v7398_v60, %v5740_v59  ;;  %1922 = vmatpush.bf16.msra.mxu1 %v5245_v4 }
 0x105   :  { %v5868_v63 = vld [vmem:[%s10623_s3 + $0x5e0] sm:$0xf]  ;;  %v7430_v1 = vld [vmem:[%s10623_s3 + $0x5ec] sm:$0xf0]  ;;  %v5501_v9 = vor.u32 %v7338_v62, %v5500_v61  ;;  %1935 = vmatpush.bf16.msra.mxu2 %v5373_v8  ;;  %v5185_v61 = vor.u32 %v7256_v54, %v5182_v55  ;;  %v5742_v54 = vld [vmem:[%s10623_s3 + $0x4f0] sm:$0xf0]  ;;  %v767_v55 = vunpack.c.l.b16 %v522_v39 }
 0x106   :  { %v5996_v2 = vld [vmem:[%s10623_s3 + $0x6e0] sm:$0xf]  ;;  %v7462_v3 = vld [vmem:[%s10623_s3 + $0x6ec] sm:$0xf0]  ;;  %v5869_v12 = vor.u32 %v7430_v1, %v5868_v63  ;;  %v7284_v39 = vld [vmem:[%s10623_s3 + $0x164] sm:$0xf] }
 0x107   :  { %v5724_v10 = vld [vmem:[%s10623_s3 + $0x4c0] sm:$0xf]  ;;  %v7394_v11 = vld [vmem:[%s10623_s3 + $0x4cc] sm:$0xf0]  ;;  %v5997_v13 = vor.u32 %v7462_v3, %v5996_v2  ;;  %1954 = vmatpush.bf16.msrb.mxu0 %v5741_v5  ;;  %1948 = vmatpush.bf16.msra.mxu3 %v5501_v9  ;;  %v7252_v2 = vld [vmem:[%s10623_s3 + $0x64] sm:$0xf] }
 0x108   :  { %v5852_v14 = vld [vmem:[%s10623_s3 + $0x5c0] sm:$0xf]  ;;  %v7426_v16 = vld [vmem:[%s10623_s3 + $0x5cc] sm:$0xf0]  ;;  %v5725_v19 = vor.u32 %v7394_v11, %v5724_v10  ;;  %1967 = vmatpush.bf16.msrb.mxu1 %v5869_v12  ;;  %1936 = vmatmul.bf16.vlgmr.msra.gmra.mxu2 %v8868_v34  ;;  %v5166_v3 = vld [vmem:[%s10623_s3 + $0x70] sm:$0xf0] }
 0x109   :  { %v5980_v17 = vld [vmem:[%s10623_s3 + $0x6c0] sm:$0xf]  ;;  %v7458_v18 = vld [vmem:[%s10623_s3 + $0x6cc] sm:$0xf0]  ;;  %1980 = vmatpush.bf16.msrb.mxu2 %v5997_v13  ;;  %v5853_v27 = vor.u32 %v7426_v16, %v5852_v14  ;;  %v5169_v9 = vor.u32 %v7252_v2, %v5166_v3  ;;  %v7248_v14 = vld [vmem:[%s10623_s3 + $0x44] sm:$0xf] }
 0x10a   :  { %v5708_v23 = vld [vmem:[%s10623_s3 + $0x4a0] sm:$0xf]  ;;  %v7390_v24 = vld [vmem:[%s10623_s3 + $0x4ac] sm:$0xf0]  ;;  %v5981_v28 = vor.u32 %v7458_v18, %v5980_v17  ;;  %1949 = vmatmul.bf16.vlgmr.msra.gmra.mxu3 %v8873_v36  ;;  %v7328_v2 = vld [vmem:[%s10623_s3 + $0x2c4] sm:$0xf] }
 0x10b   :  { %v5836_v29 = vld [vmem:[%s10623_s3 + $0x5a0] sm:$0xf]  ;;  %v7422_v30 = vld [vmem:[%s10623_s3 + $0x5ac] sm:$0xf0]  ;;  %1993 = vmatpush.bf16.msrb.mxu3 %v5233_v15  ;;  %1955 = vmatpush.bf16.msrb.mxu0 %v5725_v19  ;;  %v5709_v37 = vor.u32 %v7390_v24, %v5708_v23  ;;  %v5150_v15 = vld [vmem:[%s10623_s3 + $0x50] sm:$0xf0] }
 0x10c   :  { %v5964_v32 = vld [vmem:[%s10623_s3 + $0x6a0] sm:$0xf]  ;;  %v7454_v33 = vld [vmem:[%s10623_s3 + $0x6ac] sm:$0xf0]  ;;  %v5837_v42 = vor.u32 %v7422_v30, %v5836_v29  ;;  %1968 = vmatpush.bf16.msrb.mxu1 %v5853_v27  ;;  %v5153_v22 = vor.u32 %v7248_v14, %v5150_v15  ;;  %v5134_v27 = vld [vmem:[%s10623_s3 + $0x30] sm:$0xf0] }
 0x10d   :  { %v519_v35 = vld [vmem:[%s10620_s0] sm:$0xff]  ;;  %v7386_v44 = vld [vmem:[%s10623_s3 + $0x48c] sm:$0xf0]  ;;  %1981 = vmatpush.bf16.msrb.mxu2 %v5981_v28  ;;  %v5965_v45 = vor.u32 %v7454_v33, %v5964_v32  ;;  %v5470_v3 = vld [vmem:[%s10623_s3 + $0x2d0] sm:$0xf0] }
 0x10e   :  { %v761_v40 = vunpack.c.l.b16 %v519_v35  ;;  %v762_v41 = vunpack.c.h.b16 %v519_v35  ;;  %v5692_v43 = vld [vmem:[%s10623_s3 + $0x480] sm:$0xf]  ;;  %v7418_v50 = vld [vmem:[%s10623_s3 + $0x58c] sm:$0xf0]  ;;  %v7300_v33 = vld [vmem:[%s10623_s3 + $0x1e4] sm:$0xf] }
 0x10f   :  { %v5820_v46 = vld [vmem:[%s10623_s3 + $0x580] sm:$0xf]  ;;  %1994 = vmatpush.bf16.msrb.mxu3 %v5217_v31  ;;  %v7450_v52 = vld [vmem:[%s10623_s3 + $0x68c] sm:$0xf0]  ;;  %1956 = vmatpush.bf16.msrb.mxu0 %v5709_v37  ;;  %v5693_v53 = vor.u32 %v7386_v44, %v5692_v43  ;;  %v7240_v43 = vld [vmem:[%s10623_s3 + $0x4] sm:$0xf] }
 0x110   :  { %v8892_v47 = vpack.c.b16 %v761_v40, %v761_v40  ;;  %v8894_v48 = vpack.c.b16 %v762_v41, %v762_v41  ;;  %v5948_v51 = vld [vmem:[%s10623_s3 + $0x680] sm:$0xf]  ;;  %v7382_v57 = vld [vmem:[%s10623_s3 + $0x46c] sm:$0xf0]  ;;  %1969 = vmatpush.bf16.msrb.mxu1 %v5837_v42  ;;  %v5821_v58 = vor.u32 %v7418_v50, %v5820_v46  ;;  %v5137_v41 = vor.u32 %v7244_v25, %v5134_v27  ;;  %v5118_v44 = vld [vmem:[%s10623_s3 + $0x10] sm:$0xf0] }
 0x111   :  { %v5676_v56 = vld [vmem:[%s10623_s3 + $0x460] sm:$0xf]  ;;  %1982 = vmatpush.bf16.msrb.mxu2 %v5965_v45  ;;  %v5949_v59 = vor.u32 %v7450_v52, %v5948_v51  ;;  %v7414_v62 = vld [vmem:[%s10623_s3 + $0x56c] sm:$0xf0]  ;;  %v7332_v46 = vld [vmem:[%s10623_s3 + $0x2e4] sm:$0xf]  ;;  %v5361_v51 = vor.u32 %v7300_v33, %v5358_v38 }
 0x112   :  { %1923 = vmatmul.bf16.vlgmr.msra.gmra.mxu1 %v8894_v48  ;;  %1910 = vmatmul.bf16.vlgmr.msra.gmra.mxu0 %v8892_v47  ;;  %v5804_v60 = vld [vmem:[%s10623_s3 + $0x560] sm:$0xf]  ;;  %v7446_v0 = vld [vmem:[%s10623_s3 + $0x66c] sm:$0xf0]  ;;  %v5677_v1 = vor.u32 %v7382_v57, %v5676_v56  ;;  %v7364_v50 = vld [vmem:[%s10623_s3 + $0x3e4] sm:$0xf] }
 0x113   :  { %1995 = vmatpush.bf16.msrb.mxu3 %v5201_v49  ;;  %v5932_v63 = vld [vmem:[%s10623_s3 + $0x660] sm:$0xf]  ;;  %1957 = vmatpush.bf16.msrb.mxu0 %v5693_v53  ;;  %v7378_v5 = vld [vmem:[%s10623_s3 + $0x44c] sm:$0xf0]  ;;  %v5805_v6 = vor.u32 %v7414_v62, %v5804_v60  ;;  %v5486_v49 = vld [vmem:[%s10623_s3 + $0x2f0] sm:$0xf0]  ;;  %v5121_v60 = vor.u32 %v7240_v43, %v5118_v44 }
 0x114   :  { %v5660_v4 = vld [vmem:[%s10623_s3 + $0x440] sm:$0xf]  ;;  %1970 = vmatpush.bf16.msrb.mxu1 %v5821_v58  ;;  %v5933_v7 = vor.u32 %v7446_v0, %v5932_v63  ;;  %v7410_v10 = vld [vmem:[%s10623_s3 + $0x54c] sm:$0xf0]  ;;  %v5614_v52 = vld [vmem:[%s10623_s3 + $0x3f0] sm:$0xf0] }
 0x115   :  { %1983 = vmatpush.bf16.msrb.mxu2 %v5949_v59  ;;  %v5788_v8 = vld [vmem:[%s10623_s3 + $0x540] sm:$0xf]  ;;  %v7442_v12 = vld [vmem:[%s10623_s3 + $0x64c] sm:$0xf0]  ;;  %v5661_v13 = vor.u32 %v7378_v5, %v5660_v4  ;;  %v7396_v53 = vld [vmem:[%s10623_s3 + $0x4e4] sm:$0xf]  ;;  %v5617_v0 = vor.u32 %v7364_v50, %v5614_v52  ;;  %v9054_v5 = vpack.c.b16 %v767_v55, %v767_v55 }
 0x116   :  { %v5916_v11 = vld [vmem:[%s10623_s3 + $0x640] sm:$0xf]  ;;  %v7374_v17 = vld [vmem:[%s10623_s3 + $0x42c] sm:$0xf0]  ;;  %v5789_v18 = vor.u32 %v7410_v10, %v5788_v8  ;;  %v7296_v62 = vld [vmem:[%s10623_s3 + $0x1c4] sm:$0xf] }
 0x117   :  { %1996 = vmatpush.bf16.msrb.mxu3 %v5185_v61  ;;  %1958 = vmatpush.bf16.msrb.mxu0 %v5677_v1  ;;  %v5644_v16 = vld [vmem:[%s10623_s3 + $0x420] sm:$0xf]  ;;  %v5917_v19 = vor.u32 %v7442_v12, %v5916_v11  ;;  %v7406_v21 = vld [vmem:[%s10623_s3 + $0x52c] sm:$0xf0]  ;;  %v5489_v61 = vor.u32 %v7332_v46, %v5486_v49  ;;  %v5342_v63 = vld [vmem:[%s10623_s3 + $0x1d0] sm:$0xf0]  ;;  %v5745_v1 = vor.u32 %v7396_v53, %v5742_v54 }
 0x118   :  { %1971 = vmatpush.bf16.msrb.mxu1 %v5805_v6  ;;  %v5772_v20 = vld [vmem:[%s10623_s3 + $0x520] sm:$0xf]  ;;  %v7438_v24 = vld [vmem:[%s10623_s3 + $0x62c] sm:$0xf0]  ;;  %v5645_v26 = vor.u32 %v7374_v17, %v5644_v16  ;;  %v7360_v4 = vld [vmem:[%s10623_s3 + $0x3c4] sm:$0xf]  ;;  %v5345_v10 = vor.u32 %v7296_v62, %v5342_v63  ;;  %v5473_v12 = vor.u32 %v7328_v2, %v5470_v3 }
 0x119   :  { %1984 = vmatpush.bf16.msrb.mxu2 %v5933_v7  ;;  %v5900_v23 = vld [vmem:[%s10623_s3 + $0x620] sm:$0xf]  ;;  %v7370_v29 = vld [vmem:[%s10623_s3 + $0x40c] sm:$0xf0]  ;;  %v5773_v35 = vor.u32 %v7406_v21, %v5772_v20  ;;  %v5598_v7 = vld [vmem:[%s10623_s3 + $0x3d0] sm:$0xf0] }
 0x11a   :  { %v5628_v28 = vld [vmem:[%s10623_s3 + $0x400] sm:$0xf]  ;;  %v7402_v31 = vld [vmem:[%s10623_s3 + $0x50c] sm:$0xf0]  ;;  %v5901_v37 = vor.u32 %v7438_v24, %v5900_v23  ;;  %v7392_v8 = vld [vmem:[%s10623_s3 + $0x4c4] sm:$0xf]  ;;  %v5601_v15 = vor.u32 %v7360_v4, %v5598_v7 }
 0x11b   :  { %1997 = vmatpush.bf16.msrb.mxu3 %v5169_v9  ;;  %1959 = vmatpush.bf16.msrb.mxu0 %v5661_v13  ;;  %v5756_v30 = vld [vmem:[%s10623_s3 + $0x500] sm:$0xf]  ;;  %v521_v40 = vld [vmem:[%s10620_s0 + $0x10] sm:$0xff]  ;;  %v5629_v45 = vor.u32 %v7370_v29, %v5628_v28  ;;  %v7292_v13 = vld [vmem:[%s10623_s3 + $0x1a4] sm:$0xf] }
 0x11c   :  { %v5884_v32 = vld [vmem:[%s10623_s3 + $0x600] sm:$0xf]  ;;  %1972 = vmatpush.bf16.msrb.mxu1 %v5789_v18  ;;  %v7434_v42 = vld [vmem:[%s10623_s3 + $0x60c] sm:$0xf0]  ;;  %v765_v56 = vunpack.c.l.b16 %v521_v40  ;;  %v5757_v57 = vor.u32 %v7402_v31, %v5756_v30  ;;  %v766_v59 = vunpack.c.h.b16 %v521_v40  ;;  %v5726_v9 = vld [vmem:[%s10623_s3 + $0x4d0] sm:$0xf0] }
 0x11d   :  { %1985 = vmatpush.bf16.msrb.mxu2 %v5917_v19  ;;  %v5885_v58 = vor.u32 %v7434_v42, %v5884_v32  ;;  %v5326_v14 = vld [vmem:[%s10623_s3 + $0x1b0] sm:$0xf0]  ;;  %v5729_v16 = vor.u32 %v7392_v8, %v5726_v9  ;;  %v7324_v17 = vld [vmem:[%s10623_s3 + $0x2a4] sm:$0xf] }
 0x11e   :  { %v9056_v6 = vpack.c.b16 %v765_v56, %v765_v56  ;;  %v9067_v11 = vpack.c.b16 %v766_v59, %v766_v59  ;;  %v5454_v18 = vld [vmem:[%s10623_s3 + $0x2b0] sm:$0xf0]  ;;  %v7356_v19 = vld [vmem:[%s10623_s3 + $0x3a4] sm:$0xf]  ;;  %v5329_v23 = vor.u32 %v7292_v13, %v5326_v14 }
 0x11f   :  { %1998 = vmatpush.bf16.msrb.mxu3 %v5153_v22  ;;  %1960 = vmatpush.bf16.msrb.mxu0 %v5645_v26  ;;  %v5582_v20 = vld [vmem:[%s10623_s3 + $0x3b0] sm:$0xf0]  ;;  %v7388_v21 = vld [vmem:[%s10623_s3 + $0x4a4] sm:$0xf]  ;;  %v5457_v24 = vor.u32 %v7324_v17, %v5454_v18 }
 0x120   :  { %1973 = vmatpush.bf16.msrb.mxu1 %v5773_v35  ;;  %v5710_v22 = vld [vmem:[%s10623_s3 + $0x4b0] sm:$0xf0]  ;;  %v7288_v25 = vld [vmem:[%s10623_s3 + $0x184] sm:$0xf]  ;;  %v5585_v27 = vor.u32 %v7356_v19, %v5582_v20 }
 0x121   :  { %1986 = vmatpush.bf16.msrb.mxu2 %v5901_v37  ;;  %v5310_v26 = vld [vmem:[%s10623_s3 + $0x190] sm:$0xf0]  ;;  %v5713_v28 = vor.u32 %v7388_v21, %v5710_v22  ;;  %v7320_v29 = vld [vmem:[%s10623_s3 + $0x284] sm:$0xf] }
 0x122   :  { %v5438_v30 = vld [vmem:[%s10623_s3 + $0x290] sm:$0xf0]  ;;  %v7352_v31 = vld [vmem:[%s10623_s3 + $0x384] sm:$0xf]  ;;  %v5313_v37 = vor.u32 %v7288_v25, %v5310_v26 }
 0x123   :  { %1999 = vmatpush.bf16.msrb.mxu3 %v5137_v41  ;;  %1961 = vmatpush.bf16.msrb.mxu0 %v5629_v45  ;;  %v5566_v32 = vld [vmem:[%s10623_s3 + $0x390] sm:$0xf0]  ;;  %v7384_v33 = vld [vmem:[%s10623_s3 + $0x484] sm:$0xf]  ;;  %v5441_v38 = vor.u32 %v7320_v29, %v5438_v30 }
 0x124   :  { %1974 = vmatpush.bf16.msrb.mxu1 %v5757_v57  ;;  %v5694_v35 = vld [vmem:[%s10623_s3 + $0x490] sm:$0xf0]  ;;  %v5569_v41 = vor.u32 %v7352_v31, %v5566_v32  ;;  %v7316_v43 = vld [vmem:[%s10623_s3 + $0x264] sm:$0xf]  ;;  %v5236_v31 = vld [vmem:[%s10623_s3 + $0xe8] sm:$0xf] }
 0x125   :  { %1987 = vmatpush.bf16.msrb.mxu2 %v5885_v58  ;;  %v5294_v40 = vld [vmem:[%s10623_s3 + $0x170] sm:$0xf0]  ;;  %v5697_v42 = vor.u32 %v7384_v33, %v5694_v35  ;;  %v7348_v45 = vld [vmem:[%s10623_s3 + $0x364] sm:$0xf]  ;;  %v7271_v32 = vld [vmem:[%s10623_s3 + $0xf4] sm:$0xf0] }
 0x126   :  { %1962 = vmatmul.bf16.vlgmr.msrb.gmra.mxu0 %v9056_v6  ;;  %v5422_v44 = vld [vmem:[%s10623_s3 + $0x270] sm:$0xf0]  ;;  %v7380_v49 = vld [vmem:[%s10623_s3 + $0x464] sm:$0xf] }
 0x127   :  { %2006 = vmatpush.bf16.msra.mxu0 %v5361_v51  ;;  %2000 = vmatpush.bf16.msrb.mxu3 %v5121_v60  ;;  %v5550_v46 = vld [vmem:[%s10623_s3 + $0x370] sm:$0xf0]  ;;  %v5297_v51 = vor.u32 %v7284_v39, %v5294_v40  ;;  %v5425_v52 = vor.u32 %v7316_v43, %v5422_v44  ;;  %v7280_v53 = vld [vmem:[%s10623_s3 + $0x144] sm:$0xf]  ;;  %v5237_v44 = vor.u32 %v7271_v32, %v5236_v31 }
 0x128   :  { %2019 = vmatpush.bf16.msra.mxu1 %v5489_v61  ;;  %1988 = vmatmul.bf16.vlgmr.msrb.gmra.mxu2 %v9054_v5  ;;  %v5678_v50 = vld [vmem:[%s10623_s3 + $0x470] sm:$0xf0]  ;;  %v5553_v55 = vor.u32 %v7348_v45, %v5550_v46  ;;  %v7312_v57 = vld [vmem:[%s10623_s3 + $0x244] sm:$0xf] }
 0x129   :  { %2032 = vmatpush.bf16.msra.mxu2 %v5617_v0  ;;  %1975 = vmatmul.bf16.vlgmr.msrb.gmra.mxu1 %v9067_v11  ;;  %v5278_v54 = vld [vmem:[%s10623_s3 + $0x150] sm:$0xf0]  ;;  %v5681_v56 = vor.u32 %v7380_v49, %v5678_v50  ;;  %v7344_v59 = vld [vmem:[%s10623_s3 + $0x344] sm:$0xf]  ;;  %v5220_v50 = vld [vmem:[%s10623_s3 + $0xc8] sm:$0xf] }
 0x12a   :  { %2001 = vmatmul.bf16.vlgmr.msrb.gmra.mxu3 %v8892_v47  ;;  %v5406_v58 = vld [vmem:[%s10623_s3 + $0x250] sm:$0xf0]  ;;  %v7376_v61 = vld [vmem:[%s10623_s3 + $0x444] sm:$0xf]  ;;  %v5281_v63 = vor.u32 %v7280_v53, %v5278_v54  ;;  %v5348_v53 = vld [vmem:[%s10623_s3 + $0x1c8] sm:$0xf] }
 0x12b   :  { %2045 = vmatpush.bf16.msra.mxu3 %v5745_v1  ;;  %2007 = vmatpush.bf16.msra.mxu0 %v5345_v10  ;;  %v5534_v60 = vld [vmem:[%s10623_s3 + $0x350] sm:$0xf0]  ;;  %v5409_v0 = vor.u32 %v7312_v57, %v5406_v58  ;;  %v7276_v1 = vld [vmem:[%s10623_s3 + $0x124] sm:$0xf]  ;;  %v7299_v54 = vld [vmem:[%s10623_s3 + $0x1d4] sm:$0xf0] }
 0x12c   :  { %2020 = vmatpush.bf16.msra.mxu1 %v5473_v12  ;;  %v5662_v62 = vld [vmem:[%s10623_s3 + $0x450] sm:$0xf0]  ;;  %v7308_v3 = vld [vmem:[%s10623_s3 + $0x224] sm:$0xf]  ;;  %v5537_v4 = vor.u32 %v7344_v59, %v5534_v60  ;;  %v5349_v60 = vor.u32 %v7299_v54, %v5348_v53  ;;  %v5140_v53 = vld [vmem:[%s10623_s3 + $0x28] sm:$0xf] }
 0x12d   :  { %2033 = vmatpush.bf16.msra.mxu2 %v5601_v15  ;;  %v5262_v2 = vld [vmem:[%s10623_s3 + $0x130] sm:$0xf0]  ;;  %v5665_v7 = vor.u32 %v7376_v61, %v5662_v62  ;;  %v7340_v9 = vld [vmem:[%s10623_s3 + $0x324] sm:$0xf]  ;;  %v5204_v62 = vld [vmem:[%s10623_s3 + $0xa8] sm:$0xf] }
 0x12e   :  { %v5390_v8 = vld [vmem:[%s10623_s3 + $0x230] sm:$0xf0]  ;;  %v7372_v12 = vld [vmem:[%s10623_s3 + $0x424] sm:$0xf]  ;;  %v5265_v14 = vor.u32 %v7276_v1, %v5262_v2  ;;  %v5332_v1 = vld [vmem:[%s10623_s3 + $0x1a8] sm:$0xf] }
 0x12f   :  { %2046 = vmatpush.bf16.msra.mxu3 %v5729_v16  ;;  %2008 = vmatpush.bf16.msra.mxu0 %v5329_v23  ;;  %v5518_v10 = vld [vmem:[%s10623_s3 + $0x330] sm:$0xf0]  ;;  %v7272_v15 = vld [vmem:[%s10623_s3 + $0x104] sm:$0xf]  ;;  %v5393_v17 = vor.u32 %v7308_v3, %v5390_v8  ;;  %v7295_v2 = vld [vmem:[%s10623_s3 + $0x1b4] sm:$0xf0] }
 0x130   :  { %2021 = vmatpush.bf16.msra.mxu1 %v5457_v24  ;;  %v5646_v13 = vld [vmem:[%s10623_s3 + $0x430] sm:$0xf0]  ;;  %v7304_v18 = vld [vmem:[%s10623_s3 + $0x204] sm:$0xf]  ;;  %v5521_v21 = vor.u32 %v7340_v9, %v5518_v10  ;;  %v5333_v10 = vor.u32 %v7295_v2, %v5332_v1  ;;  %v7247_v54 = vld [vmem:[%s10623_s3 + $0x34] sm:$0xf0] }
 0x131   :  { %2034 = vmatpush.bf16.msra.mxu2 %v5585_v27  ;;  %v5246_v16 = vld [vmem:[%s10623_s3 + $0x110] sm:$0xf0]  ;;  %v7336_v20 = vld [vmem:[%s10623_s3 + $0x304] sm:$0xf]  ;;  %v5649_v22 = vor.u32 %v7372_v12, %v5646_v13  ;;  %v5188_v13 = vld [vmem:[%s10623_s3 + $0x88] sm:$0xf] }
 0x132   :  { %v5374_v19 = vld [vmem:[%s10623_s3 + $0x210] sm:$0xf0]  ;;  %v7428_v24 = vld [vmem:[%s10623_s3 + $0x5e4] sm:$0xf]  ;;  %v5249_v29 = vor.u32 %v7272_v15, %v5246_v16  ;;  %v5316_v16 = vld [vmem:[%s10623_s3 + $0x188] sm:$0xf] }
 0x133   :  { %2047 = vmatpush.bf16.msra.mxu3 %v5713_v28  ;;  %2009 = vmatpush.bf16.msra.mxu0 %v5313_v37  ;;  %v5502_v23 = vld [vmem:[%s10623_s3 + $0x310] sm:$0xf0]  ;;  %v7368_v26 = vld [vmem:[%s10623_s3 + $0x404] sm:$0xf]  ;;  %v5377_v33 = vor.u32 %v7304_v18, %v5374_v19  ;;  %v5364_v37 = vld [vmem:[%s10623_s3 + $0x1e8] sm:$0xf] }
 0x134   :  { %2022 = vmatpush.bf16.msra.mxu1 %v5441_v38  ;;  %v5870_v25 = vld [vmem:[%s10623_s3 + $0x5f0] sm:$0xf0]  ;;  %v7460_v28 = vld [vmem:[%s10623_s3 + $0x6e4] sm:$0xf]  ;;  %v7303_v38 = vld [vmem:[%s10623_s3 + $0x1f4] sm:$0xf0]  ;;  %v5505_v39 = vor.u32 %v7336_v20, %v5502_v23 }
 0x135   :  { %2035 = vmatpush.bf16.msra.mxu2 %v5569_v41  ;;  %v5630_v27 = vld [vmem:[%s10623_s3 + $0x410] sm:$0xf0]  ;;  %v5873_v35 = vor.u32 %v7428_v24, %v5870_v25  ;;  %v7424_v41 = vld [vmem:[%s10623_s3 + $0x5c4] sm:$0xf]  ;;  %v5365_v46 = vor.u32 %v7303_v38, %v5364_v37  ;;  %v5172_v25 = vld [vmem:[%s10623_s3 + $0x68] sm:$0xf] }
 0x136   :  { %v5998_v30 = vld [vmem:[%s10623_s3 + $0x6f0] sm:$0xf0]  ;;  %v5633_v40 = vor.u32 %v7368_v26, %v5630_v27  ;;  %v7456_v45 = vld [vmem:[%s10623_s3 + $0x6c4] sm:$0xf]  ;;  %v7255_v26 = vld [vmem:[%s10623_s3 + $0x74] sm:$0xf0] }
 0x137   :  { %2048 = vmatpush.bf16.msra.mxu3 %v5697_v42  ;;  %2010 = vmatpush.bf16.msra.mxu0 %v5297_v51  ;;  %v5854_v42 = vld [vmem:[%s10623_s3 + $0x5d0] sm:$0xf0]  ;;  %v6001_v43 = vor.u32 %v7460_v28, %v5998_v30  ;;  %v7267_v51 = vld [vmem:[%s10623_s3 + $0xd4] sm:$0xf0]  ;;  %v7452_v59 = vld [vmem:[%s10623_s3 + $0x6a4] sm:$0xf] }
 0x138   :  { %2023 = vmatpush.bf16.msra.mxu1 %v5425_v52  ;;  %v5982_v49 = vld [vmem:[%s10623_s3 + $0x6d0] sm:$0xf0]  ;;  %v5857_v52 = vor.u32 %v7424_v41, %v5854_v42  ;;  %v5221_v58 = vor.u32 %v7267_v51, %v5220_v50  ;;  %v7416_v3 = vld [vmem:[%s10623_s3 + $0x584] sm:$0xf]  ;;  %v5300_v28 = vld [vmem:[%s10623_s3 + $0x168] sm:$0xf] }
 0x139   :  { %2036 = vmatpush.bf16.msra.mxu2 %v5553_v55  ;;  %v7420_v55 = vld [vmem:[%s10623_s3 + $0x5a4] sm:$0xf]  ;;  %v5985_v57 = vor.u32 %v7456_v45, %v5982_v49  ;;  %v5966_v61 = vld [vmem:[%s10623_s3 + $0x6b0] sm:$0xf0]  ;;  %v5284_v42 = vld [vmem:[%s10623_s3 + $0x148] sm:$0xf] }
 0x13a   :  { %v7448_v9 = vld [vmem:[%s10623_s3 + $0x684] sm:$0xf]  ;;  %v5950_v12 = vld [vmem:[%s10623_s3 + $0x690] sm:$0xf0]  ;;  %v5492_v1 = vld [vmem:[%s10623_s3 + $0x2e8] sm:$0xf] }
 0x13b   :  { %2049 = vmatpush.bf16.msra.mxu3 %v5681_v56  ;;  %2011 = vmatpush.bf16.msra.mxu0 %v5281_v63  ;;  %v5838_v56 = vld [vmem:[%s10623_s3 + $0x5b0] sm:$0xf0]  ;;  %v7263_v63 = vld [vmem:[%s10623_s3 + $0xb4] sm:$0xf0]  ;;  %v7412_v18 = vld [vmem:[%s10623_s3 + $0x564] sm:$0xf]  ;;  %v5953_v20 = vor.u32 %v7448_v9, %v5950_v12 }
 0x13c   :  { %2024 = vmatpush.bf16.msra.mxu1 %v5409_v0  ;;  %v5841_v0 = vor.u32 %v7420_v55, %v5838_v56  ;;  %v5205_v8 = vor.u32 %v7263_v63, %v5204_v62  ;;  %v5806_v19 = vld [vmem:[%s10623_s3 + $0x570] sm:$0xf0]  ;;  %v7408_v30 = vld [vmem:[%s10623_s3 + $0x544] sm:$0xf]  ;;  %v5268_v56 = vld [vmem:[%s10623_s3 + $0x128] sm:$0xf]  ;;  %v5141_v63 = vor.u32 %v7247_v54, %v5140_v53 }
 0x13d   :  { %2037 = vmatpush.bf16.msra.mxu2 %v5537_v4  ;;  %v5822_v4 = vld [vmem:[%s10623_s3 + $0x590] sm:$0xf0]  ;;  %v5809_v27 = vor.u32 %v7412_v18, %v5806_v19  ;;  %v7436_v50 = vld [vmem:[%s10623_s3 + $0x624] sm:$0xf]  ;;  %v7335_v2 = vld [vmem:[%s10623_s3 + $0x2f4] sm:$0xf0] }
 0x13e   :  { %v5825_v15 = vor.u32 %v7416_v3, %v5822_v4  ;;  %v5934_v24 = vld [vmem:[%s10623_s3 + $0x670] sm:$0xf0]  ;;  %v7243_v4 = vld [vmem:[%s10623_s3 + $0x14] sm:$0xf0]  ;;  %v5572_v54 = vld [vmem:[%s10623_s3 + $0x388] sm:$0xf] }
 0x13f   :  { %2050 = vmatpush.bf16.msra.mxu3 %v5665_v7  ;;  %2012 = vmatpush.bf16.msra.mxu0 %v5265_v14  ;;  %v5969_v7 = vor.u32 %v7452_v59, %v5966_v61  ;;  %v7259_v14 = vld [vmem:[%s10623_s3 + $0x94] sm:$0xf0]  ;;  %v5790_v31 = vld [vmem:[%s10623_s3 + $0x550] sm:$0xf0] }
 0x140   :  { %2025 = vmatpush.bf16.msra.mxu1 %v5393_v17  ;;  %v7291_v17 = vld [vmem:[%s10623_s3 + $0x194] sm:$0xf0]  ;;  %v5918_v38 = vld [vmem:[%s10623_s3 + $0x650] sm:$0xf0]  ;;  %v5793_v41 = vor.u32 %v7408_v30, %v5790_v31  ;;  %v5860_v30 = vld [vmem:[%s10623_s3 + $0x5c8] sm:$0xf] }
 0x141   :  { %2038 = vmatpush.bf16.msra.mxu2 %v5521_v21  ;;  %v5189_v21 = vor.u32 %v7259_v14, %v5188_v13  ;;  %v5317_v23 = vor.u32 %v7291_v17, %v5316_v16  ;;  %v5774_v45 = vld [vmem:[%s10623_s3 + $0x530] sm:$0xf0]  ;;  %v7367_v12 = vld [vmem:[%s10623_s3 + $0x3f4] sm:$0xf0]  ;;  %v5748_v13 = vld [vmem:[%s10623_s3 + $0x4e8] sm:$0xf]  ;;  %v5493_v14 = vor.u32 %v7335_v2, %v5492_v1 }
 0x142   :  { %v5758_v59 = vld [vmem:[%s10623_s3 + $0x510] sm:$0xf0]  ;;  %v5876_v16 = vld [vmem:[%s10623_s3 + $0x5e8] sm:$0xf]  ;;  %v7431_v17 = vld [vmem:[%s10623_s3 + $0x5f4] sm:$0xf0] }
 0x143   :  { %2051 = vmatpush.bf16.msra.mxu3 %v5649_v22  ;;  %2013 = vmatpush.bf16.msra.mxu0 %v5249_v29  ;;  %v7444_v22 = vld [vmem:[%s10623_s3 + $0x664] sm:$0xf]  ;;  %v7287_v29 = vld [vmem:[%s10623_s3 + $0x174] sm:$0xf0]  ;;  %v5886_v61 = vld [vmem:[%s10623_s3 + $0x610] sm:$0xf0] }
 0x144   :  { %2026 = vmatpush.bf16.msra.mxu1 %v5377_v33  ;;  %v5937_v32 = vor.u32 %v7444_v22, %v5934_v24  ;;  %v5173_v33 = vor.u32 %v7255_v26, %v5172_v25  ;;  %v5301_v37 = vor.u32 %v7287_v29, %v5300_v28  ;;  %v5476_v22 = vld [vmem:[%s10623_s3 + $0x2c8] sm:$0xf]  ;;  %v5877_v25 = vor.u32 %v7431_v17, %v5876_v16  ;;  %v7395_v29 = vld [vmem:[%s10623_s3 + $0x4d4] sm:$0xf0] }
 0x145   :  { %2039 = vmatpush.bf16.msra.mxu2 %v5505_v39  ;;  %v5156_v39 = vld [vmem:[%s10623_s3 + $0x48] sm:$0xf]  ;;  %v7427_v31 = vld [vmem:[%s10623_s3 + $0x5d4] sm:$0xf0] }
 0x146   :  { %2014 = vmatmul.bf16.vlgmr.msra.gmra.mxu0 %v8894_v48  ;;  %v5604_v26 = vld [vmem:[%s10623_s3 + $0x3c8] sm:$0xf] }
 0x147   :  { %2058 = vmatpush.bf16.msrb.mxu0 %v5873_v35  ;;  %2052 = vmatpush.bf16.msra.mxu3 %v5633_v40  ;;  %v7440_v35 = vld [vmem:[%s10623_s3 + $0x644] sm:$0xf]  ;;  %v7251_v40 = vld [vmem:[%s10623_s3 + $0x54] sm:$0xf0]  ;;  %v5732_v28 = vld [vmem:[%s10623_s3 + $0x4c8] sm:$0xf] }
 0x148   :  { %2071 = vmatpush.bf16.msrb.mxu1 %v6001_v43  ;;  %2040 = vmatmul.bf16.vlgmr.msra.gmra.mxu2 %v8873_v36  ;;  %v7283_v43 = vld [vmem:[%s10623_s3 + $0x154] sm:$0xf0]  ;;  %v5157_v49 = vor.u32 %v7251_v40, %v5156_v39  ;;  %v5861_v39 = vor.u32 %v7427_v31, %v5860_v30  ;;  %v5588_v40 = vld [vmem:[%s10623_s3 + $0x3a8] sm:$0xf] }
 0x149   :  { %2084 = vmatpush.bf16.msrb.mxu2 %v5237_v44  ;;  %2027 = vmatmul.bf16.vlgmr.msra.gmra.mxu1 %v8868_v34  ;;  %v7404_v44 = vld [vmem:[%s10623_s3 + $0x524] sm:$0xf]  ;;  %v5285_v51 = vor.u32 %v7283_v43, %v5284_v42  ;;  %v5716_v42 = vld [vmem:[%s10623_s3 + $0x4a8] sm:$0xf]  ;;  %v7391_v43 = vld [vmem:[%s10623_s3 + $0x4b4] sm:$0xf0] }
 0x14a   :  { %2053 = vmatmul.bf16.vlgmr.msra.gmra.mxu3 %v9056_v6  ;;  %v5777_v55 = vor.u32 %v7404_v44, %v5774_v45  ;;  %v5844_v44 = vld [vmem:[%s10623_s3 + $0x5a8] sm:$0xf]  ;;  %v7423_v45 = vld [vmem:[%s10623_s3 + $0x5b4] sm:$0xf0] }
 0x14b   :  { %2097 = vmatpush.bf16.msrb.mxu3 %v5365_v46  ;;  %2059 = vmatpush.bf16.msrb.mxu0 %v5857_v52  ;;  %v5921_v46 = vor.u32 %v7440_v35, %v5918_v38  ;;  %v5902_v52 = vld [vmem:[%s10623_s3 + $0x630] sm:$0xf0]  ;;  %v5460_v35 = vld [vmem:[%s10623_s3 + $0x2a8] sm:$0xf]  ;;  %v5733_v38 = vor.u32 %v7395_v29, %v5732_v28  ;;  %v5845_v53 = vor.u32 %v7423_v45, %v5844_v44  ;;  %v7343_v30 = vld [vmem:[%s10623_s3 + $0x334] sm:$0xf0] }
 0x14c   :  { %2072 = vmatpush.bf16.msrb.mxu1 %v5985_v57  ;;  %v7279_v57 = vld [vmem:[%s10623_s3 + $0x134] sm:$0xf0]  ;;  %v5905_v62 = vor.u32 %v7436_v50, %v5902_v52  ;;  %v5444_v50 = vld [vmem:[%s10623_s3 + $0x288] sm:$0xf]  ;;  %v5717_v52 = vor.u32 %v7391_v43, %v5716_v42 }
 0x14d   :  { %2085 = vmatpush.bf16.msrb.mxu2 %v5221_v58  ;;  %v7400_v58 = vld [vmem:[%s10623_s3 + $0x504] sm:$0xf]  ;;  %v5269_v3 = vor.u32 %v7279_v57, %v5268_v56  ;;  %v5700_v56 = vld [vmem:[%s10623_s3 + $0x488] sm:$0xf]  ;;  %v7387_v57 = vld [vmem:[%s10623_s3 + $0x494] sm:$0xf0] }
 0x14e   :  { %v5761_v9 = vor.u32 %v7400_v58, %v5758_v59  ;;  %v5828_v58 = vld [vmem:[%s10623_s3 + $0x588] sm:$0xf]  ;;  %v7419_v59 = vld [vmem:[%s10623_s3 + $0x594] sm:$0xf0] }
 0x14f   :  { %2098 = vmatpush.bf16.msrb.mxu3 %v5349_v60  ;;  %2060 = vmatpush.bf16.msrb.mxu0 %v5841_v0  ;;  %v7432_v60 = vld [vmem:[%s10623_s3 + $0x604] sm:$0xf]  ;;  %v5124_v0 = vld [vmem:[%s10623_s3 + $0x8] sm:$0xf]  ;;  %v5829_v1 = vor.u32 %v7419_v59, %v5828_v58  ;;  %v7339_v42 = vld [vmem:[%s10623_s3 + $0x314] sm:$0xf0] }
 0x150   :  { %2073 = vmatpush.bf16.msrb.mxu1 %v5969_v7  ;;  %v5252_v7 = vld [vmem:[%s10623_s3 + $0x108] sm:$0xf]  ;;  %v5889_v18 = vor.u32 %v7432_v60, %v5886_v61  ;;  %v5125_v19 = vor.u32 %v7243_v4, %v5124_v0  ;;  %v5701_v0 = vor.u32 %v7387_v57, %v5700_v56  ;;  %v7301_v56 = vld [vmem:[%s10623_s3 + $0x1ec] sm:$0xf]  ;;  %v5366_v57 = vld [vmem:[%s10623_s3 + $0x1f8] sm:$0xf0] }
 0x151   :  { %2086 = vmatpush.bf16.msrb.mxu2 %v5205_v8  ;;  %v7275_v8 = vld [vmem:[%s10623_s3 + $0x114] sm:$0xf0]  ;;  %v5556_v2 = vld [vmem:[%s10623_s3 + $0x368] sm:$0xf] }
 0x152   :  { %v5684_v4 = vld [vmem:[%s10623_s3 + $0x468] sm:$0xf] }
 0x153   :  { %2099 = vmatpush.bf16.msrb.mxu3 %v5333_v10  ;;  %2061 = vmatpush.bf16.msrb.mxu0 %v5825_v15  ;;  %v5620_v10 = vld [vmem:[%s10623_s3 + $0x3e8] sm:$0xf]  ;;  %v7399_v15 = vld [vmem:[%s10623_s3 + $0x4f4] sm:$0xf0] }
 0x154   :  { %2074 = vmatpush.bf16.msrb.mxu1 %v5953_v20  ;;  %v5253_v20 = vor.u32 %v7275_v8, %v5252_v7  ;;  %v5749_v24 = vor.u32 %v7399_v15, %v5748_v13  ;;  %v7383_v7 = vld [vmem:[%s10623_s3 + $0x474] sm:$0xf0]  ;;  %v5812_v8 = vld [vmem:[%s10623_s3 + $0x568] sm:$0xf] }
 0x155   :  { %2087 = vmatpush.bf16.msrb.mxu2 %v5189_v21  ;;  %v5621_v21 = vor.u32 %v7367_v12, %v5620_v10  ;;  %v5412_v13 = vld [vmem:[%s10623_s3 + $0x248] sm:$0xf]  ;;  %v5685_v15 = vor.u32 %v7383_v7, %v5684_v4  ;;  %v7265_v4 = vld [vmem:[%s10623_s3 + $0xcc] sm:$0xf] }
 0x156   :  { %v5540_v17 = vld [vmem:[%s10623_s3 + $0x348] sm:$0xf] }
 0x157   :  { %2100 = vmatpush.bf16.msrb.mxu3 %v5317_v23  ;;  %2062 = vmatpush.bf16.msrb.mxu0 %v5809_v27  ;;  %v7331_v23 = vld [vmem:[%s10623_s3 + $0x2d4] sm:$0xf0]  ;;  %v5524_v29 = vld [vmem:[%s10623_s3 + $0x328] sm:$0xf] }
 0x158   :  { %2075 = vmatpush.bf16.msrb.mxu1 %v5937_v32  ;;  %v7363_v27 = vld [vmem:[%s10623_s3 + $0x3d4] sm:$0xf0]  ;;  %v5477_v32 = vor.u32 %v7331_v23, %v5476_v22  ;;  %v5652_v31 = vld [vmem:[%s10623_s3 + $0x428] sm:$0xf] }
 0x159   :  { %2088 = vmatpush.bf16.msrb.mxu2 %v5173_v33  ;;  %v5605_v33 = vor.u32 %v7363_v27, %v5604_v26  ;;  %v7411_v22 = vld [vmem:[%s10623_s3 + $0x554] sm:$0xf0]  ;;  %v5636_v43 = vld [vmem:[%s10623_s3 + $0x408] sm:$0xf] }
 0x15a   :  { %v7311_v26 = vld [vmem:[%s10623_s3 + $0x234] sm:$0xf0] }
 0x15b   :  { %2101 = vmatpush.bf16.msrb.mxu3 %v5301_v37  ;;  %2063 = vmatpush.bf16.msrb.mxu0 %v5793_v41  ;;  %v7327_v37 = vld [vmem:[%s10623_s3 + $0x2b4] sm:$0xf0] }
 0x15c   :  { %2076 = vmatpush.bf16.msrb.mxu1 %v5921_v46  ;;  %v7359_v41 = vld [vmem:[%s10623_s3 + $0x3b4] sm:$0xf0]  ;;  %v5461_v46 = vor.u32 %v7327_v37, %v5460_v35 }
 0x15d   :  { %2089 = vmatpush.bf16.msrb.mxu2 %v5157_v49  ;;  %v5589_v49 = vor.u32 %v7359_v41, %v5588_v40  ;;  %v7407_v35 = vld [vmem:[%s10623_s3 + $0x534] sm:$0xf0]  ;;  %v5525_v40 = vor.u32 %v7343_v30, %v5524_v29  ;;  %v5508_v41 = vld [vmem:[%s10623_s3 + $0x308] sm:$0xf] }
 0x15e   :  { %v5509_v58 = vor.u32 %v7339_v42, %v5508_v41  ;;  %v5940_v41 = vld [vmem:[%s10623_s3 + $0x668] sm:$0xf]  ;;  %v7447_v42 = vld [vmem:[%s10623_s3 + $0x674] sm:$0xf0] }
 0x15f   :  { %2102 = vmatpush.bf16.msrb.mxu3 %v5285_v51  ;;  %2064 = vmatpush.bf16.msrb.mxu0 %v5777_v55  ;;  %v7323_v51 = vld [vmem:[%s10623_s3 + $0x294] sm:$0xf0] }
 0x160   :  { %2077 = vmatpush.bf16.msrb.mxu1 %v5905_v62  ;;  %v7355_v55 = vld [vmem:[%s10623_s3 + $0x394] sm:$0xf0]  ;;  %v5445_v60 = vor.u32 %v7323_v51, %v5444_v50  ;;  %v5428_v62 = vld [vmem:[%s10623_s3 + $0x268] sm:$0xf] }
 0x161   :  { %2090 = vmatpush.bf16.msrb.mxu2 %v5141_v63  ;;  %v5573_v61 = vor.u32 %v7355_v55, %v5572_v54  ;;  %v7319_v63 = vld [vmem:[%s10623_s3 + $0x274] sm:$0xf0]  ;;  %v5764_v51 = vld [vmem:[%s10623_s3 + $0x508] sm:$0xf]  ;;  %v5238_v55 = vld [vmem:[%s10623_s3 + $0xf8] sm:$0xf0] }
 0x162   :  { %v5429_v10 = vor.u32 %v7319_v63, %v5428_v62  ;;  %v7463_v50 = vld [vmem:[%s10623_s3 + $0x6f4] sm:$0xf0] }
 0x163   :  { %2103 = vmatpush.bf16.msrb.mxu3 %v5269_v3  ;;  %2065 = vmatpush.bf16.msrb.mxu0 %v5761_v9  ;;  %v7351_v3 = vld [vmem:[%s10623_s3 + $0x374] sm:$0xf0] }
 0x164   :  { %2078 = vmatpush.bf16.msrb.mxu1 %v5889_v18  ;;  %v7415_v9 = vld [vmem:[%s10623_s3 + $0x574] sm:$0xf0]  ;;  %v5557_v12 = vor.u32 %v7351_v3, %v5556_v2  ;;  %v5369_v3 = vor.u32 %v7301_v56, %v5366_v57 }
 0x165   :  { %2091 = vmatpush.bf16.msrb.mxu2 %v5125_v19  ;;  %v5813_v16 = vor.u32 %v7415_v9, %v5812_v8  ;;  %v7347_v18 = vld [vmem:[%s10623_s3 + $0x354] sm:$0xf0]  ;;  %v5668_v19 = vld [vmem:[%s10623_s3 + $0x448] sm:$0xf]  ;;  %v5222_v8 = vld [vmem:[%s10623_s3 + $0xd8] sm:$0xf0] }
 0x166   :  { %2066 = vmatmul.bf16.vlgmr.msrb.gmra.mxu0 %v9067_v11  ;;  %v7297_v9 = vld [vmem:[%s10623_s3 + $0x1cc] sm:$0xf]  ;;  %v7443_v56 = vld [vmem:[%s10623_s3 + $0x654] sm:$0xf0] }
 0x167   :  { %2110 = vmatpush.bf16.msra.mxu0 %v5493_v14  ;;  %2104 = vmatpush.bf16.msrb.mxu3 %v5253_v20  ;;  %v7315_v14 = vld [vmem:[%s10623_s3 + $0x254] sm:$0xf0] }
 0x168   :  { %2123 = vmatpush.bf16.msra.mxu1 %v5621_v21  ;;  %2092 = vmatmul.bf16.vlgmr.msrb.gmra.mxu2 %v8892_v47  ;;  %v7379_v20 = vld [vmem:[%s10623_s3 + $0x454] sm:$0xf0]  ;;  %v5796_v21 = vld [vmem:[%s10623_s3 + $0x548] sm:$0xf]  ;;  %v5413_v23 = vor.u32 %v7315_v14, %v5412_v13  ;;  %v7329_v13 = vld [vmem:[%s10623_s3 + $0x2cc] sm:$0xf] }
 0x169   :  { %2136 = vmatpush.bf16.msra.mxu2 %v5749_v24  ;;  %2079 = vmatmul.bf16.vlgmr.msrb.gmra.mxu1 %v9054_v5  ;;  %v5541_v24 = vor.u32 %v7347_v18, %v5540_v17  ;;  %v5669_v27 = vor.u32 %v7379_v20, %v5668_v19  ;;  %v5797_v28 = vor.u32 %v7411_v22, %v5796_v21  ;;  %v5478_v14 = vld [vmem:[%s10623_s3 + $0x2d8] sm:$0xf0]  ;;  %v7261_v19 = vld [vmem:[%s10623_s3 + $0xac] sm:$0xf] }
 0x16a   :  { %2105 = vmatmul.bf16.vlgmr.msrb.gmra.mxu3 %v8894_v48  ;;  %v5225_v17 = vor.u32 %v7265_v4, %v5222_v8  ;;  %v5481_v20 = vor.u32 %v7329_v13, %v5478_v14  ;;  %v5206_v21 = vld [vmem:[%s10623_s3 + $0xb8] sm:$0xf0]  ;;  %v7293_v22 = vld [vmem:[%s10623_s3 + $0x1ac] sm:$0xf]  ;;  %v7439_v8 = vld [vmem:[%s10623_s3 + $0x634] sm:$0xf0] }
 0x16b   :  { %2149 = vmatpush.bf16.msra.mxu3 %v5877_v25  ;;  %2111 = vmatpush.bf16.msra.mxu0 %v5477_v32  ;;  %v5396_v25 = vld [vmem:[%s10623_s3 + $0x228] sm:$0xf]  ;;  %v7375_v32 = vld [vmem:[%s10623_s3 + $0x434] sm:$0xf0]  ;;  %v5209_v29 = vor.u32 %v7261_v19, %v5206_v21  ;;  %v5398_v21 = vld [vmem:[%s10623_s3 + $0x238] sm:$0xf0] }
 0x16c   :  { %2124 = vmatpush.bf16.msra.mxu1 %v5605_v33  ;;  %v5780_v33 = vld [vmem:[%s10623_s3 + $0x528] sm:$0xf]  ;;  %v5397_v37 = vor.u32 %v7311_v26, %v5396_v25  ;;  %v5653_v44 = vor.u32 %v7375_v32, %v5652_v31  ;;  %v7325_v25 = vld [vmem:[%s10623_s3 + $0x2ac] sm:$0xf]  ;;  %v5462_v26 = vld [vmem:[%s10623_s3 + $0x2b8] sm:$0xf0] }
 0x16d   :  { %2137 = vmatpush.bf16.msra.mxu2 %v5733_v38  ;;  %v5380_v38 = vld [vmem:[%s10623_s3 + $0x208] sm:$0xf]  ;;  %v5781_v45 = vor.u32 %v7407_v35, %v5780_v33  ;;  %v7257_v31 = vld [vmem:[%s10623_s3 + $0x8c] sm:$0xf]  ;;  %v5465_v32 = vor.u32 %v7325_v25, %v5462_v26  ;;  %v5190_v33 = vld [vmem:[%s10623_s3 + $0x98] sm:$0xf0] }
 0x16e   :  { %v7289_v35 = vld [vmem:[%s10623_s3 + $0x18c] sm:$0xf]  ;;  %v5126_v25 = vld [vmem:[%s10623_s3 + $0x18] sm:$0xf0] }
 0x16f   :  { %2150 = vmatpush.bf16.msra.mxu3 %v5861_v39  ;;  %2112 = vmatpush.bf16.msra.mxu0 %v5461_v46  ;;  %v7307_v39 = vld [vmem:[%s10623_s3 + $0x214] sm:$0xf0] }
 0x170   :  { %2125 = vmatpush.bf16.msra.mxu1 %v5589_v49  ;;  %v7371_v46 = vld [vmem:[%s10623_s3 + $0x414] sm:$0xf0]  ;;  %v6004_v49 = vld [vmem:[%s10623_s3 + $0x6e8] sm:$0xf]  ;;  %v5381_v54 = vor.u32 %v7307_v39, %v5380_v38  ;;  %v7321_v39 = vld [vmem:[%s10623_s3 + $0x28c] sm:$0xf] }
 0x171   :  { %2138 = vmatpush.bf16.msra.mxu2 %v5717_v52  ;;  %v7403_v52 = vld [vmem:[%s10623_s3 + $0x514] sm:$0xf0]  ;;  %v6005_v59 = vor.u32 %v7463_v50, %v6004_v49  ;;  %v5637_v62 = vor.u32 %v7371_v46, %v5636_v43  ;;  %v5193_v43 = vor.u32 %v7257_v31, %v5190_v33  ;;  %v5174_v49 = vld [vmem:[%s10623_s3 + $0x78] sm:$0xf0]  ;;  %v7285_v50 = vld [vmem:[%s10623_s3 + $0x16c] sm:$0xf] }
 0x172   :  { %v5765_v63 = vor.u32 %v7403_v52, %v5764_v51  ;;  %v5302_v51 = vld [vmem:[%s10623_s3 + $0x178] sm:$0xf0]  ;;  %v5941_v52 = vor.u32 %v7447_v42, %v5940_v41  ;;  %v7305_v33 = vld [vmem:[%s10623_s3 + $0x20c] sm:$0xf] }
 0x173   :  { %2151 = vmatpush.bf16.msra.mxu3 %v5845_v53  ;;  %2113 = vmatpush.bf16.msra.mxu0 %v5445_v60  ;;  %v7269_v53 = vld [vmem:[%s10623_s3 + $0xec] sm:$0xf] }
 0x174   :  { %2126 = vmatpush.bf16.msra.mxu1 %v5573_v61  ;;  %v7333_v60 = vld [vmem:[%s10623_s3 + $0x2ec] sm:$0xf]  ;;  %v5494_v61 = vld [vmem:[%s10623_s3 + $0x2f8] sm:$0xf0]  ;;  %v5241_v2 = vor.u32 %v7269_v53, %v5238_v55  ;;  %v5924_v55 = vld [vmem:[%s10623_s3 + $0x648] sm:$0xf] }
 0x175   :  { %2139 = vmatpush.bf16.msra.mxu2 %v5701_v0  ;;  %v5988_v0 = vld [vmem:[%s10623_s3 + $0x6c8] sm:$0xf]  ;;  %v5497_v7 = vor.u32 %v7333_v60, %v5494_v61  ;;  %v7317_v53 = vld [vmem:[%s10623_s3 + $0x26c] sm:$0xf]  ;;  %v5158_v61 = vld [vmem:[%s10623_s3 + $0x58] sm:$0xf0] }
 0x176   :  { %v7429_v41 = vld [vmem:[%s10623_s3 + $0x5ec] sm:$0xf] }
 0x177   :  { %2152 = vmatpush.bf16.msra.mxu3 %v5829_v1  ;;  %2114 = vmatpush.bf16.msra.mxu0 %v5429_v10  ;;  %v7459_v1 = vld [vmem:[%s10623_s3 + $0x6d4] sm:$0xf0]  ;;  %v5350_v10 = vld [vmem:[%s10623_s3 + $0x1d8] sm:$0xf0] }
 0x178   :  { %2127 = vmatpush.bf16.msra.mxu1 %v5557_v12  ;;  %v5989_v12 = vor.u32 %v7459_v1, %v5988_v0  ;;  %v5353_v18 = vor.u32 %v7297_v9, %v5350_v10  ;;  %v5925_v1 = vor.u32 %v7443_v56, %v5924_v55  ;;  %v7361_v56 = vld [vmem:[%s10623_s3 + $0x3cc] sm:$0xf] }
 0x179   :  { %2140 = vmatpush.bf16.msra.mxu2 %v5685_v15  ;;  %v5972_v15 = vld [vmem:[%s10623_s3 + $0x6a8] sm:$0xf] }
 0x17b   :  { %2153 = vmatpush.bf16.msra.mxu3 %v5813_v16  ;;  %2115 = vmatpush.bf16.msra.mxu0 %v5413_v23  ;;  %v7455_v16 = vld [vmem:[%s10623_s3 + $0x6b4] sm:$0xf0]  ;;  %v5334_v23 = vld [vmem:[%s10623_s3 + $0x1b8] sm:$0xf0] }
 0x17c   :  { %2128 = vmatpush.bf16.msra.mxu1 %v5541_v24  ;;  %v5973_v24 = vor.u32 %v7455_v16, %v5972_v15  ;;  %v5337_v30 = vor.u32 %v7293_v22, %v5334_v23  ;;  %v5142_v16 = vld [vmem:[%s10623_s3 + $0x38] sm:$0xf0]  ;;  %v5892_v22 = vld [vmem:[%s10623_s3 + $0x608] sm:$0xf]  ;;  %v7435_v23 = vld [vmem:[%s10623_s3 + $0x614] sm:$0xf0] }
 0x17d   :  { %2141 = vmatpush.bf16.msra.mxu2 %v5669_v27  ;;  %v5956_v27 = vld [vmem:[%s10623_s3 + $0x688] sm:$0xf] }
 0x17f   :  { %2154 = vmatpush.bf16.msra.mxu3 %v5797_v28  ;;  %2116 = vmatpush.bf16.msra.mxu0 %v5397_v37  ;;  %v7451_v28 = vld [vmem:[%s10623_s3 + $0x694] sm:$0xf0]  ;;  %v5318_v37 = vld [vmem:[%s10623_s3 + $0x198] sm:$0xf0] }
 0x180   :  { %2129 = vmatpush.bf16.msra.mxu1 %v5525_v40  ;;  %v5957_v38 = vor.u32 %v7451_v28, %v5956_v27  ;;  %v5446_v40 = vld [vmem:[%s10623_s3 + $0x298] sm:$0xf0]  ;;  %v7273_v28 = vld [vmem:[%s10623_s3 + $0x10c] sm:$0xf] }
 0x181   :  { %2142 = vmatpush.bf16.msra.mxu2 %v5653_v44  ;;  %v5321_v44 = vor.u32 %v7289_v35, %v5318_v37  ;;  %v5449_v46 = vor.u32 %v7321_v39, %v5446_v40  ;;  %v5382_v35 = vld [vmem:[%s10623_s3 + $0x218] sm:$0xf0]  ;;  %v7397_v39 = vld [vmem:[%s10623_s3 + $0x4ec] sm:$0xf] }
 0x182   :  { %v5750_v40 = vld [vmem:[%s10623_s3 + $0x4f8] sm:$0xf0] }
 0x183   :  { %2155 = vmatpush.bf16.msra.mxu3 %v5781_v45  ;;  %2117 = vmatpush.bf16.msra.mxu0 %v5381_v54  ;;  %v7253_v45 = vld [vmem:[%s10623_s3 + $0x6c] sm:$0xf]  ;;  %v5430_v54 = vld [vmem:[%s10623_s3 + $0x278] sm:$0xf0]  ;;  %v5753_v55 = vor.u32 %v7397_v39, %v5750_v40 }
 0x184   :  { %2130 = vmatpush.bf16.msra.mxu1 %v5509_v58  ;;  %v5177_v57 = vor.u32 %v7253_v45, %v5174_v49  ;;  %v5305_v58 = vor.u32 %v7285_v50, %v5302_v51  ;;  %v5433_v60 = vor.u32 %v7317_v53, %v5430_v54  ;;  %v7461_v45 = vld [vmem:[%s10623_s3 + $0x6ec] sm:$0xf]  ;;  %v9840_v53 = vld [vmem:[%s10622_s2] sm:$0xf]  ;;  %v5385_v54 = vor.u32 %v7305_v33, %v5382_v35  ;;  %v5558_v35 = vld [vmem:[%s10623_s3 + $0x378] sm:$0xf0] }
 0x185   :  { %2143 = vmatpush.bf16.msra.mxu2 %v5637_v62  ;;  %v7281_v62 = vld [vmem:[%s10623_s3 + $0x14c] sm:$0xf] }
 0x186   :  { %2118 = vmatmul.bf16.vlgmr.msra.gmra.mxu0 %v8868_v34 }
 0x187   :  { %2162 = vmatpush.bf16.msrb.mxu0 %v6005_v59  ;;  %2156 = vmatpush.bf16.msra.mxu3 %v5765_v63  ;;  %v7249_v59 = vld [vmem:[%s10623_s3 + $0x4c] sm:$0xf]  ;;  %v5286_v63 = vld [vmem:[%s10623_s3 + $0x158] sm:$0xf0] }
 0x188   :  { %2175 = vmatpush.bf16.msrb.mxu1 %v5241_v2  ;;  %2144 = vmatmul.bf16.vlgmr.msra.gmra.mxu2 %v9056_v6  ;;  %v7313_v2 = vld [vmem:[%s10623_s3 + $0x24c] sm:$0xf]  ;;  %v5161_v9 = vor.u32 %v7249_v59, %v5158_v61  ;;  %v5289_v10 = vor.u32 %v7281_v62, %v5286_v63  ;;  %v5734_v61 = vld [vmem:[%s10623_s3 + $0x4d8] sm:$0xf0] }
 0x189   :  { %2188 = vmatpush.bf16.msrb.mxu2 %v5369_v3  ;;  %2131 = vmatmul.bf16.vlgmr.msra.gmra.mxu1 %v8873_v36  ;;  %v5414_v3 = vld [vmem:[%s10623_s3 + $0x258] sm:$0xf0]  ;;  %v7425_v62 = vld [vmem:[%s10623_s3 + $0x5cc] sm:$0xf] }
 0x18a   :  { %2157 = vmatmul.bf16.vlgmr.msra.gmra.mxu3 %v9067_v11  ;;  %v5417_v15 = vor.u32 %v7313_v2, %v5414_v3  ;;  %v5862_v63 = vld [vmem:[%s10623_s3 + $0x5d8] sm:$0xf0] }
 0x18b   :  { %2201 = vmatpush.bf16.msrb.mxu3 %v5497_v7  ;;  %2163 = vmatpush.bf16.msrb.mxu0 %v5989_v12  ;;  %v5908_v7 = vld [vmem:[%s10623_s3 + $0x628] sm:$0xf]  ;;  %v7245_v12 = vld [vmem:[%s10623_s3 + $0x2c] sm:$0xf]  ;;  %v9770_v13 = vpop.f32.mrf.mxu2  ;;  %v5990_v2 = vld [vmem:[%s10623_s3 + $0x6d8] sm:$0xf0] }
 0x18c   :  { %2176 = vmatpush.bf16.msrb.mxu1 %v5225_v17  ;;  %v7277_v17 = vld [vmem:[%s10623_s3 + $0x12c] sm:$0xf]  ;;  %v5909_v19 = vor.u32 %v7439_v8, %v5908_v7  ;;  %v5145_v26 = vor.u32 %v7245_v12, %v5142_v16  ;;  %v749_v7 = vperm.slane %v9840_v53, 0  ;;  %v5865_v12 = vor.u32 %v7425_v62, %v5862_v63 }
 0x18d   :  { %2189 = vmatpush.bf16.msrb.mxu2 %v5353_v18  ;;  %v9772_v14 = vpop.f32.mrf.mxu3  ;;  %v5270_v18 = vld [vmem:[%s10623_s3 + $0x138] sm:$0xf0]  ;;  %v7389_v16 = vld [vmem:[%s10623_s3 + $0x4ac] sm:$0xf] }
 0x18e   :  { %v5273_v27 = vor.u32 %v7277_v17, %v5270_v18  ;;  %v5718_v17 = vld [vmem:[%s10623_s3 + $0x4b8] sm:$0xf0]  ;;  %v7421_v18 = vld [vmem:[%s10623_s3 + $0x5ac] sm:$0xf] }
 0x18f   :  { %2202 = vmatpush.bf16.msrb.mxu3 %v5481_v20  ;;  %2164 = vmatpush.bf16.msrb.mxu0 %v5973_v24  ;;  %v9751_v0 = vpop.f32.mrf.mxu1  ;;  %v9759_v4 = vpop.f32.mrf.mxu0  ;;  %v7309_v20 = vld [vmem:[%s10623_s3 + $0x22c] sm:$0xf] }
 0x190   :  { %2177 = vmatpush.bf16.msrb.mxu1 %v5209_v29  ;;  %v7241_v24 = vld [vmem:[%s10623_s3 + $0xc] sm:$0xf]  ;;  %v5401_v31 = vor.u32 %v7309_v20, %v5398_v21  ;;  %v5974_v21 = vld [vmem:[%s10623_s3 + $0x6b8] sm:$0xf0] }
 0x191   :  { %2190 = vmatpush.bf16.msrb.mxu2 %v5337_v30  ;;  %v7365_v29 = vld [vmem:[%s10623_s3 + $0x3ec] sm:$0xf]  ;;  %v5622_v30 = vld [vmem:[%s10623_s3 + $0x3f8] sm:$0xf0]  ;;  %v5129_v49 = vor.u32 %v7241_v24, %v5126_v25  ;;  %v1912_v25 = vadd.f32 %v9759_v4, %v749_v7 }
 0x192   :  { %v7453_v20 = vld [vmem:[%s10623_s3 + $0x6ac] sm:$0xf]  ;;  %v5574_v24 = vld [vmem:[%s10623_s3 + $0x398] sm:$0xf0] }
 0x193   :  { %2203 = vmatpush.bf16.msrb.mxu3 %v5465_v32  ;;  %2165 = vmatpush.bf16.msrb.mxu0 %v5957_v38  ;;  %v5254_v32 = vld [vmem:[%s10623_s3 + $0x118] sm:$0xf0]  ;;  %v5893_v38 = vor.u32 %v7435_v23, %v5892_v22  ;;  %v1939_v51 = vpop.f32.mrf.mxu2  ;;  %v5721_v23 = vor.u32 %v7389_v16, %v5718_v17 }
 0x194   :  { %2178 = vmatpush.bf16.msrb.mxu1 %v5193_v43  ;;  %v5625_v43 = vor.u32 %v7365_v29, %v5622_v30  ;;  %v5257_v50 = vor.u32 %v7273_v28, %v5254_v32  ;;  %v5702_v28 = vld [vmem:[%s10623_s3 + $0x498] sm:$0xf0]  ;;  %v7417_v29 = vld [vmem:[%s10623_s3 + $0x58c] sm:$0xf] }
 0x195   :  { %2191 = vmatpush.bf16.msrb.mxu2 %v5321_v44  ;;  %v5878_v44 = vld [vmem:[%s10623_s3 + $0x5f8] sm:$0xf0]  ;;  %v7449_v30 = vld [vmem:[%s10623_s3 + $0x68c] sm:$0xf] }
 0x196   :  { %v5830_v4 = vld [vmem:[%s10623_s3 + $0x598] sm:$0xf0]  ;;  %v7345_v51 = vld [vmem:[%s10623_s3 + $0x34c] sm:$0xf] }
 0x197   :  { %2204 = vmatpush.bf16.msrb.mxu3 %v5449_v46  ;;  %2166 = vmatpush.bf16.msrb.mxu0 %v5941_v52  ;;  %v1926_v37 = vpop.f32.mrf.mxu1  ;;  %v1913_v42 = vpop.f32.mrf.mxu0  ;;  %v6006_v46 = vld [vmem:[%s10623_s3 + $0x6f8] sm:$0xf0] }
 0x198   :  { %2179 = vmatpush.bf16.msrb.mxu1 %v5177_v57  ;;  %v1952_v52 = vpop.f32.mrf.mxu3  ;;  %v5606_v57 = vld [vmem:[%s10623_s3 + $0x3d8] sm:$0xf0]  ;;  %v6009_v59 = vor.u32 %v7461_v45, %v6006_v46  ;;  %v1925_v37 = vadd.f32 %v9751_v0, %v1912_v25  ;;  %v7445_v45 = vld [vmem:[%s10623_s3 + $0x66c] sm:$0xf] }
 0x199   :  { %2192 = vmatpush.bf16.msrb.mxu2 %v5305_v58  ;;  %v5881_v58 = vor.u32 %v7429_v41, %v5878_v44  ;;  %v5609_v3 = vor.u32 %v7361_v56, %v5606_v57  ;;  %v7381_v41 = vld [vmem:[%s10623_s3 + $0x46c] sm:$0xf]  ;;  %v5686_v42 = vld [vmem:[%s10623_s3 + $0x478] sm:$0xf0] }
 0x19a   :  { %v5814_v0 = vld [vmem:[%s10623_s3 + $0x578] sm:$0xf0]  ;;  %v7377_v57 = vld [vmem:[%s10623_s3 + $0x44c] sm:$0xf] }
 0x19b   :  { %2205 = vmatpush.bf16.msrb.mxu3 %v5433_v60  ;;  %2167 = vmatpush.bf16.msrb.mxu0 %v5925_v1  ;;  %v7393_v60 = vld [vmem:[%s10623_s3 + $0x4cc] sm:$0xf]  ;;  %v5942_v46 = vld [vmem:[%s10623_s3 + $0x678] sm:$0xf0] }
 0x19c   :  { %2180 = vmatpush.bf16.msrb.mxu1 %v5161_v9  ;;  %v7457_v1 = vld [vmem:[%s10623_s3 + $0x6cc] sm:$0xf]  ;;  %v5737_v8 = vor.u32 %v7393_v60, %v5734_v61  ;;  %v5542_v52 = vld [vmem:[%s10623_s3 + $0x358] sm:$0xf0]  ;;  %v5945_v56 = vor.u32 %v7445_v45, %v5942_v46  ;;  %v6124_v46 = vld [vmem:[%s10624_s4 + $0xe0] sm:$0xf] }
 0x19d   :  { %2193 = vmatpush.bf16.msrb.mxu2 %v5289_v10  ;;  %v7357_v9 = vld [vmem:[%s10623_s3 + $0x3ac] sm:$0xf]  ;;  %v5590_v10 = vld [vmem:[%s10623_s3 + $0x3b8] sm:$0xf0]  ;;  %v5545_v63 = vor.u32 %v7345_v51, %v5542_v52  ;;  %v6052_v52 = vld [vmem:[%s10624_s4 + $0x50] sm:$0xf] }
 0x19e   :  { %v5593_v22 = vor.u32 %v7357_v9, %v5590_v10  ;;  %v7441_v60 = vld [vmem:[%s10623_s3 + $0x64c] sm:$0xf]  ;;  %v5926_v61 = vld [vmem:[%s10623_s3 + $0x658] sm:$0xf0] }
 0x19f   :  { %2206 = vmatpush.bf16.msrb.mxu3 %v5417_v15  ;;  %2168 = vmatpush.bf16.msrb.mxu0 %v5909_v19  ;;  %v5993_v15 = vor.u32 %v7457_v1, %v5990_v2  ;;  %v5846_v19 = vld [vmem:[%s10623_s3 + $0x5b8] sm:$0xf0]  ;;  %v7341_v2 = vld [vmem:[%s10623_s3 + $0x32c] sm:$0xf]  ;;  %v5929_v9 = vor.u32 %v7441_v60, %v5926_v61 }
 0x1a0   :  { %2181 = vmatpush.bf16.msrb.mxu1 %v5145_v26  ;;  %v5849_v26 = vor.u32 %v7421_v18, %v5846_v19  ;;  %v7373_v10 = vld [vmem:[%s10623_s3 + $0x42c] sm:$0xf]  ;;  %v5910_v19 = vld [vmem:[%s10623_s3 + $0x638] sm:$0xf0] }
 0x1a1   :  { %2194 = vmatpush.bf16.msrb.mxu2 %v5273_v27  ;;  %v5977_v27 = vor.u32 %v7453_v20, %v5974_v21  ;;  %v7437_v18 = vld [vmem:[%s10623_s3 + $0x62c] sm:$0xf]  ;;  %v5638_v25 = vld [vmem:[%s10623_s3 + $0x418] sm:$0xf0] }
 0x1a3   :  { %2207 = vmatpush.bf16.msrb.mxu3 %v5401_v31  ;;  %2169 = vmatpush.bf16.msrb.mxu0 %v5893_v38  ;;  %v5958_v31 = vld [vmem:[%s10623_s3 + $0x698] sm:$0xf0]  ;;  %v5833_v38 = vor.u32 %v7417_v29, %v5830_v4  ;;  %v1963_v40 = vpop.f32.mrf.mxu0  ;;  %v6068_v29 = vld [vmem:[%s10624_s4 + $0x70] sm:$0xf]  ;;  %v7479_v4 = vld [vmem:[%s10624_s4 + $0x74] sm:$0xf0] }
 0x1a4   :  { %2182 = vmatpush.bf16.msrb.mxu1 %v5129_v49  ;;  %v5961_v39 = vor.u32 %v7449_v30, %v5958_v31  ;;  %v5766_v30 = vld [vmem:[%s10623_s3 + $0x518] sm:$0xf0]  ;;  %v7433_v31 = vld [vmem:[%s10623_s3 + $0x60c] sm:$0xf] }
 0x1a5   :  { %2195 = vmatpush.bf16.msrb.mxu2 %v5257_v50  ;;  %v5689_v50 = vor.u32 %v7381_v41, %v5686_v42  ;;  %v6060_v41 = vld [vmem:[%s10624_s4 + $0x60] sm:$0xf] }
 0x1a6   :  { %2170 = vmatmul.bf16.vlgmr.msrb.gmra.mxu0 %v9054_v5  ;;  %v9936_v44 = vpop.f32.mrf.mxu1 }
 0x1a7   :  { %2214 = vmatpush.bf16.msra.mxu0 %v5625_v43  ;;  %2208 = vmatpush.bf16.msrb.mxu3 %v5385_v54  ;;  %v7413_v43 = vld [vmem:[%s10623_s3 + $0x56c] sm:$0xf]  ;;  %v1938_v54 = vadd.f32 %v9770_v13, %v1925_v37  ;;  %v5798_v13 = vld [vmem:[%s10623_s3 + $0x558] sm:$0xf0]  ;;  %v6069_v37 = vor.u32 %v7479_v4, %v6068_v29  ;;  %v6084_v4 = vld [vmem:[%s10624_s4 + $0x90] sm:$0xf] }
 0x1a8   :  { %2227 = vmatpush.bf16.msra.mxu1 %v5753_v55  ;;  %2196 = vmatmul.bf16.vlgmr.msrb.gmra.mxu2 %v8894_v48  ;;  %v7353_v48 = vld [vmem:[%s10623_s3 + $0x38c] sm:$0xf]  ;;  %v5817_v55 = vor.u32 %v7413_v43, %v5814_v0  ;;  %v7477_v43 = vld [vmem:[%s10624_s4 + $0x64] sm:$0xf0]  ;;  %v6132_v0 = vld [vmem:[%s10624_s4 + $0xf0] sm:$0xf] }
 0x1a9   :  { %2240 = vmatpush.bf16.msra.mxu2 %v5881_v58  ;;  %2183 = vmatmul.bf16.vlgmr.msrb.gmra.mxu1 %v8892_v47  ;;  %v5577_v32 = vor.u32 %v7353_v48, %v5574_v24  ;;  %v7349_v47 = vld [vmem:[%s10623_s3 + $0x36c] sm:$0xf]  ;;  %v5670_v58 = vld [vmem:[%s10623_s3 + $0x458] sm:$0xf0]  ;;  %v1951_v7 = vadd.f32 %v9772_v14, %v1938_v54  ;;  %v6061_v51 = vor.u32 %v7477_v43, %v6060_v41  ;;  %v7475_v54 = vld [vmem:[%s10624_s4 + $0x54] sm:$0xf0] }
 0x1aa   :  { %2209 = vmatmul.bf16.vlgmr.msrb.gmra.mxu3 %v8868_v34  ;;  %v7385_v34 = vld [vmem:[%s10623_s3 + $0x48c] sm:$0xf]  ;;  %v5561_v49 = vor.u32 %v7349_v47, %v5558_v35  ;;  %v5673_v1 = vor.u32 %v7377_v57, %v5670_v58  ;;  %v5782_v14 = vld [vmem:[%s10623_s3 + $0x538] sm:$0xf0]  ;;  %v6053_v58 = vor.u32 %v7475_v54, %v6052_v52  ;;  %v7481_v41 = vld [vmem:[%s10624_s4 + $0x84] sm:$0xf0] }
 0x1ab   :  { %2253 = vmatpush.bf16.msra.mxu3 %v6009_v59  ;;  %2215 = vmatpush.bf16.msra.mxu0 %v5609_v3  ;;  %v5705_v33 = vor.u32 %v7385_v34, %v5702_v28  ;;  %v7409_v59 = vld [vmem:[%s10623_s3 + $0x54c] sm:$0xf]  ;;  %v1989_v62 = vpop.f32.mrf.mxu2  ;;  %v5526_v3 = vld [vmem:[%s10623_s3 + $0x338] sm:$0xf0]  ;;  %v1965_v17 = vpop.f32.mrf.mxu0  ;;  %v5913_v34 = vor.u32 %v7437_v18, %v5910_v19  ;;  %v6020_v18 = vld [vmem:[%s10624_s4 + $0x10] sm:$0xf] }
 0x1ac   :  { %2228 = vmatpush.bf16.msra.mxu1 %v5737_v8  ;;  %v5801_v8 = vor.u32 %v7409_v59, %v5798_v13  ;;  %v5529_v21 = vor.u32 %v7341_v2, %v5526_v3  ;;  %v5510_v48 = vld [vmem:[%s10623_s3 + $0x318] sm:$0xf0]  ;;  %v7369_v24 = vld [vmem:[%s10623_s3 + $0x40c] sm:$0xf]  ;;  %v7473_v59 = vld [vmem:[%s10624_s4 + $0x44] sm:$0xf0] }
 0x1ad   :  { %2241 = vmatpush.bf16.msra.mxu2 %v5865_v12  ;;  %v5654_v12 = vld [vmem:[%s10623_s3 + $0x438] sm:$0xf0]  ;;  %v9988_v16 = vpop.f32.mrf.mxu3  ;;  %v7401_v28 = vld [vmem:[%s10623_s3 + $0x50c] sm:$0xf]  ;;  %v5641_v35 = vor.u32 %v7369_v24, %v5638_v25  ;;  %v7467_v19 = vld [vmem:[%s10624_s4 + $0x14] sm:$0xf0] }
 0x1ae   :  { %v1978_v20 = vpop.f32.mrf.mxu1  ;;  %v750_v24 = vperm.slane %v9840_v53, 1  ;;  %v7492_v43 = vld [vmem:[%s10624_s4 + $0xe4] sm:$0xf] }
 0x1af   :  { %2254 = vmatpush.bf16.msra.mxu3 %v5993_v15  ;;  %2216 = vmatpush.bf16.msra.mxu0 %v5593_v22  ;;  %v7405_v15 = vld [vmem:[%s10623_s3 + $0x52c] sm:$0xf] }
 0x1b0   :  { %2229 = vmatpush.bf16.msra.mxu1 %v5721_v23  ;;  %v7337_v22 = vld [vmem:[%s10623_s3 + $0x30c] sm:$0xf]  ;;  %v5657_v23 = vor.u32 %v7373_v10, %v5654_v12  ;;  %v7487_v10 = vld [vmem:[%s10624_s4 + $0xb4] sm:$0xf0] }
 0x1b1   :  { %2242 = vmatpush.bf16.msra.mxu2 %v5849_v26  ;;  %v1964_v26 = vadd.f32 %v1963_v40, %v1951_v7  ;;  %v6028_v7 = vld [vmem:[%s10624_s4 + $0x20] sm:$0xf] }
 0x1b3   :  { %2255 = vmatpush.bf16.msra.mxu3 %v5977_v27  ;;  %2217 = vmatpush.bf16.msra.mxu0 %v5577_v32  ;;  %v5785_v27 = vor.u32 %v7405_v15, %v5782_v14  ;;  %v5894_v32 = vld [vmem:[%s10623_s3 + $0x618] sm:$0xf0]  ;;  %v1991_v47 = vpop.f32.mrf.mxu2 }
 0x1b4   :  { %2230 = vmatpush.bf16.msra.mxu1 %v5705_v33  ;;  %v5513_v33 = vor.u32 %v7337_v22, %v5510_v48  ;;  %v5897_v40 = vor.u32 %v7433_v31, %v5894_v32  ;;  %v7485_v48 = vld [vmem:[%s10624_s4 + $0xa4] sm:$0xf0]  ;;  %v2003_v31 = vadd.f32 %v9988_v16, %v750_v24  ;;  %v7494_v32 = vld [vmem:[%s10624_s4 + $0xf4] sm:$0xf]  ;;  %v6076_v16 = vld [vmem:[%s10624_s4 + $0x80] sm:$0xf] }
 0x1b5   :  { %2243 = vmatpush.bf16.msra.mxu2 %v5833_v38  ;;  %v1977_v38 = vadd.f32 %v9936_v44, %v1964_v26  ;;  %v2004_v42 = vpop.f32.mrf.mxu3  ;;  %v7495_v44 = vld [vmem:[%s10624_s4 + $0xf4] sm:$0xf0]  ;;  %v7480_v24 = vld [vmem:[%s10624_s4 + $0x84] sm:$0xf] }
 0x1b6   :  { %v6133_v45 = vor.u32 %v7495_v44, %v6132_v0  ;;  %v6126_v0 = vld [vmem:[%s10624_s4 + $0xe8] sm:$0xf0]  ;;  %v6077_v44 = vor.u32 %v7481_v41, %v6076_v16  ;;  %v6172_v16 = vld [vmem:[%s10624_s4 + $0x140] sm:$0xf]  ;;  %v7505_v41 = vld [vmem:[%s10624_s4 + $0x144] sm:$0xf0] }
 0x1b7   :  { %2256 = vmatpush.bf16.msra.mxu3 %v5961_v39  ;;  %2218 = vmatpush.bf16.msra.mxu0 %v5561_v49  ;;  %v5769_v39 = vor.u32 %v7401_v28, %v5766_v30  ;;  %v7493_v49 = vld [vmem:[%s10624_s4 + $0xe4] sm:$0xf0]  ;;  %v7483_v30 = vld [vmem:[%s10624_s4 + $0x94] sm:$0xf0] }
 0x1b8   :  { %2231 = vmatpush.bf16.msra.mxu1 %v5689_v50  ;;  %v10048_v50 = vadd.f32 %v1989_v62, %v1977_v38  ;;  %v6108_v62 = vld [vmem:[%s10624_s4 + $0xc0] sm:$0xf]  ;;  %v7465_v28 = vld [vmem:[%s10624_s4 + $0x4] sm:$0xf0]  ;;  %v6085_v47 = vor.u32 %v7483_v30, %v6084_v4  ;;  %v6182_v4 = vld [vmem:[%s10624_s4 + $0x158] sm:$0xf0] }
 0x1b9   :  { %2244 = vmatpush.bf16.msra.mxu2 %v5817_v55  ;;  %v6125_v55 = vor.u32 %v7493_v49, %v6124_v46  ;;  %v6129_v46 = vor.u32 %v7492_v43, %v6126_v0  ;;  %v6173_v43 = vor.u32 %v7505_v41, %v6172_v16  ;;  %v6174_v0 = vld [vmem:[%s10624_s4 + $0x148] sm:$0xf0] }
 0x1ba   :  { %v2266_v57 = vmul.f32 0.5, %v10048_v50  ;;  %v6062_v16 = vld [vmem:[%s10624_s4 + $0x68] sm:$0xf0] }
 0x1bb   :  { %2257 = vmatpush.bf16.msra.mxu3 %v5945_v56  ;;  %2219 = vmatpush.bf16.msra.mxu0 %v5545_v63  ;;  %v6116_v56 = vld [vmem:[%s10624_s4 + $0xd0] sm:$0xf]  ;;  %v7489_v63 = vld [vmem:[%s10624_s4 + $0xc4] sm:$0xf0] }
 0x1bc   :  { %2232 = vmatpush.bf16.msra.mxu1 %v5673_v1  ;;  %7770 = vtanh.f32 %v2266_v57  ;;  %v6109_v1 = vor.u32 %v7489_v63, %v6108_v62  ;;  %v6094_v62 = vld [vmem:[%s10624_s4 + $0xa8] sm:$0xf0] }
 0x1bd   :  { %2245 = vmatpush.bf16.msra.mxu2 %v5801_v8  ;;  %v7469_v8 = vld [vmem:[%s10624_s4 + $0x24] sm:$0xf0] }
 0x1be   :  { %v6029_v17 = vor.u32 %v7469_v8, %v6028_v7  ;;  %v6196_v8 = vld [vmem:[%s10624_s4 + $0x170] sm:$0xf] }
 0x1bf   :  { %2258 = vmatpush.bf16.msra.mxu3 %v5929_v9  ;;  %2220 = vmatpush.bf16.msra.mxu0 %v5529_v21  ;;  %v6100_v9 = vld [vmem:[%s10624_s4 + $0xb0] sm:$0xf] }
 0x1c0   :  { %2233 = vmatpush.bf16.msra.mxu1 %v5657_v23  ;;  %v6101_v15 = vor.u32 %v7487_v10, %v6100_v9  ;;  %v6092_v23 = vld [vmem:[%s10624_s4 + $0xa0] sm:$0xf]  ;;  %v7511_v9 = vld [vmem:[%s10624_s4 + $0x174] sm:$0xf0]  ;;  %v7510_v10 = vld [vmem:[%s10624_s4 + $0x174] sm:$0xf] }
 0x1c1   :  { %2246 = vmatpush.bf16.msra.mxu2 %v5785_v27  ;;  %v6093_v25 = vor.u32 %v7485_v48, %v6092_v23  ;;  %v6021_v27 = vor.u32 %v7467_v19, %v6020_v18  ;;  %v6188_v18 = vld [vmem:[%s10624_s4 + $0x160] sm:$0xf]  ;;  %v7509_v19 = vld [vmem:[%s10624_s4 + $0x164] sm:$0xf0]  ;;  %v6190_v23 = vld [vmem:[%s10624_s4 + $0x168] sm:$0xf0] }
 0x1c2   :  { %v7771_v12 = vpop.eup %7770 }
 0x1c3   :  { %2259 = vmatpush.bf16.msra.mxu3 %v5913_v34  ;;  %2221 = vmatpush.bf16.msra.mxu0 %v5513_v33  ;;  %v2015_v61 = vpop.f32.mrf.mxu0  ;;  %v2274_v20 = vmul.f32 0.5, %v7771_v12  ;;  %v6012_v34 = vld [vmem:[%s10624_s4] sm:$0xf]  ;;  %v6134_v33 = vld [vmem:[%s10624_s4 + $0xf8] sm:$0xf0] }
 0x1c4   :  { %2234 = vmatpush.bf16.msra.mxu1 %v5641_v35  ;;  %v6013_v35 = vor.u32 %v7465_v28, %v6012_v34  ;;  %v2016_v42 = vadd.f32 %v2015_v61, %v2003_v31  ;;  %v7484_v61 = vld [vmem:[%s10624_s4 + $0xa4] sm:$0xf]  ;;  %v6180_v34 = vld [vmem:[%s10624_s4 + $0x150] sm:$0xf]  ;;  %v7507_v28 = vld [vmem:[%s10624_s4 + $0x154] sm:$0xf0] }
 0x1c5   :  { %2247 = vmatpush.bf16.msra.mxu2 %v5769_v39  ;;  %v2278_v29 = vadd.f32 0.5, %v2274_v20  ;;  %v6137_v39 = vor.u32 %v7494_v32, %v6134_v33  ;;  %v6181_v33 = vor.u32 %v7507_v28, %v6180_v34 }
 0x1c6   :  { %2222 = vmatmul.bf16.vlgmr.msra.gmra.mxu0 %v8873_v36  ;;  %v7491_v36 = vld [vmem:[%s10624_s4 + $0xd4] sm:$0xf0]  ;;  %v2028_v2 = vpop.f32.mrf.mxu1 }
 0x1c7   :  { %2600 = vmatpush.bf16.msrb.mxu0 %v6069_v37  ;;  %2260 = vmatpush.bf16.msra.mxu3 %v5897_v40  ;;  %v6117_v13 = vor.u32 %v7491_v36, %v6116_v56  ;;  %v2282_v38 = vmul.f32 %v2278_v29, %v10048_v50  ;;  %v2029_v49 = vadd.f32 %v2028_v2, %v2016_v42  ;;  %v7490_v50 = vld [vmem:[%s10624_s4 + $0xd4] sm:$0xf]  ;;  %v6110_v56 = vld [vmem:[%s10624_s4 + $0xc8] sm:$0xf0]  ;;  %v7504_v42 = vld [vmem:[%s10624_s4 + $0x144] sm:$0xf] }
 0x1c8   :  { %2613 = vmatpush.bf16.msrb.mxu1 %v6133_v45  ;;  %2248 = vmatmul.bf16.vlgmr.msra.gmra.mxu2 %v9067_v11  ;;  %v7471_v11 = vld [vmem:[%s10624_s4 + $0x34] sm:$0xf0]  ;;  %v7482_v2 = vld [vmem:[%s10624_s4 + $0x94] sm:$0xf] }
 0x1c9   :  { %2235 = vmatmul.bf16.vlgmr.msra.gmra.mxu1 %v9056_v6  ;;  %v6044_v6 = vld [vmem:[%s10624_s4 + $0x40] sm:$0xf]  ;;  %v10142_v45 = vpack.c.bf16 %v2282_v38, %v2282_v38  ;;  %v7506_v29 = vld [vmem:[%s10624_s4 + $0x154] sm:$0xf] }
 0x1ca   :  { %2261 = vmatmul.bf16.vlgmr.msra.gmra.mxu3 %v9054_v5  ;;  %v6045_v60 = vor.u32 %v7473_v59, %v6044_v6  ;;  %v6036_v5 = vld [vmem:[%s10624_s4 + $0x30] sm:$0xf]  ;;  %v6102_v6 = vld [vmem:[%s10624_s4 + $0xb8] sm:$0xf0] }
 0x1cb   :  { %2601 = vmatpush.bf16.msrb.mxu0 %v6061_v51  ;;  %v6037_v3 = vor.u32 %v7471_v11, %v6036_v5  ;;  %v2041_v14 = vpop.f32.mrf.mxu2  ;;  %v2017_v22 = vpop.f32.mrf.mxu0  ;;  %v6118_v51 = vld [vmem:[%s10624_s4 + $0xd8] sm:$0xf0] }
 0x1cc   :  { %2614 = vmatpush.bf16.msrb.mxu1 %v6125_v55  ;;  %v6121_v52 = vor.u32 %v7490_v50, %v6118_v51  ;;  %v2042_v54 = vadd.f32 %v2041_v14, %v2029_v49  ;;  %v7488_v55 = vld [vmem:[%s10624_s4 + $0xc4] sm:$0xf]  ;;  %v6198_v14 = vld [vmem:[%s10624_s4 + $0x178] sm:$0xf0]  ;;  %v6164_v49 = vld [vmem:[%s10624_s4 + $0x130] sm:$0xf] }
 0x1cd   :  { %v2054_v21 = vpop.f32.mrf.mxu3  ;;  %v6113_v36 = vor.u32 %v7488_v55, %v6110_v56  ;;  %v7508_v22 = vld [vmem:[%s10624_s4 + $0x164] sm:$0xf]  ;;  %v7503_v50 = vld [vmem:[%s10624_s4 + $0x134] sm:$0xf0]  ;;  %v7502_v51 = vld [vmem:[%s10624_s4 + $0x134] sm:$0xf] }
 0x1ce   :  { %v2030_v26 = vpop.f32.mrf.mxu1  ;;  %v2055_v57 = vadd.f32 %v2054_v21, %v2042_v54  ;;  %v6201_v21 = vor.u32 %v7510_v10, %v6198_v14  ;;  %v6165_v54 = vor.u32 %v7503_v50, %v6164_v49  ;;  %v6166_v55 = vld [vmem:[%s10624_s4 + $0x138] sm:$0xf0]  ;;  %v7496_v14 = vld [vmem:[%s10624_s4 + $0x104] sm:$0xf]  ;;  %v752_v50 = vperm.slane %v9840_v53, 3 }
 0x1cf   :  { %2602 = vmatpush.bf16.msrb.mxu0 %v6053_v58  ;;  %v7486_v58 = vld [vmem:[%s10624_s4 + $0xb4] sm:$0xf]  ;;  %v6078_v26 = vld [vmem:[%s10624_s4 + $0x88] sm:$0xf0]  ;;  %v6169_v56 = vor.u32 %v7502_v51, %v6166_v55  ;;  %v6054_v49 = vld [vmem:[%s10624_s4 + $0x58] sm:$0xf0] }
 0x1d0   :  { %2615 = vmatpush.bf16.msrb.mxu1 %v6117_v13  ;;  %v6105_v5 = vor.u32 %v7486_v58, %v6102_v6  ;;  %v6081_v32 = vor.u32 %v7480_v24, %v6078_v26  ;;  %v7501_v58 = vld [vmem:[%s10624_s4 + $0x124] sm:$0xf0]  ;;  %v7500_v6 = vld [vmem:[%s10624_s4 + $0x124] sm:$0xf]  ;;  %v6046_v55 = vld [vmem:[%s10624_s4 + $0x48] sm:$0xf0] }
 0x1d3   :  { %2603 = vmatpush.bf16.msrb.mxu0 %v6045_v60  ;;  %v2043_v37 = vpop.f32.mrf.mxu2 }
 0x1d4   :  { %2616 = vmatpush.bf16.msrb.mxu1 %v6109_v1  ;;  %v6097_v1 = vor.u32 %v7484_v61, %v6094_v62 }
 0x1d5   :  { %v2056_v40 = vpop.f32.mrf.mxu3 }
 0x1d7   :  { %2604 = vmatpush.bf16.msrb.mxu0 %v6037_v3  ;;  %v6086_v3 = vld [vmem:[%s10624_s4 + $0x98] sm:$0xf0] }
 0x1d8   :  { %2617 = vmatpush.bf16.msrb.mxu1 %v6101_v15  ;;  %v6089_v48 = vor.u32 %v7482_v2, %v6086_v3  ;;  %v7498_v2 = vld [vmem:[%s10624_s4 + $0x114] sm:$0xf] }
 0x1db   :  { %2605 = vmatpush.bf16.msrb.mxu0 %v6029_v17  ;;  %v6197_v17 = vor.u32 %v7511_v9, %v6196_v8  ;;  %v6150_v9 = vld [vmem:[%s10624_s4 + $0x118] sm:$0xf0] }
 0x1dc   :  { %2618 = vmatpush.bf16.msrb.mxu1 %v6093_v25  ;;  %v6189_v25 = vor.u32 %v7509_v19, %v6188_v18  ;;  %v6142_v19 = vld [vmem:[%s10624_s4 + $0x108] sm:$0xf0] }
 0x1dd   :  { %2626 = vmatpush.bf16.msrb.mxu2 %v6197_v17  ;;  %v7497_v17 = vld [vmem:[%s10624_s4 + $0x104] sm:$0xf0] }
 0x1df   :  { %2606 = vmatpush.bf16.msrb.mxu0 %v6021_v27  ;;  %v6193_v27 = vor.u32 %v7508_v22, %v6190_v23 }
 0x1e0   :  { %2619 = vmatpush.bf16.msrb.mxu1 %v6085_v47 }
 0x1e1   :  { %2627 = vmatpush.bf16.msrb.mxu2 %v6189_v25 }
 0x1e3   :  { %2607 = vmatpush.bf16.msrb.mxu0 %v6013_v35  ;;  %v2067_v59 = vpop.f32.mrf.mxu0  ;;  %v6185_v35 = vor.u32 %v7506_v29, %v6182_v4  ;;  %v6204_v4 = vld [vmem:[%s10624_s4 + $0x180] sm:$0xf] }
 0x1e4   :  { %2620 = vmatpush.bf16.msrb.mxu1 %v6077_v44  ;;  %v2068_v60 = vadd.f32 %v2067_v59, %v2055_v57  ;;  %v6177_v44 = vor.u32 %v7504_v42, %v6174_v0  ;;  %v6156_v57 = vld [vmem:[%s10624_s4 + $0x120] sm:$0xf] }
 0x1e5   :  { %2628 = vmatpush.bf16.msrb.mxu2 %v6181_v33  ;;  %v6157_v59 = vor.u32 %v7501_v58, %v6156_v57  ;;  %v7478_v33 = vld [vmem:[%s10624_s4 + $0x74] sm:$0xf] }
 0x1e6   :  { %2608 = vmatmul.bf16.vlgmr.msrb.gmra.mxu0 %v10142_v45  ;;  %v2080_v13 = vpop.f32.mrf.mxu1 }
 0x1e7   :  { %2665 = vmatpush.bf16.msra.mxu0 %v6137_v39  ;;  %v2081_v11 = vadd.f32 %v2080_v13, %v2068_v60  ;;  %v6158_v13 = vld [vmem:[%s10624_s4 + $0x128] sm:$0xf0] }
 0x1e8   :  { %2678 = vmatpush.bf16.msra.mxu1 %v6201_v21 }
 0x1e9   :  { %v2267_v63 = vmul.f32 0.5, %v2081_v11  ;;  %2629 = vmatpush.bf16.msrb.mxu2 %v6173_v43 }
 0x1eb   :  { %2666 = vmatpush.bf16.msra.mxu0 %v6129_v46  ;;  %7772 = vtanh.f32 %v2267_v63  ;;  %v10175_v7 = vpop.f32.mrf.mxu2  ;;  %v2069_v15 = vpop.f32.mrf.mxu0  ;;  %v6148_v63 = vld [vmem:[%s10624_s4 + $0x110] sm:$0xf] }
 0x1ec   :  { %2679 = vmatpush.bf16.msra.mxu1 %v6193_v27  ;;  %v6140_v15 = vld [vmem:[%s10624_s4 + $0x100] sm:$0xf] }
 0x1ed   :  { %v10186_v12 = vpop.f32.mrf.mxu3  ;;  %2630 = vmatpush.bf16.msrb.mxu2 %v6165_v54  ;;  %v6141_v18 = vor.u32 %v7497_v17, %v6140_v15  ;;  %v7472_v54 = vld [vmem:[%s10624_s4 + $0x44] sm:$0xf] }
 0x1ee   :  { %v2082_v20 = vpop.f32.mrf.mxu1  ;;  %v6049_v57 = vor.u32 %v7472_v54, %v6046_v55  ;;  %v7525_v55 = vld [vmem:[%s10625_s5 + $0x58] sm:$0xff] }
 0x1ef   :  { %2667 = vmatpush.bf16.msra.mxu0 %v6121_v52 }
 0x1f0   :  { %2680 = vmatpush.bf16.msra.mxu1 %v6185_v35 }
 0x1f1   :  { %v7773_v30 = vpop.eup %7772  ;;  %2631 = vmatpush.bf16.msrb.mxu2 %v6157_v59  ;;  %v6038_v59 = vld [vmem:[%s10624_s4 + $0x38] sm:$0xf0] }
 0x1f2   :  { %v2275_v31 = vmul.f32 0.5, %v7773_v30  ;;  %v7513_v30 = vld [vmem:[%s10624_s4 + $0x184] sm:$0xf0] }
 0x1f3   :  { %2668 = vmatpush.bf16.msra.mxu0 %v6113_v36  ;;  %v2095_v47 = vpop.f32.mrf.mxu2  ;;  %v751_v36 = vperm.slane %v9840_v53, 2  ;;  %v6206_v53 = vld [vmem:[%s10624_s4 + $0x188] sm:$0xf0] }
 0x1f4   :  { %v2279_v37 = vadd.f32 0.5, %v2275_v31  ;;  %2681 = vmatpush.bf16.msra.mxu1 %v6177_v44  ;;  %v6070_v47 = vld [vmem:[%s10624_s4 + $0x78] sm:$0xf0] }
 0x1f5   :  { %v2108_v38 = vpop.f32.mrf.mxu3  ;;  %v2094_v62 = vadd.f32 %v10175_v7, %v751_v36  ;;  %v6153_v7 = vor.u32 %v7498_v2, %v6150_v9  ;;  %v6073_v35 = vor.u32 %v7478_v33, %v6070_v47 }
 0x1f6   :  { %v2283_v39 = vmul.f32 %v2279_v37, %v2081_v11 }
 0x1f7   :  { %2669 = vmatpush.bf16.msra.mxu0 %v6105_v5  ;;  %v6161_v5 = vor.u32 %v7500_v6, %v6158_v13  ;;  %v2107_v10 = vadd.f32 %v10186_v12, %v2094_v62  ;;  %v6145_v12 = vor.u32 %v7496_v14, %v6142_v19  ;;  %v7470_v6 = vld [vmem:[%s10624_s4 + $0x34] sm:$0xf] }
 0x1f8   :  { %v2288_v40 = vpack.c.bf16 %v2283_v39, %v2283_v39  ;;  %2682 = vmatpush.bf16.msra.mxu1 %v6169_v56  ;;  %v7512_v56 = vld [vmem:[%s10624_s4 + $0x184] sm:$0xf] }
 0x1f9   :  { %v6209_v58 = vor.u32 %v7512_v56, %v6206_v53  ;;  %v7524_v56 = vld [vmem:[%s10625_s5 + $0x50] sm:$0xff] }
 0x1fa   :  { %2621 = vmatmul.bf16.vlgmr.msrb.gmra.mxu1 %v2288_v40 }
 0x1fb   :  { %2670 = vmatpush.bf16.msra.mxu0 %v6097_v1  ;;  %v7499_v1 = vld [vmem:[%s10624_s4 + $0x114] sm:$0xf0] }
 0x1fc   :  { %2683 = vmatpush.bf16.msra.mxu1 %v6161_v5  ;;  %v6149_v8 = vor.u32 %v7499_v1, %v6148_v63  ;;  %v7468_v5 = vld [vmem:[%s10624_s4 + $0x24] sm:$0xf] }
 0x1fe   :  { %2632 = vmatpush.bf16.msrb.mxu2 %v6149_v8  ;;  %v6022_v8 = vld [vmem:[%s10624_s4 + $0x18] sm:$0xf0] }
 0x1ff   :  { %2671 = vmatpush.bf16.msra.mxu0 %v6089_v48 }
 0x200   :  { %2684 = vmatpush.bf16.msra.mxu1 %v6153_v7  ;;  %v7464_v7 = vld [vmem:[%s10624_s4 + $0x4] sm:$0xf] }
 0x202   :  { %2633 = vmatpush.bf16.msrb.mxu2 %v6141_v18 }
 0x203   :  { %2672 = vmatpush.bf16.msra.mxu0 %v6081_v32  ;;  %v2119_v46 = vpop.f32.mrf.mxu0  ;;  %v6205_v32 = vor.u32 %v7513_v30, %v6204_v4  ;;  %v2286_v4 = vld [vmem:[%s10622_s2 + $0x4] sm:$0x3] }
 0x204   :  { %v2120_v22 = vadd.f32 %v2119_v46, %v2107_v10  ;;  %2685 = vmatpush.bf16.msra.mxu1 %v6145_v12  ;;  %v7474_v46 = vld [vmem:[%s10624_s4 + $0x54] sm:$0xf]  ;;  %v6014_v10 = vld [vmem:[%s10624_s4 + $0x8] sm:$0xf0]  ;;  %v2342_v30 = vperm.slane %v2286_v4, 0 }
 0x205   :  { %2646 = vmatpush.bf16.msrb.mxu3 %v6205_v32  ;;  %v6057_v51 = vor.u32 %v7474_v46, %v6054_v49  ;;  %v6017_v17 = vor.u32 %v7464_v7, %v6014_v10  ;;  %v7515_v46 = vld [vmem:[%s10625_s5 + $0x8] sm:$0xff]  ;;  %v7514_v49 = vld [vmem:[%s10625_s5] sm:$0xff] }
 0x206   :  { %2673 = vmatmul.bf16.vlgmr.msra.gmra.mxu0 %v2288_v40  ;;  %v2132_v52 = vpop.f32.mrf.mxu1  ;;  %v7476_v40 = vld [vmem:[%s10624_s4 + $0x64] sm:$0xf]  ;;  %2698 = vmatpush.bf16.msra.mxu2 %v6209_v58 }
 0x207   :  { %v2133_v23 = vadd.f32 %v2132_v52, %v2120_v22  ;;  %v6065_v41 = vor.u32 %v7476_v40, %v6062_v16 }
 0x209   :  { %2652 = vmatpush.bf16.msra.mxu3 %v6073_v35 }
 0x20b   :  { %v2145_v60 = vpop.f32.mrf.mxu2  ;;  %v2121_v61 = vpop.f32.mrf.mxu0 }
 0x20c   :  { %v2146_v48 = vadd.f32 %v2145_v60, %v2133_v23  ;;  %v6041_v60 = vor.u32 %v7470_v6, %v6038_v59  ;;  %v7523_v6 = vld [vmem:[%s10625_s5 + $0x48] sm:$0xff] }
 0x20d   :  { %v2158_v11 = vpop.f32.mrf.mxu3  ;;  %2653 = vmatpush.bf16.msra.mxu3 %v6065_v41 }
 0x20e   :  { %v2134_v3 = vpop.f32.mrf.mxu1  ;;  %v2159_v24 = vadd.f32 %v2158_v11, %v2146_v48  ;;  %v6030_v11 = vld [vmem:[%s10624_s4 + $0x28] sm:$0xf0] }
 0x20f   :  { %v6033_v62 = vor.u32 %v7468_v5, %v6030_v11  ;;  %v7466_v3 = vld [vmem:[%s10624_s4 + $0x14] sm:$0xf] }
 0x210   :  { %v6025_v9 = vor.u32 %v7466_v3, %v6022_v8 }
 0x211   :  { %2654 = vmatpush.bf16.msra.mxu3 %v6057_v51 }
 0x213   :  { %v2147_v20 = vpop.f32.mrf.mxu2 }
 0x215   :  { %v2160_v21 = vpop.f32.mrf.mxu3  ;;  %2655 = vmatpush.bf16.msra.mxu3 %v6049_v57 }
 0x219   :  { %2656 = vmatpush.bf16.msra.mxu3 %v6041_v60 }
 0x21d   :  { %2657 = vmatpush.bf16.msra.mxu3 %v6033_v62  ;;  %v2343_v62 = vperm.slane %v2286_v4, 1 }
 0x221   :  { %2658 = vmatpush.bf16.msra.mxu3 %v6025_v9 }
 0x223   :  { %v2171_v25 = vpop.f32.mrf.mxu0 }
 0x224   :  { %v2172_v26 = vadd.f32 %v2171_v25, %v2159_v24 }
 0x225   :  { %2659 = vmatpush.bf16.msra.mxu3 %v6017_v17 }
 0x226   :  { %v2268_v27 = vmul.f32 0.5, %v2172_v26  ;;  %v2184_v34 = vpop.f32.mrf.mxu1 }
 0x227   :  { %v2185_v36 = vadd.f32 %v2184_v34, %v752_v50  ;;  %v2741_v50 = vld [vmem:[%s10625_s5 + $0x60] sm:$0xf] }
 0x228   :  { %7774 = vtanh.f32 %v2268_v27  ;;  %v2794_v51 = vunpack.c.l.b16 %v2741_v50 }
 0x22b   :  { %v2197_v28 = vpop.f32.mrf.mxu2  ;;  %v2173_v31 = vpop.f32.mrf.mxu0 }
 0x22c   :  { %v2198_v13 = vadd.f32 %v2197_v28, %v2185_v36 }
 0x22d   :  { %v2210_v29 = vpop.f32.mrf.mxu3 }
 0x22e   :  { %v7775_v37 = vpop.eup %7774  ;;  %v2186_v39 = vpop.f32.mrf.mxu1  ;;  %v2211_v63 = vadd.f32 %v2210_v29, %v2198_v13  ;;  %v7522_v13 = vld [vmem:[%s10625_s5 + $0x40] sm:$0xff] }
 0x22f   :  { %v2276_v38 = vmul.f32 0.5, %v7775_v37  ;;  %v7519_v39 = vld [vmem:[%s10625_s5 + $0x28] sm:$0xff] }
 0x231   :  { %v2280_v42 = vadd.f32 0.5, %v2276_v38  ;;  %v7521_v38 = vld [vmem:[%s10625_s5 + $0x38] sm:$0xff] }
 0x233   :  { %v2199_v43 = vpop.f32.mrf.mxu2  ;;  %v2284_v44 = vmul.f32 %v2280_v42, %v2172_v26  ;;  %v7518_v42 = vld [vmem:[%s10625_s5 + $0x20] sm:$0xff] }
 0x235   :  { %v2212_v0 = vpop.f32.mrf.mxu3  ;;  %v2289_v52 = vpack.c.bf16 %v2284_v44, %v2284_v44  ;;  %v7516_v44 = vld [vmem:[%s10625_s5 + $0x10] sm:$0xff] }
 0x236   :  { %v7517_v0 = vld [vmem:[%s10625_s5 + $0x18] sm:$0xff] }
 0x237   :  { %2634 = vmatmul.bf16.vlgmr.msrb.gmra.mxu2 %v2289_v52  ;;  %2686 = vmatmul.bf16.vlgmr.msra.gmra.mxu1 %v2289_v52  ;;  %v2807_v52 = vpack.c.b16 %v2794_v51, %v2794_v51  ;;  %v6321_v51 = vld [vmem:[%s10627_s7 + $0x60] sm:$0xf] }
 0x238   :  { %2828 = vmatpush.bf16.msrb.mxu2 %v7521_v38 }
 0x239   :  { %v2826_v54 = vsel %vm2824_vm1, %v2807_v52, 0  ;;  %v7541_v52 = vld [vmem:[%s10627_s7 + $0x64] sm:$0xf0] }
 0x243   :  { %v2223_v61 = vpop.f32.mrf.mxu0 }
 0x244   :  { %v2224_v2 = vadd.f32 %v2223_v61, %v2211_v63 }
 0x246   :  { %v2236_v1 = vpop.f32.mrf.mxu1 }
 0x247   :  { %v2237_v15 = vadd.f32 %v2236_v1, %v2224_v2 }
 0x24b   :  { %v2249_v14 = vpop.f32.mrf.mxu2  ;;  %v2225_v20 = vpop.f32.mrf.mxu0 }
 0x24c   :  { %v2250_v19 = vadd.f32 %v2249_v14, %v2237_v15 }
 0x24d   :  { %v2262_v18 = vpop.f32.mrf.mxu3 }
 0x24e   :  { %v2238_v12 = vpop.f32.mrf.mxu1  ;;  %v2263_v21 = vadd.f32 %v2262_v18, %v2250_v19 }
 0x250   :  { %v2269_v22 = vmul.f32 0.5, %v2263_v21 }
 0x252   :  { %7776 = vtanh.f32 %v2269_v22 }
 0x253   :  { %v2251_v23 = vpop.f32.mrf.mxu2 }
 0x255   :  { %v2264_v48 = vpop.f32.mrf.mxu3 }
 0x258   :  { %v7777_v24 = vpop.eup %7776 }
 0x259   :  { %v2277_v25 = vmul.f32 0.5, %v7777_v24 }
 0x25b   :  { %v2281_v26 = vadd.f32 0.5, %v2277_v25 }
 0x25d   :  { %v2285_v27 = vmul.f32 %v2281_v26, %v2263_v21  ;;  %v2863_v21 = vld [vmem:[%s10626_s6 + $0x10] sm:$0x33] }
 0x25e   :  { %v2877_v22 = vunpack.c.h.b16 %v2863_v21  ;;  %v2876_v23 = vunpack.c.l.b16 %v2863_v21  ;;  %v7531_v21 = vld [vmem:[%s10627_s7 + $0x14] sm:$0xf0] }
 0x25f   :  { %v2290_v34 = vpack.c.bf16 %v2285_v27, %v2285_v27 }
 0x260   :  { %v2881_v24 = vpack.c.b16 %v2877_v22, %v2877_v22  ;;  %v2880_v25 = vpack.c.b16 %v2876_v23, %v2876_v23  ;;  %v7530_v22 = vld [vmem:[%s10627_s7 + $0x14] sm:$0xf] }
 0x261   :  { %6210 = vmatmul.msk.bf16.vlgmr.msrb.gmra.mxu3 %vm2596_vm0, %v2290_v34  ;;  %6211 = vmatmul.msk.bf16.vlgmr.msra.gmra.mxu2 %vm2596_vm0, %v2290_v34  ;;  %v7526_v34 = vld [vmem:[%s10626_s6 + $0x4] sm:$0xf] }
 0x262   :  { %2844 = vmatpush.bf16.msrb.mxu3 %v2826_v54  ;;  %v2893_v26 = vsel %vm2888_vm3, %v2881_v24, 0  ;;  %v2890_v27 = vsel %vm2888_vm3, %v2880_v25, 0  ;;  %v7540_v54 = vld [vmem:[%s10627_s7 + $0x64] sm:$0xf] }
 0x263   :  { %v2609_v28 = vpop.f32.mrf.mxu0  ;;  %2914 = vmatpush.bf16.msrb.mxu1 %v2893_v26  ;;  %2901 = vmatpush.bf16.msrb.mxu0 %v2890_v27  ;;  %v6273_v26 = vld [vmem:[%s10627_s7] sm:$0xf]  ;;  %v7529_v27 = vld [vmem:[%s10627_s7 + $0x4] sm:$0xf0] }
 0x264   :  { %v2610_v31 = vadd.f32 %v2609_v28, %v2342_v30  ;;  %v6265_v28 = vld [vmem:[%s10626_s6 + $0x8] sm:$0xf0]  ;;  %v7527_v30 = vld [vmem:[%s10626_s6 + $0x4] sm:$0xf0] }
 0x265   :  { %v6268_v4 = vor.u32 %v7526_v34, %v6265_v28  ;;  %v7528_v34 = vld [vmem:[%s10627_s7 + $0x4] sm:$0xf]  ;;  %v6274_v28 = vor.u32 %v7529_v27, %v6273_v26 }
 0x266   :  { %2845 = vmatpush.bf16.msrb.mxu3 %v7525_v55  ;;  %v6322_v55 = vor.u32 %v7541_v52, %v6321_v51 }
 0x267   :  { %2915 = vmatpush.bf16.msrb.mxu1 %v6268_v4 }
 0x26a   :  { %2846 = vmatpush.bf16.msrb.mxu3 %v7524_v56  ;;  %v6323_v56 = vld [vmem:[%s10627_s7 + $0x68] sm:$0xf0] }
 0x26b   :  { %v2611_v29 = vpop.f32.mrf.mxu0 }
 0x26c   :  { %v6263_v29 = vld [vmem:[%s10626_s6] sm:$0xf] }
 0x26e   :  { %2847 = vmatpush.bf16.msrb.mxu3 %v7523_v6 }
 0x271   :  { %2660 = vmatmul.bf16.vlgmr.msra.gmra.mxu3 %v10142_v45  ;;  %v7520_v45 = vld [vmem:[%s10625_s5 + $0x30] sm:$0xff] }
 0x272   :  { %2829 = vmatpush.bf16.msrb.mxu2 %v7520_v45  ;;  %2848 = vmatpush.bf16.msrb.mxu3 %v7522_v13 }
 0x276   :  { %2830 = vmatpush.bf16.msrb.mxu2 %v7519_v39 }
 0x277   :  { %v2622_v32 = vpop.f32.mrf.mxu1 }
 0x278   :  { %v2623_v47 = vadd.f32 %v2622_v32, %v2610_v31  ;;  %v6264_v31 = vor.u32 %v7527_v30, %v6263_v29  ;;  %v6275_v29 = vld [vmem:[%s10627_s7 + $0x8] sm:$0xf0] }
 0x27a   :  { %2831 = vmatpush.bf16.msrb.mxu2 %v7518_v42  ;;  %2902 = vmatpush.bf16.msrb.mxu0 %v6264_v31  ;;  %v6278_v31 = vor.u32 %v7528_v34, %v6275_v29 }
 0x27e   :  { %2832 = vmatpush.bf16.msrb.mxu2 %v7517_v0  ;;  %v7543_v0 = vld [vmem:[%s10627_s7 + $0x74] sm:$0xf0] }
 0x27f   :  { %v2624_v35 = vpop.f32.mrf.mxu1 }
 0x282   :  { %2833 = vmatpush.bf16.msrb.mxu2 %v7516_v44  ;;  %v7542_v44 = vld [vmem:[%s10627_s7 + $0x74] sm:$0xf] }
 0x283   :  { %v2674_v33 = vpop.f32.mrf.mxu0 }
 0x286   :  { %2834 = vmatpush.bf16.msrb.mxu2 %v7515_v46 }
 0x28a   :  { %2835 = vmatpush.bf16.msrb.mxu2 %v7514_v49  ;;  %v6331_v49 = vld [vmem:[%s10627_s7 + $0x78] sm:$0xf0] }
 0x28b   :  { %v2676_v37 = vpop.f32.mrf.mxu0  ;;  %v6334_v50 = vor.u32 %v7542_v44, %v6331_v49 }
 0x28d   :  { %3055 = vmatpush.bf16.msra.mxu0 %v6334_v50  ;;  %v2936_v50 = vld [vmem:[%s10621_s1] sm:$0xff] }
 0x2b4   :  { %v2687_v40 = vpop.f32.mrf.mxu1 }
 0x2ba   :  { %v2635_v16 = vpop.f32.mrf.mxu2 }
 0x2bb   :  { %v2636_v36 = vadd.f32 %v2635_v16, %v2623_v47 }
 0x2bc   :  { %v2689_v41 = vpop.f32.mrf.mxu1 }
 0x2c2   :  { %v2637_v43 = vpop.f32.mrf.mxu2 }
 0x2c3   :  { %v6329_v43 = vld [vmem:[%s10627_s7 + $0x70] sm:$0xf] }
 0x2c4   :  { %v6330_v46 = vor.u32 %v7543_v0, %v6329_v43 }
 0x2c6   :  { %3042 = vmatpush.bf16.msra.mxu3 %v6330_v46 }
 0x2ca   :  { %3043 = vmatpush.bf16.msra.mxu3 %v6322_v55 }
 0x2e4   :  { %v2648_v57 = vpop.f32.mrf.mxu3  ;;  %v2700_v53 = vpop.f32.mrf.mxu2 }
 0x2e5   :  { %v2649_v58 = vadd.f32 %v2648_v57, %v2636_v36  ;;  %v6326_v36 = vor.u32 %v7540_v54, %v6323_v56  ;;  %v6313_v57 = vld [vmem:[%s10627_s7 + $0x50] sm:$0xf] }
 0x2e7   :  { %v2704_v59 = vmul.f32 0.5, %v2649_v58  ;;  %3056 = vmatpush.bf16.msra.mxu0 %v6326_v36  ;;  %v2939_v36 = vld [vmem:[%s10622_s2 + $0x9] sm:$0x3] }
 0x2e9   :  { %7778 = vtanh.f32 %v2704_v59  ;;  %v6315_v59 = vld [vmem:[%s10627_s7 + $0x58] sm:$0xf0] }
 0x2ec   :  { %v2650_v60 = vpop.f32.mrf.mxu3  ;;  %v2702_v5 = vpop.f32.mrf.mxu2 }
 0x2ed   :  { %v6305_v60 = vld [vmem:[%s10627_s7 + $0x40] sm:$0xf]  ;;  %v7537_v5 = vld [vmem:[%s10627_s7 + $0x44] sm:$0xf0] }
 0x2ef   :  { %v7779_v11 = vpop.eup %7778 }
 0x2f0   :  { %v2708_v61 = vmul.f32 0.5, %v7779_v11  ;;  %v7536_v11 = vld [vmem:[%s10627_s7 + $0x44] sm:$0xf] }
 0x2f2   :  { %v2710_v63 = vadd.f32 0.5, %v2708_v61  ;;  %v6306_v61 = vor.u32 %v7537_v5, %v6305_v60 }
 0x2f4   :  { %v2712_v1 = vmul.f32 %v2710_v63, %v2649_v58  ;;  %v2661_v2 = vpop.f32.mrf.mxu3  ;;  %v7538_v58 = vld [vmem:[%s10627_s7 + $0x54] sm:$0xf] }
 0x2f5   :  { %v2662_v3 = vadd.f32 %v2661_v2, %v2343_v62  ;;  %v6318_v13 = vor.u32 %v7538_v58, %v6315_v59  ;;  %v6307_v62 = vld [vmem:[%s10627_s7 + $0x48] sm:$0xf0]  ;;  %v7535_v2 = vld [vmem:[%s10627_s7 + $0x34] sm:$0xf0]  ;;  %v2958_v59 = vperm.slane %v2939_v36, 0 }
 0x2f6   :  { %v2715_v8 = vpack.c.bf16 %v2712_v1, %v2712_v1  ;;  %v6310_v63 = vor.u32 %v7536_v11, %v6307_v62  ;;  %v6297_v1 = vld [vmem:[%s10627_s7 + $0x30] sm:$0xf] }
 0x2f7   :  { %v2675_v9 = vadd.f32 %v2674_v33, %v2662_v3  ;;  %v7769_v33 = vld [vmem:[%s10622_s2 + $0x6] ss:$0 sm:$0xff]  ;;  %3057 = vmatpush.bf16.msra.mxu0 %v6318_v13  ;;  %v7534_v3 = vld [vmem:[%s10627_s7 + $0x34] sm:$0xf] }
 0x2f8   :  { %2836 = vmatmul.bf16.vlgmr.msrb.gmra.mxu2 %v2715_v8  ;;  %v6298_v8 = vor.u32 %v7535_v2, %v6297_v1 }
 0x2f9   :  { %v2688_v7 = vadd.f32 %v2687_v40, %v2675_v9  ;;  %v6299_v9 = vld [vmem:[%s10627_s7 + $0x38] sm:$0xf0] }
 0x2fb   :  { %v2701_v10 = vadd.f32 %v2700_v53, %v2688_v7  ;;  %v7539_v53 = vld [vmem:[%s10627_s7 + $0x54] sm:$0xf0]  ;;  %3058 = vmatpush.bf16.msra.mxu0 %v6310_v63  ;;  %v6302_v7 = vor.u32 %v7534_v3, %v6299_v9 }
 0x2fc   :  { %v2663_v15 = vpop.f32.mrf.mxu3  ;;  %v6314_v6 = vor.u32 %v7539_v53, %v6313_v57  ;;  %v2959_v57 = vperm.slane %v2939_v36, 1 }
 0x2fd   :  { %v2705_v17 = vmul.f32 0.5, %v2701_v10  ;;  %v7533_v15 = vld [vmem:[%s10627_s7 + $0x24] sm:$0xf0] }
 0x2fe   :  { %3044 = vmatpush.bf16.msra.mxu3 %v6314_v6 }
 0x2ff   :  { %7780 = vtanh.f32 %v2705_v17  ;;  %3059 = vmatpush.bf16.msra.mxu0 %v6302_v7  ;;  %v7532_v17 = vld [vmem:[%s10627_s7 + $0x24] sm:$0xf] }
 0x302   :  { %3045 = vmatpush.bf16.msra.mxu3 %v6306_v61 }
 0x305   :  { %v7781_v14 = vpop.eup %7780 }
 0x306   :  { %v2709_v18 = vmul.f32 0.5, %v7781_v14  ;;  %3046 = vmatpush.bf16.msra.mxu3 %v6298_v8 }
 0x308   :  { %v2711_v19 = vadd.f32 0.5, %v2709_v18  ;;  %v6291_v18 = vld [vmem:[%s10627_s7 + $0x28] sm:$0xf0] }
 0x30a   :  { %v2713_v20 = vmul.f32 %v2711_v19, %v2701_v10  ;;  %v6289_v10 = vld [vmem:[%s10627_s7 + $0x20] sm:$0xf]  ;;  %v6294_v19 = vor.u32 %v7532_v17, %v6291_v18 }
 0x30b   :  { %v6290_v14 = vor.u32 %v7533_v15, %v6289_v10 }
 0x30c   :  { %v2716_v12 = vpack.c.bf16 %v2713_v20, %v2713_v20  ;;  %v2859_v20 = vld [vmem:[%s10622_s2 + $0x7] sm:$0x3]  ;;  %3060 = vmatpush.bf16.msra.mxu0 %v6294_v19 }
 0x30d   :  { %3047 = vmatpush.bf16.msra.mxu3 %v6290_v14  ;;  %v2866_v25 = vperm.slane %v2859_v20, 1  ;;  %v2865_v44 = vperm.slane %v2859_v20, 0 }
 0x30e   :  { %6260 = vmatmul.msk.bf16.vlgmr.msrb.gmra.mxu3 %vm2820_vm2, %v2716_v12  ;;  %v6281_v12 = vld [vmem:[%s10627_s7 + $0x10] sm:$0xf] }
 0x30f   :  { %v6282_v23 = vor.u32 %v7531_v21, %v6281_v12 }
 0x311   :  { %3048 = vmatpush.bf16.msra.mxu3 %v6282_v23 }
 0x315   :  { %3049 = vmatpush.bf16.msra.mxu3 %v6274_v28 }
 0x37b   :  { %v2837_v48 = vpop.f32.mrf.mxu2 }
 0x37c   :  { %v2838_v47 = vadd.f32 %v7769_v33, %v2837_v48  ;;  %v6283_v48 = vld [vmem:[%s10627_s7 + $0x18] sm:$0xf0] }
 0x37d   :  { %v6286_v24 = vor.u32 %v7530_v22, %v6283_v48 }
 0x37f   :  { %3061 = vmatpush.bf16.msra.mxu0 %v6286_v24 }
 0x383   :  { %v2839_v32 = vpop.f32.mrf.mxu2  ;;  %3062 = vmatpush.bf16.msra.mxu0 %v6278_v31 }
 0x391   :  { %v2850_v35 = vpop.f32.mrf.mxu3 }
 0x392   :  { %v2851_v37 = vadd.f32 %v2850_v35, %v2838_v47 }
 0x394   :  { %v2854_v38 = vmul.f32 0.5, %v2851_v37 }
 0x396   :  { %7782 = vtanh.f32 %v2854_v38 }
 0x399   :  { %v2852_v45 = vpop.f32.mrf.mxu3 }
 0x39c   :  { %v7783_v39 = vpop.eup %7782 }
 0x39d   :  { %v2856_v40 = vmul.f32 0.5, %v7783_v39 }
 0x39f   :  { %v2857_v16 = vadd.f32 0.5, %v2856_v40 }
 0x3a1   :  { %v2858_v41 = vmul.f32 %v2857_v16, %v2851_v37 }
 0x3a3   :  { %v2860_v42 = vpack.c.bf16 %v2858_v41, %v2858_v41 }
 0x3a5   :  { %6269 = vmatmul.msk.bf16.vlgmr.msrb.gmra.mxu0 %vm2884_vm4, %v2860_v42  ;;  %6270 = vmatmul.msk.bf16.vlgmr.msrb.gmra.mxu1 %vm2884_vm4, %v2860_v42 }
 0x422   :  { %v2904_v4 = vpop.f32.mrf.mxu0  ;;  %v2917_v30 = vpop.f32.mrf.mxu1 }
 0x423   :  { %v2918_v32 = vadd.f32 %v2917_v30, %v2866_v25  ;;  %v2905_v52 = vadd.f32 %v2904_v4, %v2865_v44 }
 0x425   :  { %v2922_v33 = vand.u32 2147483647, %v2918_v32  ;;  %v2921_v46 = vmax.f32 %v2918_v32, 0.0 }
 0x427   :  { %v2923_v47 = vsub.f32 0.0, %v2922_v33 }
 0x429   :  { %v2924_v35 = vmul.f32 1.442695, %v2923_v47 }
 0x42a   :  { %v2906_v37 = vpop.f32.mrf.mxu0  ;;  %v2919_v38 = vpop.f32.mrf.mxu1 }
 0x42b   :  { %7784 = vpow2.f32 %v2924_v35 }
 0x431   :  { %v7785_v45 = vpop.eup %7784 }
 0x432   :  { %v2926_v39 = vadd.f32 1.0, %v7785_v45  ;;  %v2929_v40 = vmul.f32 -0.5, %v7785_v45  ;;  %v2932_v41 = vand.u32 2147483647, %v7785_v45 }
 0x434   :  { %7786 = vlog2.f32 %v2926_v39  ;;  %v2930_v16 = vadd.f32 1.0, %v2929_v40  ;;  %vm2933_vm5 = vcmp.lt.f32.partialorder %v2932_v41, 0.0004427343 }
 0x436   :  { %v2931_v0 = vmul.f32 %v7785_v45, %v2930_v16 }
 0x43a   :  { %v7787_v42 = vpop.eup %7786 }
 0x43b   :  { %v2928_v43 = vmul.f32 0.6931472, %v7787_v42 }
 0x43d   :  { %v2934_v49 = vsel %vm2933_vm5, %v2931_v0, %v2928_v43 }
 0x43e   :  { %v2935_v51 = vadd.f32 %v2934_v49, %v2921_v46 }
 0x440   :  { %v2937_v54 = vmul.f32 %v2936_v50, %v2935_v51 }
 0x442   :  { %v2938_v55 = vadd.f32 %v2937_v54, %v2905_v52 }
 0x444   :  { %v2940_v56 = vpack.c.bf16 %v2938_v55, %v2938_v55 }
 0x446   :  { %3050 = vmatmul.bf16.vlgmr.msra.gmra.mxu3 %v2940_v56  ;;  %3063 = vmatmul.bf16.vlgmr.msra.gmra.mxu0 %v2940_v56 }
 0x4c3   :  { %v3064_v53 = vpop.f32.mrf.mxu0 }
 0x4c4   :  { %v3065_v58 = vadd.f32 %v3064_v53, %v2959_v57 }
 0x4c6   :  { %v3069_v6 = vmul.f32 0.5, %v3065_v58 }
 0x4c8   :  { %7788 = vtanh.f32 %v3069_v6 }
 0x4c9   :  { %v3051_v13 = vpop.f32.mrf.mxu3 }
 0x4ca   :  { %v3052_v60 = vadd.f32 %v3051_v13, %v2958_v59 }
 0x4cb   :  { %v3066_v5 = vpop.f32.mrf.mxu0 }
 0x4cc   :  { %v3068_v11 = vmul.f32 0.5, %v3052_v60 }
 0x4ce   :  { %v7789_v61 = vpop.eup %7788  ;;  %7790 = vtanh.f32 %v3068_v11 }
 0x4cf   :  { %v3073_v62 = vmul.f32 0.5, %v7789_v61 }
 0x4d1   :  { %v3075_v63 = vadd.f32 0.5, %v3073_v62  ;;  %v3053_v1 = vpop.f32.mrf.mxu3 }
 0x4d3   :  { %v10515_v2 = vmul.f32 %v3075_v63, %v3065_v58 }
 0x4d4   :  { %v7791_v3 = vpop.eup %7790 }
 0x4d5   :  { %v3072_v8 = vmul.f32 0.5, %v7791_v3 }
 0x4d7   :  { %v3074_v9 = vadd.f32 0.5, %v3072_v8 }
 0x4d9   :  { %v10517_v7 = vmul.f32 %v3074_v9, %v3052_v60 }
 0x4da   :  { %7862 = dma.done.wait [#allocation4], 6400 }
 0x4db   :  { %7863 = vsyncadd [#allocation4], 4294960896 }
 0x4dc   :  { %7864 = dma.done.wait [#allocation4 + $0x1], 22400 }
 0x4dd   :  { %7865 = vsyncadd [#allocation4 + $0x1], 4294944896  ;;  %5059 = vst [vmem:[#allocation7] sm:$0xff] %v2905_v52  ;;  %v6449_v10 = vld [vmem:[#allocation2 + $0xe0] sm:$0xf]  ;;  %s5079_s8 = sshll.u32 %s10631_s11, 4  ;;  %s5080_s8 = int_to_ptr.hbm [resolvable:$true] %s5079_s8 }
 0x4de   :  { %5060 = vst [vmem:[#allocation7 + $0x8] sm:$0xff] %v2935_v51  ;;  %v7574_v15 = vld [vmem:[#allocation2 + $0xec] sm:$0xf0]  ;;  %v3137_v17 = vld [vmem:[#allocation2 + $0x180] sm:$0xff]  ;;  %v6515_v26 = vld [vmem:[#allocation2 + $0x170] sm:$0xf0] }
 0x4df   :  { %v6450_v14 = vor.u32 %v7574_v15, %v6449_v10  ;;  %v3294_v18 = vunpack.c.l.b16 %v3137_v17  ;;  %v3295_v19 = vunpack.c.h.b16 %v3137_v17  ;;  %v6433_v20 = vld [vmem:[#allocation2 + $0xc0] sm:$0xf]  ;;  %v7570_v12 = vld [vmem:[#allocation2 + $0xcc] sm:$0xf0]  ;;  %v7588_v25 = vld [vmem:[#allocation2 + $0x164] sm:$0xf] }
 0x4e0   :  { %v6513_v21 = vld [vmem:[#allocation2 + $0x160] sm:$0xf]  ;;  %v6434_v48 = vor.u32 %v7570_v12, %v6433_v20  ;;  %v7590_v24 = vld [vmem:[#allocation2 + $0x16c] sm:$0xf0]  ;;  %v6518_v30 = vor.u32 %v7588_v25, %v6515_v26  ;;  %v7584_v33 = vld [vmem:[#allocation2 + $0x144] sm:$0xf] }
 0x4e1   :  { %3413 = vmatpush.bf16.msra.mxu1 %v6450_v14  ;;  %v3346_v22 = vpack.c.b16 %v3294_v18, %v3294_v18  ;;  %v3347_v23 = vpack.c.b16 %v3295_v19, %v3295_v19  ;;  %v6417_v27 = vld [vmem:[#allocation2 + $0xa0] sm:$0xf]  ;;  %v7566_v34 = vld [vmem:[#allocation2 + $0xac] sm:$0xf0]  ;;  %v6514_v4 = vor.u32 %v7590_v24, %v6513_v21  ;;  %v6499_v35 = vld [vmem:[#allocation2 + $0x150] sm:$0xf0]  ;;  %v10525_v24 = vpack.c.bf16 %v10515_v2, %v10515_v2 }
 0x4e2   :  { %v6497_v31 = vld [vmem:[#allocation2 + $0x140] sm:$0xf]  ;;  %v7586_v32 = vld [vmem:[#allocation2 + $0x14c] sm:$0xf0]  ;;  %v6418_v47 = vor.u32 %v7566_v34, %v6417_v27  ;;  %v6457_v37 = vld [vmem:[#allocation2 + $0xe8] sm:$0xf]  ;;  %v6502_v41 = vor.u32 %v7584_v33, %v6499_v35 }
 0x4e3   :  { %v3402_v28 = vsel %vm2824_vm1, %v3346_v22, 0  ;;  %v3405_v29 = vsel %vm2824_vm1, %v3347_v23, 0  ;;  %v7575_v38 = vld [vmem:[#allocation2 + $0xf4] sm:$0xf0]  ;;  %v6401_v45 = vld [vmem:[#allocation2 + $0x80] sm:$0xf]  ;;  %v6498_v16 = vor.u32 %v7586_v32, %v6497_v31 }
 0x4e4   :  { %3429 = vmatpush.bf16.msra.mxu2 %v3402_v28  ;;  %3455 = vmatpush.bf16.msrb.mxu3 %v3405_v29  ;;  %v7562_v39 = vld [vmem:[#allocation2 + $0x8c] sm:$0xf0]  ;;  %v6458_v40 = vor.u32 %v7575_v38, %v6457_v37  ;;  %v6481_v42 = vld [vmem:[#allocation2 + $0x120] sm:$0xf]  ;;  %v6441_v43 = vld [vmem:[#allocation2 + $0xc8] sm:$0xf] }
 0x4e5   :  { %3414 = vmatpush.bf16.msra.mxu1 %v6434_v48  ;;  %v7571_v0 = vld [vmem:[#allocation2 + $0xd4] sm:$0xf0]  ;;  %v6402_v44 = vor.u32 %v7562_v39, %v6401_v45  ;;  %v7582_v46 = vld [vmem:[#allocation2 + $0x12c] sm:$0xf0]  ;;  %v7580_v49 = vld [vmem:[#allocation2 + $0x124] sm:$0xf] }
 0x4e6   :  { %v6483_v50 = vld [vmem:[#allocation2 + $0x130] sm:$0xf0]  ;;  %3465 = vmatpush.bf16.msrb.mxu0 %v6458_v40  ;;  %v6442_v51 = vor.u32 %v7571_v0, %v6441_v43  ;;  %v6385_v52 = vld [vmem:[#allocation2 + $0x60] sm:$0xf]  ;;  %v7558_v54 = vld [vmem:[#allocation2 + $0x6c] sm:$0xf0]  ;;  %v6482_v36 = vor.u32 %v7582_v46, %v6481_v42 }
 0x4e7   :  { %v6425_v55 = vld [vmem:[#allocation2 + $0xa8] sm:$0xf]  ;;  %v7567_v56 = vld [vmem:[#allocation2 + $0xb4] sm:$0xf0]  ;;  %v6486_v57 = vor.u32 %v7580_v49, %v6483_v50  ;;  %v6465_v53 = vld [vmem:[#allocation2 + $0x100] sm:$0xf]  ;;  %v6386_v59 = vor.u32 %v7558_v54, %v6385_v52  ;;  %v10535_v50 = vpack.c.bf16 %v10517_v7, %v10517_v7 }
 0x4e8   :  { %3430 = vmatpush.bf16.msra.mxu2 %v6514_v4  ;;  %3456 = vmatpush.bf16.msrb.mxu3 %v6518_v30  ;;  %v7578_v58 = vld [vmem:[#allocation2 + $0x10c] sm:$0xf0]  ;;  %v7576_v6 = vld [vmem:[#allocation2 + $0x104] sm:$0xf]  ;;  %v6467_v13 = vld [vmem:[#allocation2 + $0x110] sm:$0xf0]  ;;  %v6426_v11 = vor.u32 %v7567_v56, %v6425_v55 }
 0x4e9   :  { %3415 = vmatpush.bf16.msra.mxu1 %v6418_v47  ;;  %v6369_v60 = vld [vmem:[#allocation2 + $0x40] sm:$0xf]  ;;  %v7554_v5 = vld [vmem:[#allocation2 + $0x4c] sm:$0xf0]  ;;  %v7572_v61 = vld [vmem:[#allocation2 + $0xe4] sm:$0xf]  ;;  %v6466_v9 = vor.u32 %v7578_v58, %v6465_v53  ;;  %v6470_v10 = vor.u32 %v7576_v6, %v6467_v13 }
 0x4ea   :  { %3466 = vmatpush.bf16.msrb.mxu0 %v6442_v51  ;;  %v6451_v62 = vld [vmem:[#allocation2 + $0xf0] sm:$0xf0]  ;;  %v7573_v63 = vld [vmem:[#allocation2 + $0xec] sm:$0xf]  ;;  %v6459_v1 = vld [vmem:[#allocation2 + $0xf8] sm:$0xf0]  ;;  %v6370_v17 = vor.u32 %v7554_v5, %v6369_v60 }
 0x4eb   :  { %v6409_v3 = vld [vmem:[#allocation2 + $0x88] sm:$0xf]  ;;  %v7563_v8 = vld [vmem:[#allocation2 + $0x94] sm:$0xf0]  ;;  %v6454_v14 = vor.u32 %v7572_v61, %v6451_v62  ;;  %v6353_v18 = vld [vmem:[#allocation2 + $0x20] sm:$0xf]  ;;  %v6462_v20 = vor.u32 %v7573_v63, %v6459_v1 }
 0x4ec   :  { %3431 = vmatpush.bf16.msra.mxu2 %v6498_v16  ;;  %3457 = vmatpush.bf16.msrb.mxu3 %v6502_v41  ;;  %v10521_v15 = vld [vmem:[#allocation2 + $0x188] sm:$0xff]  ;;  %v7550_v19 = vld [vmem:[#allocation2 + $0x2c] sm:$0xf0]  ;;  %v7568_v12 = vld [vmem:[#allocation2 + $0xc4] sm:$0xf]  ;;  %v6410_v23 = vor.u32 %v7563_v8, %v6409_v3  ;;  %s7871_s11 = smov [#allocation5]  }
 0x4ed   :  { %3416 = vmatpush.bf16.msra.mxu1 %v6402_v44  ;;  %v6435_v21 = vld [vmem:[#allocation2 + $0xd0] sm:$0xf0]  ;;  %v7569_v22 = vld [vmem:[#allocation2 + $0xcc] sm:$0xf]  ;;  %v6443_v48 = vld [vmem:[#allocation2 + $0xd8] sm:$0xf0]  ;;  %v3296_v25 = vunpack.c.l.b16 %v10521_v15  ;;  %v6354_v34 = vor.u32 %v7550_v19, %v6353_v18 }
 0x4ee   :  { %3467 = vmatpush.bf16.msrb.mxu0 %v6426_v11  ;;  %v6393_v26 = vld [vmem:[#allocation2 + $0x68] sm:$0xf]  ;;  %v7559_v27 = vld [vmem:[#allocation2 + $0x74] sm:$0xf0]  ;;  %v6438_v28 = vor.u32 %v7568_v12, %v6435_v21  ;;  %v6337_v29 = vld [vmem:[#allocation2] sm:$0xf]  ;;  %v6446_v4 = vor.u32 %v7569_v22, %v6443_v48 }
 0x4ef   :  { %v7546_v30 = vld [vmem:[#allocation2 + $0xc] sm:$0xf0]  ;;  %v7564_v31 = vld [vmem:[#allocation2 + $0xa4] sm:$0xf]  ;;  %v6419_v32 = vld [vmem:[#allocation2 + $0xb0] sm:$0xf0]  ;;  %v6394_v33 = vor.u32 %v7559_v27, %v6393_v26  ;;  %v3348_v35 = vpack.c.b16 %v3296_v25, %v3296_v25 }
 0x4f0   :  { %3432 = vmatpush.bf16.msra.mxu2 %v6482_v36  ;;  %3458 = vmatpush.bf16.msrb.mxu3 %v6486_v57  ;;  %v7565_v2 = vld [vmem:[#allocation2 + $0xac] sm:$0xf]  ;;  %v6427_v47 = vld [vmem:[#allocation2 + $0xb8] sm:$0xf0]  ;;  %v6377_v37 = vld [vmem:[#allocation2 + $0x48] sm:$0xf]  ;;  %v6338_v45 = vor.u32 %v7546_v30, %v6337_v29  ;;  %v6422_v39 = vor.u32 %v7564_v31, %v6419_v32 }
 0x4f1   :  { %3417 = vmatpush.bf16.msra.mxu1 %v6386_v59  ;;  %v7555_v38 = vld [vmem:[#allocation2 + $0x54] sm:$0xf0]  ;;  %v7560_v40 = vld [vmem:[#allocation2 + $0x84] sm:$0xf]  ;;  %v6430_v16 = vor.u32 %v7565_v2, %v6427_v47  ;;  %v6403_v41 = vld [vmem:[#allocation2 + $0x90] sm:$0xf0] }
 0x4f2   :  { %3468 = vmatpush.bf16.msrb.mxu0 %v6410_v23  ;;  %v7561_v42 = vld [vmem:[#allocation2 + $0x8c] sm:$0xf]  ;;  %v6411_v43 = vld [vmem:[#allocation2 + $0x98] sm:$0xf0]  ;;  %v3408_v0 = vsel %vm2824_vm1, %v3348_v35, 0  ;;  %v6378_v49 = vor.u32 %v7555_v38, %v6377_v37  ;;  %v6406_v54 = vor.u32 %v7560_v40, %v6403_v41  ;;  %s5066_s30 = sshll.u32 %s7871_s11, 4  ;;  %s5067_s30 = int_to_ptr.vmem [resolvable:$true] %s5066_s30 }
 0x4f3   :  { %v6521_v44 = vld [vmem:[#allocation2 + $0x168] sm:$0xf]  ;;  %v7591_v46 = vld [vmem:[#allocation2 + $0x174] sm:$0xf0]  ;;  %v6414_v55 = vor.u32 %v7561_v42, %v6411_v43  ;;  %v7556_v36 = vld [vmem:[#allocation2 + $0x64] sm:$0xf] }
 0x4f4   :  { %3433 = vmatpush.bf16.msra.mxu2 %v6466_v9  ;;  %3459 = vmatpush.bf16.msrb.mxu3 %v6470_v10  ;;  %v6361_v51 = vld [vmem:[#allocation2 + $0x28] sm:$0xf]  ;;  %v7551_v52 = vld [vmem:[#allocation2 + $0x34] sm:$0xf0]  ;;  %v6522_v56 = vor.u32 %v7591_v46, %v6521_v44  ;;  %v6387_v57 = vld [vmem:[#allocation2 + $0x70] sm:$0xf0] }
 0x4f5   :  { %3418 = vmatpush.bf16.msra.mxu1 %v6370_v17  ;;  %v7557_v53 = vld [vmem:[#allocation2 + $0x6c] sm:$0xf]  ;;  %v6395_v58 = vld [vmem:[#allocation2 + $0x78] sm:$0xf0]  ;;  %v6505_v6 = vld [vmem:[#allocation2 + $0x148] sm:$0xf]  ;;  %v6362_v13 = vor.u32 %v7551_v52, %v6361_v51  ;;  %v6390_v5 = vor.u32 %v7556_v36, %v6387_v57  ;;  %v3297_v17 = vunpack.c.h.b16 %v10521_v15 }
 0x4f6   :  { %3469 = vmatpush.bf16.msrb.mxu0 %v6394_v33  ;;  %v7587_v59 = vld [vmem:[#allocation2 + $0x154] sm:$0xf0]  ;;  %v6345_v7 = vld [vmem:[#allocation2 + $0x8] sm:$0xf]  ;;  %v6398_v11 = vor.u32 %v7557_v53, %v6395_v58  ;;  %v7552_v62 = vld [vmem:[#allocation2 + $0x44] sm:$0xf] }
 0x4f7   :  { %6527 = vmatmul.msk.bf16.vlgmr.msra.gmra.mxu2 %vm2820_vm2, %v10525_v24  ;;  %6528 = vmatmul.msk.bf16.vlgmr.msrb.gmra.mxu3 %vm2820_vm2, %v10525_v24  ;;  %v7547_v60 = vld [vmem:[#allocation2 + $0x14] sm:$0xf0]  ;;  %v6506_v61 = vor.u32 %v7587_v59, %v6505_v6  ;;  %v6371_v63 = vld [vmem:[#allocation2 + $0x50] sm:$0xf0]  ;;  %v7553_v1 = vld [vmem:[#allocation2 + $0x4c] sm:$0xf]  ;;  %v3349_v25 = vpack.c.b16 %v3297_v17, %v3297_v17 }
 0x4f8   :  { %3439 = vmatpush.bf16.msrb.mxu2 %v6454_v14  ;;  %3491 = vmatpush.bf16.msra.mxu3 %v6462_v20  ;;  %v6379_v3 = vld [vmem:[#allocation2 + $0x58] sm:$0xf0]  ;;  %v6489_v8 = vld [vmem:[#allocation2 + $0x128] sm:$0xf]  ;;  %v7583_v9 = vld [vmem:[#allocation2 + $0x134] sm:$0xf0]  ;;  %v6346_v10 = vor.u32 %v7547_v60, %v6345_v7  ;;  %v6374_v14 = vor.u32 %v7552_v62, %v6371_v63 }
 0x4f9   :  { %3419 = vmatpush.bf16.msra.mxu1 %v6354_v34  ;;  %v6382_v18 = vor.u32 %v7553_v1, %v6379_v3  ;;  %v6490_v19 = vor.u32 %v7583_v9, %v6489_v8  ;;  %v7548_v20 = vld [vmem:[#allocation2 + $0x24] sm:$0xf]  ;;  %v6355_v12 = vld [vmem:[#allocation2 + $0x30] sm:$0xf0]  ;;  %v7549_v21 = vld [vmem:[#allocation2 + $0x2c] sm:$0xf] }
 0x4fa   :  { %3470 = vmatpush.bf16.msrb.mxu0 %v6378_v49  ;;  %v6363_v22 = vld [vmem:[#allocation2 + $0x38] sm:$0xf0]  ;;  %v6473_v23 = vld [vmem:[#allocation2 + $0x108] sm:$0xf]  ;;  %v7579_v48 = vld [vmem:[#allocation2 + $0x114] sm:$0xf0]  ;;  %v6358_v26 = vor.u32 %v7548_v20, %v6355_v12 }
 0x4fb   :  { %v6366_v27 = vor.u32 %v7549_v21, %v6363_v22  ;;  %v6474_v15 = vor.u32 %v7579_v48, %v6473_v23  ;;  %v7544_v34 = vld [vmem:[#allocation2 + $0x4] sm:$0xf]  ;;  %v7545_v29 = vld [vmem:[#allocation2 + $0xc] sm:$0xf]  ;;  %v6729_v30 = vld [vmem:[#allocation3 + $0x188] sm:$0xf] }
 0x4fc   :  { %3440 = vmatpush.bf16.msrb.mxu2 %v6438_v28  ;;  %3492 = vmatpush.bf16.msra.mxu3 %v6446_v4  ;;  %v6339_v28 = vld [vmem:[#allocation2 + $0x10] sm:$0xf0]  ;;  %v6347_v4 = vld [vmem:[#allocation2 + $0x18] sm:$0xf0]  ;;  %v3411_v32 = vsel %vm2824_vm1, %v3349_v25, 0  ;;  %s5068_s13 = sshll.u32 %s10630_s10, 4  ;;  %s5069_s13 = int_to_ptr.hbm [resolvable:$true] %s5068_s13 }
 0x4fd   :  { %3420 = vmatpush.bf16.msra.mxu1 %v6338_v45  ;;  %v7644_v31 = vld [vmem:[#allocation3 + $0x1a0] sm:$0xf0]  ;;  %v7589_v33 = vld [vmem:[#allocation2 + $0x16c] sm:$0xf]  ;;  %v6523_v2 = vld [vmem:[#allocation2 + $0x178] sm:$0xf0]  ;;  %v6342_v47 = vor.u32 %v7544_v34, %v6339_v28  ;;  %v6350_v35 = vor.u32 %v7545_v29, %v6347_v4 }
 0x4fe   :  { %3471 = vmatpush.bf16.msrb.mxu0 %v6362_v13  ;;  %v6730_v37 = vor.u32 %v7644_v31, %v6729_v30  ;;  %v6526_v38 = vor.u32 %v7589_v33, %v6523_v2  ;;  %v6701_v45 = vld [vmem:[#allocation3 + $0x150] sm:$0xf]  ;;  %v7585_v40 = vld [vmem:[#allocation2 + $0x14c] sm:$0xf]  ;;  %v6673_v43 = vld [vmem:[#allocation3 + $0x118] sm:$0xf] }
 0x4ff   :  { %v7581_v44 = vld [vmem:[#allocation2 + $0x12c] sm:$0xf]  ;;  %v6491_v46 = vld [vmem:[#allocation2 + $0x138] sm:$0xf0]  ;;  %v6645_v52 = vld [vmem:[#allocation3 + $0xe0] sm:$0xf] }
 0x500   :  { %3441 = vmatpush.bf16.msrb.mxu2 %v6422_v39  ;;  %3493 = vmatpush.bf16.msra.mxu3 %v6430_v16  ;;  %v7637_v39 = vld [vmem:[#allocation3 + $0x168] sm:$0xf0]  ;;  %v6494_v51 = vor.u32 %v7581_v44, %v6491_v46  ;;  %v6617_v53 = vld [vmem:[#allocation3 + $0xa8] sm:$0xf]  ;;  %v7616_v58 = vld [vmem:[#allocation3 + $0xc0] sm:$0xf0] }
 0x501   :  { %3481 = vmatpush.bf16.msrb.mxu1 %v3408_v0  ;;  %v6507_v16 = vld [vmem:[#allocation2 + $0x158] sm:$0xf0]  ;;  %v6702_v41 = vor.u32 %v7637_v39, %v6701_v45  ;;  %v7630_v0 = vld [vmem:[#allocation3 + $0x130] sm:$0xf0]  ;;  %v6618_v6 = vor.u32 %v7616_v58, %v6617_v53  ;;  %v6589_v59 = vld [vmem:[#allocation3 + $0x70] sm:$0xf] }
 0x502   :  { %3421 = vmatmul.bf16.vlgmr.msra.gmra.mxu1 %v10535_v50  ;;  %3472 = vmatpush.bf16.msrb.mxu0 %v6346_v10  ;;  %v6510_v42 = vor.u32 %v7585_v40, %v6507_v16  ;;  %v6674_v49 = vor.u32 %v7630_v0, %v6673_v43  ;;  %v7609_v13 = vld [vmem:[#allocation3 + $0x88] sm:$0xf0]  ;;  %v6561_v7 = vld [vmem:[#allocation3 + $0x38] sm:$0xf]  ;;  %v7602_v60 = vld [vmem:[#allocation3 + $0x50] sm:$0xf0] }
 0x503   :  { %v7641_v62 = vld [vmem:[#allocation3 + $0x18c] sm:$0xf]  ;;  %v6731_v63 = vld [vmem:[#allocation3 + $0x1a4] sm:$0xf0]  ;;  %v7634_v8 = vld [vmem:[#allocation3 + $0x154] sm:$0xf] }
 0x504   :  { %3442 = vmatpush.bf16.msrb.mxu2 %v6406_v54  ;;  %3494 = vmatpush.bf16.msra.mxu3 %v6414_v55  ;;  %v7623_v54 = vld [vmem:[#allocation3 + $0xf8] sm:$0xf0]  ;;  %v6734_v3 = vor.u32 %v7641_v62, %v6731_v63  ;;  %v6703_v9 = vld [vmem:[#allocation3 + $0x16c] sm:$0xf0]  ;;  %v6675_v17 = vld [vmem:[#allocation3 + $0x134] sm:$0xf0] }
 0x505   :  { %3482 = vmatpush.bf16.msrb.mxu1 %v6522_v56  ;;  %3473 = vmatmul.bf16.vlgmr.msrb.gmra.mxu0 %v10535_v50  ;;  %v7577_v55 = vld [vmem:[#allocation2 + $0x10c] sm:$0xf]  ;;  %v6475_v56 = vld [vmem:[#allocation2 + $0x118] sm:$0xf0]  ;;  %v6646_v36 = vor.u32 %v7623_v54, %v6645_v52  ;;  %v6706_v10 = vor.u32 %v7634_v8, %v6703_v9  ;;  %v7177_v12 = vld [vmem:[#allocation3 + $0x508] sm:$0xf] }
 0x506   :  { %v6478_v57 = vor.u32 %v7577_v55, %v6475_v56  ;;  %v7756_v21 = vld [vmem:[#allocation3 + $0x520] sm:$0xf0]  ;;  %v6647_v48 = vld [vmem:[#allocation3 + $0xfc] sm:$0xf0]  ;;  %v7149_v34 = vld [vmem:[#allocation3 + $0x4d0] sm:$0xf] }
 0x507   :  { %v7620_v22 = vld [vmem:[#allocation3 + $0xe4] sm:$0xf]  ;;  %v7178_v23 = vor.u32 %v7756_v21, %v7177_v12  ;;  %v7749_v28 = vld [vmem:[#allocation3 + $0x4e8] sm:$0xf0]  ;;  %v6619_v30 = vld [vmem:[#allocation3 + $0xc4] sm:$0xf0] }
 0x508   :  { %3443 = vmatpush.bf16.msrb.mxu2 %v6390_v5  ;;  %3495 = vmatpush.bf16.msra.mxu3 %v6398_v11  ;;  %v6562_v5 = vor.u32 %v7602_v60, %v6561_v7  ;;  %v6533_v11 = vld [vmem:[#allocation3] sm:$0xf]  ;;  %v6650_v25 = vor.u32 %v7620_v22, %v6647_v48  ;;  %v7613_v29 = vld [vmem:[#allocation3 + $0xac] sm:$0xf]  ;;  %v7150_v4 = vor.u32 %v7749_v28, %v7149_v34  ;;  %v7686_v33 = vld [vmem:[#allocation3 + $0x2f0] sm:$0xf0] }
 0x509   :  { %3483 = vmatpush.bf16.msrb.mxu1 %v6506_v61  ;;  %v7595_v61 = vld [vmem:[#allocation3 + $0x18] sm:$0xf0]  ;;  %v6622_v31 = vor.u32 %v7613_v29, %v6619_v30  ;;  %v6591_v45 = vld [vmem:[#allocation3 + $0x8c] sm:$0xf0]  ;;  %v6869_v40 = vld [vmem:[#allocation3 + $0x2a0] sm:$0xf] }
 0x50a   :  { %v6534_v1 = vor.u32 %v7595_v61, %v6533_v11  ;;  %v7679_v16 = vld [vmem:[#allocation3 + $0x2b8] sm:$0xf0]  ;;  %v6563_v46 = vld [vmem:[#allocation3 + $0x54] sm:$0xf0]  ;;  %v7672_v52 = vld [vmem:[#allocation3 + $0x280] sm:$0xf0] }
 0x50b   :  { %v7735_v43 = vld [vmem:[#allocation3 + $0x478] sm:$0xf0]  ;;  %v7065_v55 = vld [vmem:[#allocation3 + $0x428] sm:$0xf]  ;;  %v7728_v56 = vld [vmem:[#allocation3 + $0x440] sm:$0xf0] }
 0x50c   :  { %3444 = vmatpush.bf16.msrb.mxu2 %v6374_v14  ;;  %3496 = vmatpush.bf16.msra.mxu3 %v6382_v18  ;;  %v6953_v18 = vld [vmem:[#allocation3 + $0x348] sm:$0xf]  ;;  %v7599_v44 = vld [vmem:[#allocation3 + $0x3c] sm:$0xf]  ;;  %v6535_v53 = vld [vmem:[#allocation3 + $0x1c] sm:$0xf0] }
 0x50d   :  { %3484 = vmatpush.bf16.msrb.mxu1 %v6490_v19  ;;  %v7700_v19 = vld [vmem:[#allocation3 + $0x360] sm:$0xf0]  ;;  %v7763_v7 = vld [vmem:[#allocation3 + $0x558] sm:$0xf0]  ;;  %v7721_v11 = vld [vmem:[#allocation3 + $0x408] sm:$0xf0] }
 0x50e   :  { %v6954_v20 = vor.u32 %v7700_v19, %v6953_v18  ;;  %v7697_v61 = vld [vmem:[#allocation3 + $0x34c] sm:$0xf]  ;;  %v6955_v63 = vld [vmem:[#allocation3 + $0x364] sm:$0xf0]  ;;  %v7658_v8 = vld [vmem:[#allocation3 + $0x210] sm:$0xf0] }
 0x50f   :  { %v10550_v9 = vld [vmem:[%s10622_s2 + $0xb] sm:$0xf]  ;;  %v6927_v19 = vld [vmem:[#allocation3 + $0x32c] sm:$0xf0]  ;;  %v6981_v34 = vld [vmem:[#allocation3 + $0x380] sm:$0xf] }
 0x510   :  { %3445 = vmatpush.bf16.msrb.mxu2 %v6358_v26  ;;  %3497 = vmatpush.bf16.msra.mxu3 %v6366_v27  ;;  %v6925_v26 = vld [vmem:[#allocation3 + $0x310] sm:$0xf]  ;;  %v7693_v27 = vld [vmem:[#allocation3 + $0x328] sm:$0xf0]  ;;  %v7651_v48 = vld [vmem:[#allocation3 + $0x1d8] sm:$0xf0] }
 0x511   :  { %3485 = vmatpush.bf16.msrb.mxu1 %v6474_v15  ;;  %4673 = vmatpush.bf16.msra.mxu0 %v6954_v20  ;;  %v6926_v15 = vor.u32 %v7693_v27, %v6925_v26  ;;  %v3140_v20 = vperm.slane %v10550_v9, 0  ;;  %v7753_v26 = vld [vmem:[#allocation3 + $0x50c] sm:$0xf]  ;;  %v7179_v27 = vld [vmem:[#allocation3 + $0x524] sm:$0xf0] }
 0x512   :  { %v7707_v28 = vld [vmem:[#allocation3 + $0x398] sm:$0xf0] }
 0x513   :  { %v7683_v29 = vld [vmem:[#allocation3 + $0x2dc] sm:$0xf]  ;;  %v6982_v30 = vor.u32 %v7707_v28, %v6981_v34  ;;  %v3141_v28 = vperm.slane %v10550_v9, 1 }
 0x514   :  { %3446 = vmatpush.bf16.msrb.mxu2 %v6342_v47  ;;  %6529 = vmatmul.msk.bf16.vlgmr.msrb.gmra.mxu1 %vm2820_vm2, %v10525_v24  ;;  %v7121_v47 = vld [vmem:[#allocation3 + $0x498] sm:$0xf] }
 0x515   :  { %3507 = vmatpush.bf16.msra.mxu1 %v3411_v32  ;;  %3498 = vmatpush.bf16.msra.mxu3 %v6350_v35  ;;  %v6897_v32 = vld [vmem:[#allocation3 + $0x2d8] sm:$0xf]  ;;  %v7742_v35 = vld [vmem:[#allocation3 + $0x4b0] sm:$0xf0] }
 0x516   :  { %4674 = vmatpush.bf16.msra.mxu0 %v6926_v15  ;;  %v6898_v2 = vor.u32 %v7686_v33, %v6897_v32  ;;  %v7182_v15 = vor.u32 %v7753_v26, %v7179_v27  ;;  %v6709_v27 = vld [vmem:[#allocation3 + $0x158] sm:$0xf] }
 0x517   :  { %3447 = vmatmul.bf16.vlgmr.msrb.gmra.mxu2 %v10535_v50 }
 0x518   :  { %4660 = vmatpush.bf16.msra.mxu2 %v6730_v37  ;;  %3499 = vmatmul.bf16.vlgmr.msra.gmra.mxu3 %v10535_v50  ;;  %v6590_v50 = vor.u32 %v7609_v13, %v6589_v59  ;;  %v7606_v37 = vld [vmem:[#allocation3 + $0x74] sm:$0xf]  ;;  %v7665_v59 = vld [vmem:[#allocation3 + $0x248] sm:$0xf0] }
 0x519   :  { %3508 = vmatpush.bf16.msra.mxu1 %v6526_v38  ;;  %v7122_v38 = vor.u32 %v7742_v35, %v7121_v47  ;;  %v6594_v39 = vor.u32 %v7606_v37, %v6591_v45  ;;  %v7151_v47 = vld [vmem:[#allocation3 + $0x4ec] sm:$0xf0]  ;;  %v7760_v35 = vld [vmem:[#allocation3 + $0x544] sm:$0xf]  ;;  %v7207_v45 = vld [vmem:[#allocation3 + $0x55c] sm:$0xf0] }
 0x51a   :  { %4675 = vmatpush.bf16.msra.mxu0 %v6898_v2  ;;  %v7746_v2 = vld [vmem:[#allocation3 + $0x4d4] sm:$0xf] }
 0x51c   :  { %4661 = vmatpush.bf16.msra.mxu2 %v6702_v41  ;;  %v6870_v41 = vor.u32 %v7679_v16, %v6869_v40  ;;  %v6871_v40 = vld [vmem:[#allocation3 + $0x2bc] sm:$0xf0]  ;;  %v7210_v16 = vor.u32 %v7760_v35, %v7207_v45 }
 0x51d   :  { %3509 = vmatpush.bf16.msra.mxu1 %v6510_v42  ;;  %v7093_v42 = vld [vmem:[#allocation3 + $0x460] sm:$0xf] }
 0x51e   :  { %4676 = vmatpush.bf16.msra.mxu0 %v6870_v41  ;;  %v7094_v0 = vor.u32 %v7735_v43, %v7093_v42 }
 0x520   :  { %4662 = vmatpush.bf16.msra.mxu2 %v6674_v49  ;;  %v6566_v49 = vor.u32 %v7599_v44, %v6563_v46  ;;  %v7739_v44 = vld [vmem:[#allocation3 + $0x49c] sm:$0xf]  ;;  %v7123_v46 = vld [vmem:[#allocation3 + $0x4b4] sm:$0xf0] }
 0x521   :  { %3510 = vmatpush.bf16.msra.mxu1 %v6494_v51  ;;  %v6841_v51 = vld [vmem:[#allocation3 + $0x268] sm:$0xf] }
 0x522   :  { %v6842_v54 = vor.u32 %v7672_v52, %v6841_v51  ;;  %v7669_v51 = vld [vmem:[#allocation3 + $0x26c] sm:$0xf]  ;;  %v6843_v52 = vld [vmem:[#allocation3 + $0x284] sm:$0xf0] }
 0x524   :  { %4663 = vmatpush.bf16.msra.mxu2 %v6646_v36  ;;  %v7592_v36 = vld [vmem:[#allocation3 + $0x4] sm:$0xf]  ;;  %4677 = vmatpush.bf16.msra.mxu0 %v6842_v54 }
 0x525   :  { %3511 = vmatpush.bf16.msra.mxu1 %v6478_v57  ;;  %v7066_v57 = vor.u32 %v7728_v56, %v7065_v55  ;;  %v6538_v58 = vor.u32 %v7592_v36, %v6535_v53  ;;  %v6846_v55 = vor.u32 %v7669_v51, %v6843_v52  ;;  %v3142_v56 = vperm.slane %v10550_v9, 2  ;;  %v7732_v36 = vld [vmem:[#allocation3 + $0x464] sm:$0xf] }
 0x528   :  { %6530 = vmatmul.msk.bf16.vlgmr.msra.gmra.mxu1 %vm2820_vm2, %v10525_v24  ;;  %4664 = vmatpush.bf16.msra.mxu2 %v6618_v6  ;;  %v7627_v24 = vld [vmem:[#allocation3 + $0x11c] sm:$0xf]  ;;  %v6813_v6 = vld [vmem:[#allocation3 + $0x230] sm:$0xf] }
 0x529   :  { %v6678_v14 = vor.u32 %v7627_v24, %v6675_v17  ;;  %4686 = vmatpush.bf16.msrb.mxu1 %v7178_v23  ;;  %v6814_v13 = vor.u32 %v7665_v59, %v6813_v6  ;;  %v7009_v24 = vld [vmem:[#allocation3 + $0x3b8] sm:$0xf]  ;;  %v7714_v17 = vld [vmem:[#allocation3 + $0x3d0] sm:$0xf0]  ;;  %v6757_v23 = vld [vmem:[#allocation3 + $0x1c0] sm:$0xf] }
 0x52a   :  { %v7010_v18 = vor.u32 %v7714_v17, %v7009_v24  ;;  %v7662_v6 = vld [vmem:[#allocation3 + $0x234] sm:$0xf]  ;;  %v6815_v59 = vld [vmem:[#allocation3 + $0x24c] sm:$0xf0] }
 0x52b   :  { %4678 = vmatpush.bf16.msra.mxu0 %v6814_v13  ;;  %v6818_v13 = vor.u32 %v7662_v6, %v6815_v59 }
 0x52c   :  { %4665 = vmatpush.bf16.msra.mxu2 %v6590_v50  ;;  %v7205_v50 = vld [vmem:[#allocation3 + $0x540] sm:$0xf] }
 0x52d   :  { %4687 = vmatpush.bf16.msrb.mxu1 %v7150_v4  ;;  %v7206_v60 = vor.u32 %v7763_v7, %v7205_v50 }
 0x52f   :  { %4706 = vmatpush.bf16.msrb.mxu3 %v7206_v60 }
 0x530   :  { %4666 = vmatpush.bf16.msra.mxu2 %v6562_v5  ;;  %v7037_v5 = vld [vmem:[#allocation3 + $0x3f0] sm:$0xf] }
 0x531   :  { %4688 = vmatpush.bf16.msrb.mxu1 %v7122_v38  ;;  %v7038_v62 = vor.u32 %v7721_v11, %v7037_v5  ;;  %v7154_v38 = vor.u32 %v7746_v2, %v7151_v47  ;;  %v7725_v5 = vld [vmem:[#allocation3 + $0x42c] sm:$0xf]  ;;  %v7067_v11 = vld [vmem:[#allocation3 + $0x444] sm:$0xf0] }
 0x534   :  { %4667 = vmatpush.bf16.msra.mxu2 %v6534_v1  ;;  %v6958_v1 = vor.u32 %v7697_v61, %v6955_v63  ;;  %v7070_v61 = vor.u32 %v7725_v5, %v7067_v11  ;;  %v6787_v63 = vld [vmem:[#allocation3 + $0x214] sm:$0xf0]  ;;  %v7610_v5 = vld [vmem:[#allocation3 + $0x90] sm:$0xf0] }
 0x535   :  { %4689 = vmatpush.bf16.msrb.mxu1 %v7094_v0 }
 0x536   :  { %4725 = vmatpush.bf16.msra.mxu3 %v6958_v1 }
 0x538   :  { %4712 = vmatpush.bf16.msrb.mxu2 %v6734_v3  ;;  %v6785_v3 = vld [vmem:[#allocation3 + $0x1f8] sm:$0xf] }
 0x539   :  { %4690 = vmatpush.bf16.msrb.mxu1 %v7066_v57  ;;  %v7095_v57 = vld [vmem:[#allocation3 + $0x47c] sm:$0xf0] }
 0x53c   :  { %4713 = vmatpush.bf16.msrb.mxu2 %v6706_v10  ;;  %v6786_v10 = vor.u32 %v7658_v8, %v6785_v3  ;;  %v6737_v3 = vld [vmem:[#allocation3 + $0x190] sm:$0xf]  ;;  %v7645_v8 = vld [vmem:[#allocation3 + $0x1a8] sm:$0xf0] }
 0x53d   :  { %4691 = vmatpush.bf16.msrb.mxu1 %v7038_v62  ;;  %v7655_v62 = vld [vmem:[#allocation3 + $0x1fc] sm:$0xf] }
 0x53e   :  { %4679 = vmatpush.bf16.msra.mxu0 %v6786_v10  ;;  %v6790_v10 = vor.u32 %v7655_v62, %v6787_v63 }
 0x540   :  { %4714 = vmatpush.bf16.msrb.mxu2 %v6678_v14  ;;  %v7690_v14 = vld [vmem:[#allocation3 + $0x314] sm:$0xf] }
 0x541   :  { %v6930_v22 = vor.u32 %v7690_v14, %v6927_v19  ;;  %4692 = vmatpush.bf16.msrb.mxu1 %v7010_v18  ;;  %v7718_v18 = vld [vmem:[#allocation3 + $0x3f4] sm:$0xf]  ;;  %v7039_v19 = vld [vmem:[#allocation3 + $0x40c] sm:$0xf0] }
 0x543   :  { %4726 = vmatpush.bf16.msra.mxu3 %v6930_v22  ;;  %v7042_v22 = vor.u32 %v7718_v18, %v7039_v19  ;;  %v7213_v19 = vld [vmem:[#allocation3 + $0x548] sm:$0xf] }
 0x544   :  { %4715 = vmatpush.bf16.msrb.mxu2 %v6650_v25  ;;  %v6758_v25 = vor.u32 %v7651_v48, %v6757_v23  ;;  %v7648_v23 = vld [vmem:[#allocation3 + $0x1c4] sm:$0xf]  ;;  %v6759_v48 = vld [vmem:[#allocation3 + $0x1dc] sm:$0xf0] }
 0x545   :  { %4693 = vmatpush.bf16.msrb.mxu1 %v6982_v30  ;;  %v6762_v34 = vor.u32 %v7648_v23, %v6759_v48  ;;  %v7011_v30 = vld [vmem:[#allocation3 + $0x3d4] sm:$0xf0]  ;;  %v7680_v23 = vld [vmem:[#allocation3 + $0x2c0] sm:$0xf0] }
 0x546   :  { %4680 = vmatpush.bf16.msra.mxu0 %v6758_v25 }
 0x548   :  { %4716 = vmatpush.bf16.msrb.mxu2 %v6622_v31  ;;  %v6899_v31 = vld [vmem:[#allocation3 + $0x2f4] sm:$0xf0] }
 0x549   :  { %v6902_v33 = vor.u32 %v7683_v29, %v6899_v31  ;;  %4758 = vmatpush.bf16.msra.mxu1 %v7210_v16  ;;  %v6681_v31 = vld [vmem:[#allocation3 + $0x120] sm:$0xf] }
 0x54a   :  { %4738 = vmatpush.bf16.msrb.mxu0 %v7182_v15  ;;  %v7638_v15 = vld [vmem:[#allocation3 + $0x170] sm:$0xf0] }
 0x54b   :  { %4727 = vmatpush.bf16.msra.mxu3 %v6902_v33  ;;  %v6710_v29 = vor.u32 %v7638_v15, %v6709_v27  ;;  %v7596_v27 = vld [vmem:[#allocation3 + $0x20] sm:$0xf0] }
 0x54c   :  { %4717 = vmatpush.bf16.msrb.mxu2 %v6594_v39  ;;  %v7676_v39 = vld [vmem:[#allocation3 + $0x2a4] sm:$0xf] }
 0x54d   :  { %v6874_v41 = vor.u32 %v7676_v39, %v6871_v40  ;;  %v7704_v39 = vld [vmem:[#allocation3 + $0x384] sm:$0xf]  ;;  %v6983_v40 = vld [vmem:[#allocation3 + $0x39c] sm:$0xf0] }
 0x54e   :  { %4739 = vmatpush.bf16.msrb.mxu0 %v7154_v38 }
 0x54f   :  { %4728 = vmatpush.bf16.msra.mxu3 %v6874_v41  ;;  %v6653_v41 = vld [vmem:[#allocation3 + $0xe8] sm:$0xf] }
 0x550   :  { %4718 = vmatpush.bf16.msrb.mxu2 %v6566_v49  ;;  %v7126_v49 = vor.u32 %v7739_v44, %v7123_v46 }
 0x552   :  { %4740 = vmatpush.bf16.msrb.mxu0 %v7126_v49 }
 0x553   :  { %4729 = vmatpush.bf16.msra.mxu3 %v6846_v55  ;;  %v6625_v55 = vld [vmem:[#allocation3 + $0xb0] sm:$0xf] }
 0x554   :  { %4719 = vmatpush.bf16.msrb.mxu2 %v6538_v58  ;;  %v7098_v58 = vor.u32 %v7732_v36, %v7095_v57 }
 0x556   :  { %4741 = vmatpush.bf16.msrb.mxu0 %v7098_v58 }
 0x557   :  { %4730 = vmatpush.bf16.msra.mxu3 %v6818_v13 }
 0x55a   :  { %4742 = vmatpush.bf16.msrb.mxu0 %v7070_v61 }
 0x55b   :  { %4731 = vmatpush.bf16.msra.mxu3 %v6790_v10  ;;  %v6569_v10 = vld [vmem:[#allocation3 + $0x40] sm:$0xf] }
 0x55e   :  { %4743 = vmatpush.bf16.msrb.mxu0 %v7042_v22  ;;  %v6877_v22 = vld [vmem:[#allocation3 + $0x2a8] sm:$0xf] }
 0x55f   :  { %4732 = vmatpush.bf16.msra.mxu3 %v6762_v34  ;;  %v7698_v34 = vld [vmem:[#allocation3 + $0x354] sm:$0xf] }
 0x57a   :  { %v3435_v12 = vpop.f32.mrf.mxu2  ;;  %v10553_v21 = vpop.f32.mrf.mxu3 }
 0x57f   :  { %v3422_v4 = vpop.f32.mrf.mxu1 }
 0x580   :  { %v3423_v32 = vadd.f32 %v3422_v4, %v3140_v20  ;;  %v6738_v20 = vor.u32 %v7645_v8, %v6737_v3  ;;  %v7711_v4 = vld [vmem:[#allocation3 + $0x3bc] sm:$0xf] }
 0x581   :  { %v7014_v33 = vor.u32 %v7711_v4, %v7011_v30  ;;  %v7687_v3 = vld [vmem:[#allocation3 + $0x2f8] sm:$0xf0] }
 0x582   :  { %v3436_v37 = vadd.f32 %v3435_v12, %v3423_v32  ;;  %v3463_v43 = vpop.f32.mrf.mxu3  ;;  %v3437_v0 = vpop.f32.mrf.mxu2  ;;  %v7631_v32 = vld [vmem:[#allocation3 + $0x138] sm:$0xf0] }
 0x583   :  { %v3474_v53 = vpop.f32.mrf.mxu0  ;;  %4744 = vmatpush.bf16.msrb.mxu0 %v7014_v33  ;;  %v6682_v45 = vor.u32 %v7631_v32, %v6681_v31  ;;  %v6986_v43 = vor.u32 %v7704_v39, %v6983_v40  ;;  %v6878_v31 = vor.u32 %v7680_v23, %v6877_v22  ;;  %v6849_v33 = vld [vmem:[#allocation3 + $0x270] sm:$0xf]  ;;  %v6935_v39 = vld [vmem:[#allocation3 + $0x334] sm:$0xf0]  ;;  %v7729_v22 = vld [vmem:[#allocation3 + $0x448] sm:$0xf0] }
 0x584   :  { %v3517_v42 = vmul.f32 0.5, %v3436_v37  ;;  %v3475_v60 = vadd.f32 %v3474_v53, %v3142_v56  ;;  %v7617_v56 = vld [vmem:[#allocation3 + $0xc8] sm:$0xf0]  ;;  %v7747_v23 = vld [vmem:[#allocation3 + $0x4dc] sm:$0xf] }
 0x586   :  { %7792 = vtanh.f32 %v3517_v42  ;;  %v7624_v42 = vld [vmem:[#allocation3 + $0x100] sm:$0xf0] }
 0x587   :  { %v3424_v54 = vpop.f32.mrf.mxu1  ;;  %4745 = vmatpush.bf16.msrb.mxu0 %v6986_v43  ;;  %v6654_v52 = vor.u32 %v7624_v42, %v6653_v41  ;;  %v6821_v41 = vld [vmem:[#allocation3 + $0x238] sm:$0xf]  ;;  %v7666_v42 = vld [vmem:[#allocation3 + $0x250] sm:$0xf0] }
 0x588   :  { %v6961_v54 = vld [vmem:[#allocation3 + $0x350] sm:$0xf] }
 0x58b   :  { %v3476_v12 = vpop.f32.mrf.mxu0 }
 0x58c   :  { %v7793_v50 = vpop.eup %7792 }
 0x58d   :  { %v3525_v7 = vmul.f32 0.5, %v7793_v50  ;;  %v6933_v50 = vld [vmem:[#allocation3 + $0x318] sm:$0xf] }
 0x58f   :  { %v3529_v1 = vadd.f32 0.5, %v3525_v7  ;;  %v7694_v7 = vld [vmem:[#allocation3 + $0x330] sm:$0xf0] }
 0x590   :  { %v6934_v61 = vor.u32 %v7694_v7, %v6933_v50  ;;  %v6739_v50 = vld [vmem:[#allocation3 + $0x1ac] sm:$0xf0]  ;;  %v6765_v7 = vld [vmem:[#allocation3 + $0x1c8] sm:$0xf] }
 0x591   :  { %v3487_v24 = vpop.f32.mrf.mxu1  ;;  %v3533_v17 = vmul.f32 %v3529_v1, %v3436_v37  ;;  %v3143_v37 = vperm.slane %v10550_v9, 3  ;;  %v7701_v9 = vld [vmem:[#allocation3 + $0x368] sm:$0xf0]  ;;  %v6905_v1 = vld [vmem:[#allocation3 + $0x2e0] sm:$0xf] }
 0x592   :  { %v3488_v14 = vadd.f32 %v3487_v24, %v3475_v60  ;;  %v6962_v53 = vor.u32 %v7701_v9, %v6961_v54  ;;  %v6597_v60 = vld [vmem:[#allocation3 + $0x78] sm:$0xf]  ;;  %v7603_v24 = vld [vmem:[#allocation3 + $0x58] sm:$0xf0]  ;;  %v6906_v18 = vor.u32 %v7687_v3, %v6905_v1  ;;  %v6822_v54 = vor.u32 %v7666_v42, %v6821_v41  ;;  %v6793_v9 = vld [vmem:[#allocation3 + $0x200] sm:$0xf] }
 0x593   :  { %v10556_v25 = vpack.c.bf16 %v3533_v17, %v3533_v17  ;;  %v6598_v63 = vor.u32 %v7610_v5, %v6597_v60  ;;  %v6570_v12 = vor.u32 %v7603_v24, %v6569_v10  ;;  %v7652_v60 = vld [vmem:[#allocation3 + $0x1e0] sm:$0xf0]  ;;  %v7670_v3 = vld [vmem:[#allocation3 + $0x274] sm:$0xf]  ;;  %v7017_v41 = vld [vmem:[#allocation3 + $0x3c0] sm:$0xf] }
 0x594   :  { %v3519_v26 = vmul.f32 0.5, %v3488_v14  ;;  %v7736_v1 = vld [vmem:[#allocation3 + $0x480] sm:$0xf0]  ;;  %v6766_v24 = vor.u32 %v7652_v60, %v6765_v7  ;;  %v7607_v60 = vld [vmem:[#allocation3 + $0x7c] sm:$0xf] }
 0x595   :  { %4668 = vmatmul.bf16.vlgmr.msra.gmra.mxu2 %v10556_v25 }
 0x596   :  { %7794 = vtanh.f32 %v3519_v26  ;;  %4764 = vmatpush.bf16.msra.mxu2 %v6738_v20  ;;  %v7764_v20 = vld [vmem:[#allocation3 + $0x560] sm:$0xf0]  ;;  %v6541_v26 = vld [vmem:[#allocation3 + $0x8] sm:$0xf] }
 0x597   :  { %v6542_v32 = vor.u32 %v7596_v27, %v6541_v26  ;;  %v7663_v27 = vld [vmem:[#allocation3 + $0x23c] sm:$0xf] }
 0x599   :  { %v3489_v2 = vpop.f32.mrf.mxu1 }
 0x59a   :  { %v3448_v47 = vpop.f32.mrf.mxu2  ;;  %4765 = vmatpush.bf16.msra.mxu2 %v6710_v29  ;;  %v7214_v29 = vor.u32 %v7764_v20, %v7213_v19  ;;  %v7673_v2 = vld [vmem:[#allocation3 + $0x288] sm:$0xf0] }
 0x59b   :  { %v3449_v35 = vadd.f32 %v3448_v47, %v3141_v28  ;;  %v3500_v38 = vpop.f32.mrf.mxu3  ;;  %v6963_v28 = vld [vmem:[#allocation3 + $0x36c] sm:$0xf0] }
 0x59c   :  { %v7795_v16 = vpop.eup %7794  ;;  %v3501_v51 = vadd.f32 %v3500_v38, %v3143_v37  ;;  %v7185_v37 = vld [vmem:[#allocation3 + $0x510] sm:$0xf]  ;;  %v7757_v38 = vld [vmem:[#allocation3 + $0x528] sm:$0xf0] }
 0x59d   :  { %v3527_v0 = vmul.f32 0.5, %v7795_v16  ;;  %v3462_v44 = vadd.f32 %v10553_v21, %v3449_v35  ;;  %v6626_v21 = vor.u32 %v7617_v56, %v6625_v55  ;;  %v6966_v35 = vor.u32 %v7698_v34, %v6963_v28  ;;  %v7659_v55 = vld [vmem:[#allocation3 + $0x218] sm:$0xf0]  ;;  %v7628_v34 = vld [vmem:[#allocation3 + $0x124] sm:$0xf] }
 0x59e   :  { %4766 = vmatpush.bf16.msra.mxu2 %v6682_v45  ;;  %v7691_v45 = vld [vmem:[#allocation3 + $0x31c] sm:$0xf]  ;;  %v6850_v16 = vor.u32 %v7673_v2, %v6849_v33  ;;  %v6683_v28 = vld [vmem:[#allocation3 + $0x13c] sm:$0xf0]  ;;  %v7722_v33 = vld [vmem:[#allocation3 + $0x410] sm:$0xf0] }
 0x59f   :  { %v3531_v46 = vadd.f32 0.5, %v3527_v0  ;;  %v3518_v49 = vmul.f32 0.5, %v3462_v44  ;;  %v7186_v0 = vor.u32 %v7757_v38, %v7185_v37  ;;  %v7740_v2 = vld [vmem:[#allocation3 + $0x4a4] sm:$0xf]  ;;  %v6795_v38 = vld [vmem:[#allocation3 + $0x21c] sm:$0xf0] }
 0x5a0   :  { %v7656_v37 = vld [vmem:[#allocation3 + $0x204] sm:$0xf] }
 0x5a1   :  { %v3535_v36 = vmul.f32 %v3531_v46, %v3488_v14  ;;  %7796 = vtanh.f32 %v3518_v49  ;;  %v7157_v46 = vld [vmem:[#allocation3 + $0x4d8] sm:$0xf]  ;;  %v7750_v49 = vld [vmem:[#allocation3 + $0x4f0] sm:$0xf0]  ;;  %v6798_v42 = vor.u32 %v7656_v37, %v6795_v38 }
 0x5a2   :  { %v3450_v58 = vpop.f32.mrf.mxu2  ;;  %4767 = vmatpush.bf16.msra.mxu2 %v6654_v52  ;;  %v6907_v52 = vld [vmem:[#allocation3 + $0x2fc] sm:$0xf0]  ;;  %v7158_v56 = vor.u32 %v7750_v49, %v7157_v46  ;;  %v7103_v46 = vld [vmem:[#allocation3 + $0x484] sm:$0xf0]  ;;  %v7702_v37 = vld [vmem:[#allocation3 + $0x370] sm:$0xf0] }
 0x5a3   :  { %v10562_v6 = vpack.c.bf16 %v3535_v36, %v3535_v36  ;;  %v3502_v59 = vpop.f32.mrf.mxu3  ;;  %v7677_v58 = vld [vmem:[#allocation3 + $0x2ac] sm:$0xf] }
 0x5a4   :  { %v6879_v59 = vld [vmem:[#allocation3 + $0x2c4] sm:$0xf0] }
 0x5a5   :  { %v3513_v57 = vpop.f32.mrf.mxu1  ;;  %4694 = vmatmul.bf16.vlgmr.msrb.gmra.mxu1 %v10562_v6  ;;  %4720 = vmatmul.bf16.vlgmr.msrb.gmra.mxu2 %v10556_v25 }
 0x5a6   :  { %v3514_v13 = vadd.f32 %v3513_v57, %v3501_v51  ;;  %4777 = vmatpush.bf16.msrb.mxu1 %v6962_v53  ;;  %4768 = vmatpush.bf16.msra.mxu2 %v6626_v21  ;;  %v7684_v51 = vld [vmem:[#allocation3 + $0x2e4] sm:$0xf]  ;;  %v7129_v57 = vld [vmem:[#allocation3 + $0x4a0] sm:$0xf]  ;;  %v7743_v53 = vld [vmem:[#allocation3 + $0x4b8] sm:$0xf0] }
 0x5a7   :  { %v7797_v62 = vpop.eup %7796  ;;  %v6910_v36 = vor.u32 %v7684_v51, %v6907_v52  ;;  %v7642_v21 = vld [vmem:[#allocation3 + $0x194] sm:$0xf]  ;;  %v7130_v5 = vor.u32 %v7743_v53, %v7129_v57  ;;  %v7649_v51 = vld [vmem:[#allocation3 + $0x1cc] sm:$0xf]  ;;  %v6767_v52 = vld [vmem:[#allocation3 + $0x1e4] sm:$0xf0] }
 0x5a8   :  { %v3520_v11 = vmul.f32 0.5, %v3514_v13  ;;  %v3526_v8 = vmul.f32 0.5, %v7797_v62  ;;  %v7754_v62 = vld [vmem:[#allocation3 + $0x514] sm:$0xf]  ;;  %v6742_v10 = vor.u32 %v7642_v21, %v6739_v50  ;;  %v6989_v53 = vld [vmem:[#allocation3 + $0x388] sm:$0xf] }
 0x5a9   :  { %v7075_v21 = vld [vmem:[#allocation3 + $0x44c] sm:$0xf0] }
 0x5aa   :  { %7798 = vtanh.f32 %v3520_v11  ;;  %v3530_v17 = vadd.f32 0.5, %v3526_v8  ;;  %4778 = vmatpush.bf16.msrb.mxu1 %v6934_v61  ;;  %4769 = vmatpush.bf16.msra.mxu2 %v6598_v63  ;;  %v6882_v11 = vor.u32 %v7677_v58, %v6879_v59  ;;  %v7101_v61 = vld [vmem:[#allocation3 + $0x468] sm:$0xf]  ;;  %v7187_v63 = vld [vmem:[#allocation3 + $0x52c] sm:$0xf0]  ;;  %v6770_v58 = vor.u32 %v7649_v51, %v6767_v52 }
 0x5ab   :  { %v6851_v8 = vld [vmem:[#allocation3 + $0x28c] sm:$0xf0]  ;;  %v7102_v19 = vor.u32 %v7736_v1, %v7101_v61  ;;  %v7708_v59 = vld [vmem:[#allocation3 + $0x3a0] sm:$0xf0]  ;;  %v6599_v61 = vld [vmem:[#allocation3 + $0x94] sm:$0xf0] }
 0x5ac   :  { %v3534_v48 = vmul.f32 %v3530_v17, %v3462_v44  ;;  %v6938_v44 = vor.u32 %v7691_v45, %v6935_v39  ;;  %v7190_v17 = vor.u32 %v7754_v62, %v7187_v63  ;;  %v6854_v20 = vor.u32 %v7670_v3, %v6851_v8  ;;  %v7621_v45 = vld [vmem:[#allocation3 + $0xec] sm:$0xf]  ;;  %v6655_v39 = vld [vmem:[#allocation3 + $0x104] sm:$0xf0]  ;;  %v7165_v62 = vld [vmem:[#allocation3 + $0x4e0] sm:$0xf] }
 0x5ad   :  { %v3515_v14 = vpop.f32.mrf.mxu1  ;;  %v6658_v49 = vor.u32 %v7621_v45, %v6655_v39  ;;  %v7751_v63 = vld [vmem:[#allocation3 + $0x4f8] sm:$0xf0]  ;;  %v6990_v1 = vor.u32 %v7708_v59, %v6989_v53  ;;  %v6689_v45 = vld [vmem:[#allocation3 + $0x128] sm:$0xf]  ;;  %v7632_v39 = vld [vmem:[#allocation3 + $0x140] sm:$0xf0] }
 0x5ae   :  { %v10566_v4 = vpack.c.bf16 %v3534_v48, %v3534_v48  ;;  %4779 = vmatpush.bf16.msrb.mxu1 %v6906_v18  ;;  %4770 = vmatpush.bf16.msra.mxu2 %v6570_v12  ;;  %v7635_v14 = vld [vmem:[#allocation3 + $0x15c] sm:$0xf]  ;;  %v6711_v18 = vld [vmem:[#allocation3 + $0x174] sm:$0xf0]  ;;  %v7073_v12 = vld [vmem:[#allocation3 + $0x430] sm:$0xf]  ;;  %v6690_v52 = vor.u32 %v7632_v39, %v6689_v45 }
 0x5af   :  { %v7159_v48 = vld [vmem:[#allocation3 + $0x4f4] sm:$0xf0]  ;;  %v6714_v26 = vor.u32 %v7635_v14, %v6711_v18  ;;  %v7166_v14 = vor.u32 %v7751_v63, %v7165_v62  ;;  %v7719_v18 = vld [vmem:[#allocation3 + $0x3fc] sm:$0xf]  ;;  %v7765_v51 = vld [vmem:[#allocation3 + $0x568] sm:$0xf0] }
 0x5b0   :  { %v7799_v15 = vpop.eup %7798  ;;  %4681 = vmatmul.bf16.vlgmr.msra.gmra.mxu0 %v10566_v4  ;;  %v6747_v59 = vld [vmem:[#allocation3 + $0x1b4] sm:$0xf0]  ;;  %v7618_v62 = vld [vmem:[#allocation3 + $0xd0] sm:$0xf0]  ;;  %v6753_v39 = vld [vmem:[#allocation3 + $0x1a0] sm:$0xf] }
 0x5b1   :  { %v3528_v30 = vmul.f32 0.5, %v7799_v15  ;;  %4810 = vmatpush.bf16.msra.mxu0 %v7214_v29  ;;  %v6823_v15 = vld [vmem:[#allocation3 + $0x254] sm:$0xf0]  ;;  %v7074_v29 = vor.u32 %v7729_v22, %v7073_v12  ;;  %v6571_v12 = vld [vmem:[#allocation3 + $0x5c] sm:$0xf0] }
 0x5b2   :  { %4780 = vmatpush.bf16.msrb.mxu1 %v6878_v31  ;;  %4771 = vmatpush.bf16.msra.mxu2 %v6542_v32  ;;  %v7045_v31 = vld [vmem:[#allocation3 + $0x3f8] sm:$0xf]  ;;  %v6826_v32 = vor.u32 %v7663_v27, %v6823_v15  ;;  %v7137_v22 = vld [vmem:[#allocation3 + $0x4a8] sm:$0xf]  ;;  %v6717_v27 = vld [vmem:[#allocation3 + $0x160] sm:$0xf] }
 0x5b3   :  { %v3532_v47 = vadd.f32 0.5, %v3528_v30  ;;  %v7162_v30 = vor.u32 %v7747_v23, %v7159_v48  ;;  %v7744_v23 = vld [vmem:[#allocation3 + $0x4c0] sm:$0xf0]  ;;  %v7639_v15 = vld [vmem:[#allocation3 + $0x178] sm:$0xf0] }
 0x5b5   :  { %v3536_v40 = vmul.f32 %v3532_v47, %v3514_v13  ;;  %4772 = vmatmul.bf16.vlgmr.msra.gmra.mxu2 %v10556_v25  ;;  %v6794_v13 = vor.u32 %v7659_v55, %v6793_v9  ;;  %v7131_v47 = vld [vmem:[#allocation3 + $0x4bc] sm:$0xf0]  ;;  %v6627_v9 = vld [vmem:[#allocation3 + $0xcc] sm:$0xf0]  ;;  %v7193_v55 = vld [vmem:[#allocation3 + $0x518] sm:$0xf] }
 0x5b6   :  { %4829 = vmatpush.bf16.msrb.mxu2 %v6966_v35  ;;  %4781 = vmatpush.bf16.msrb.mxu1 %v6850_v16  ;;  %v6686_v35 = vor.u32 %v7628_v34, %v6683_v28  ;;  %v7134_v16 = vor.u32 %v7740_v2, %v7131_v47  ;;  %v7138_v28 = vor.u32 %v7744_v23, %v7137_v22  ;;  %v7737_v2 = vld [vmem:[#allocation3 + $0x488] sm:$0xf0] }
 0x5b7   :  { %v10569_v43 = vpack.c.bf16 %v3536_v40, %v3536_v40  ;;  %v7046_v40 = vor.u32 %v7722_v33, %v7045_v31  ;;  %v7593_v31 = vld [vmem:[#allocation3 + $0xc] sm:$0xf]  ;;  %v7109_v33 = vld [vmem:[#allocation3 + $0x470] sm:$0xf]  ;;  %v6718_v47 = vor.u32 %v7639_v15, %v6717_v27 }
 0x5b8   :  { %v7629_v23 = vld [vmem:[#allocation3 + $0x12c] sm:$0xf]  ;;  %v6997_v27 = vld [vmem:[#allocation3 + $0x390] sm:$0xf] }
 0x5b9   :  { %7231 = vmatmul.msk.bf16.vlgmr.msrb.gmra.mxu3 %vm2596_vm0, %v10569_v43  ;;  %7232 = vmatmul.msk.bf16.vlgmr.msra.gmra.mxu1 %vm2596_vm0, %v10569_v43  ;;  %v7709_v15 = vld [vmem:[#allocation3 + $0x3a8] sm:$0xf0] }
 0x5ba   :  { %4790 = vmatpush.bf16.msrb.mxu3 %v7186_v0  ;;  %4830 = vmatpush.bf16.msrb.mxu2 %v6938_v44  ;;  %v7715_v0 = vld [vmem:[#allocation3 + $0x3d8] sm:$0xf0]  ;;  %v7733_v44 = vld [vmem:[#allocation3 + $0x46c] sm:$0xf] }
 0x5bb   :  { %4782 = vmatpush.bf16.msrb.mxu1 %v6822_v54  ;;  %v7614_v54 = vld [vmem:[#allocation3 + $0xb4] sm:$0xf]  ;;  %v7106_v57 = vor.u32 %v7733_v44, %v7103_v46 }
 0x5bc   :  { %v6630_v50 = vor.u32 %v7614_v54, %v6627_v9  ;;  %v7730_v46 = vld [vmem:[#allocation3 + $0x450] sm:$0xf0]  ;;  %v6941_v54 = vld [vmem:[#allocation3 + $0x320] sm:$0xf]  ;;  %v7695_v9 = vld [vmem:[#allocation3 + $0x338] sm:$0xf0] }
 0x5be   :  { %4791 = vmatpush.bf16.msrb.mxu3 %v7158_v56  ;;  %4831 = vmatpush.bf16.msrb.mxu2 %v6910_v36  ;;  %v7758_v56 = vld [vmem:[#allocation3 + $0x530] sm:$0xf0]  ;;  %v7018_v36 = vor.u32 %v7715_v0, %v7017_v41  ;;  %v7705_v41 = vld [vmem:[#allocation3 + $0x38c] sm:$0xf]  ;;  %v7081_v0 = vld [vmem:[#allocation3 + $0x438] sm:$0xf] }
 0x5bf   :  { %4783 = vmatpush.bf16.msrb.mxu1 %v6794_v13  ;;  %v7726_v13 = vld [vmem:[#allocation3 + $0x434] sm:$0xf]  ;;  %v7194_v7 = vor.u32 %v7758_v56, %v7193_v55  ;;  %v6661_v56 = vld [vmem:[#allocation3 + $0xf0] sm:$0xf] }
 0x5c0   :  { %4746 = vmatmul.bf16.vlgmr.msrb.gmra.mxu0 %v10562_v6  ;;  %v7078_v3 = vor.u32 %v7726_v13, %v7075_v21  ;;  %v6942_v13 = vor.u32 %v7695_v9, %v6941_v54  ;;  %v7053_v21 = vld [vmem:[#allocation3 + $0x400] sm:$0xf]  ;;  %v7699_v54 = vld [vmem:[#allocation3 + $0x35c] sm:$0xf]  ;;  %v6971_v9 = vld [vmem:[#allocation3 + $0x374] sm:$0xf0] }
 0x5c1   :  { %4816 = vmatpush.bf16.msrb.mxu0 %v6742_v10  ;;  %v6745_v10 = vld [vmem:[#allocation3 + $0x198] sm:$0xf] }
 0x5c2   :  { %4792 = vmatpush.bf16.msrb.mxu3 %v7130_v5  ;;  %4832 = vmatpush.bf16.msrb.mxu2 %v6882_v11  ;;  %v7761_v5 = vld [vmem:[#allocation3 + $0x54c] sm:$0xf]  ;;  %v7215_v11 = vld [vmem:[#allocation3 + $0x564] sm:$0xf0] }
 0x5c3   :  { %4784 = vmatpush.bf16.msrb.mxu1 %v6766_v24  ;;  %v7218_v8 = vor.u32 %v7761_v5, %v7215_v11  ;;  %v7646_v24 = vld [vmem:[#allocation3 + $0x1b0] sm:$0xf0]  ;;  %v7688_v5 = vld [vmem:[#allocation3 + $0x300] sm:$0xf0] }
 0x5c4   :  { %v6746_v48 = vor.u32 %v7646_v24, %v6745_v10  ;;  %v7025_v10 = vld [vmem:[#allocation3 + $0x3c8] sm:$0xf]  ;;  %v7716_v24 = vld [vmem:[#allocation3 + $0x3e0] sm:$0xf0] }
 0x5c5   :  { %4817 = vmatpush.bf16.msrb.mxu0 %v6714_v26  ;;  %v7026_v22 = vor.u32 %v7716_v24, %v7025_v10  ;;  %v7601_v10 = vld [vmem:[#allocation3 + $0x4c] sm:$0xf]  ;;  %v7755_v24 = vld [vmem:[#allocation3 + $0x51c] sm:$0xf] }
 0x5c6   :  { %4793 = vmatpush.bf16.msrb.mxu3 %v7102_v19  ;;  %4833 = vmatpush.bf16.msrb.mxu2 %v6854_v20  ;;  %v7047_v19 = vld [vmem:[#allocation3 + $0x414] sm:$0xf0]  ;;  %v7600_v20 = vld [vmem:[#allocation3 + $0x44] sm:$0xf] }
 0x5c7   :  { %4842 = vmatpush.bf16.msra.mxu1 %v7190_v17  ;;  %v6602_v17 = vor.u32 %v7607_v60, %v6599_v61  ;;  %v7050_v26 = vor.u32 %v7719_v18, %v7047_v19  ;;  %v6574_v34 = vor.u32 %v7600_v20, %v6571_v12  ;;  %v6913_v60 = vld [vmem:[#allocation3 + $0x2e8] sm:$0xf]  ;;  %v6633_v61 = vld [vmem:[#allocation3 + $0xb8] sm:$0xf]  ;;  %v7681_v18 = vld [vmem:[#allocation3 + $0x2c8] sm:$0xf0] }
 0x5c8   :  { %v6605_v20 = vld [vmem:[#allocation3 + $0x80] sm:$0xf]  ;;  %v7611_v12 = vld [vmem:[#allocation3 + $0x98] sm:$0xf0] }
 0x5c9   :  { %4733 = vmatmul.bf16.vlgmr.msra.gmra.mxu3 %v10566_v4  ;;  %4785 = vmatmul.bf16.vlgmr.msrb.gmra.mxu1 %v10566_v4 }
 0x5ca   :  { %4794 = vmatpush.bf16.msrb.mxu3 %v7074_v29  ;;  %4834 = vmatpush.bf16.msrb.mxu2 %v6826_v32  ;;  %v7712_v29 = vld [vmem:[#allocation3 + $0x3c4] sm:$0xf]  ;;  %v6543_v32 = vld [vmem:[#allocation3 + $0x24] sm:$0xf0] }
 0x5cb   :  { %4843 = vmatpush.bf16.msra.mxu1 %v7162_v30  ;;  %4818 = vmatpush.bf16.msrb.mxu0 %v6686_v35  ;;  %v7019_v30 = vld [vmem:[#allocation3 + $0x3dc] sm:$0xf0]  ;;  %v6969_v35 = vld [vmem:[#allocation3 + $0x358] sm:$0xf] }
 0x5cc   :  { %v7022_v38 = vor.u32 %v7712_v29, %v7019_v30  ;;  %v6970_v44 = vor.u32 %v7702_v37, %v6969_v35  ;;  %v7674_v29 = vld [vmem:[#allocation3 + $0x290] sm:$0xf0]  ;;  %v6663_v37 = vld [vmem:[#allocation3 + $0x10c] sm:$0xf0] }
 0x5cd   :  { %v7762_v30 = vld [vmem:[#allocation3 + $0x554] sm:$0xf] }
 0x5ce   :  { %4795 = vmatpush.bf16.msrb.mxu3 %v7046_v40  ;;  %4835 = vmatpush.bf16.msrb.mxu2 %v6798_v42  ;;  %v6546_v40 = vor.u32 %v7593_v31, %v6543_v32  ;;  %v6991_v42 = vld [vmem:[#allocation3 + $0x3a4] sm:$0xf0]  ;;  %v7223_v31 = vld [vmem:[#allocation3 + $0x56c] sm:$0xf0]  ;;  %v7622_v35 = vld [vmem:[#allocation3 + $0xf4] sm:$0xf] }
 0x5cf   :  { %4844 = vmatpush.bf16.msra.mxu1 %v7134_v16  ;;  %4819 = vmatpush.bf16.msrb.mxu0 %v6658_v49  ;;  %v7110_v16 = vor.u32 %v7737_v2, %v7109_v33  ;;  %v7221_v49 = vld [vmem:[#allocation3 + $0x550] sm:$0xf]  ;;  %v6994_v55 = vor.u32 %v7705_v41, %v6991_v42  ;;  %v6577_v33 = vld [vmem:[#allocation3 + $0x48] sm:$0xf]  ;;  %v7604_v2 = vld [vmem:[#allocation3 + $0x60] sm:$0xf0]  ;;  %v7226_v45 = vor.u32 %v7762_v30, %v7223_v31 }
 0x5d0   :  { %7233 = vmatmul.msk.bf16.vlgmr.msra.gmra.mxu0 %vm2596_vm0, %v10569_v43  ;;  %v7222_v53 = vor.u32 %v7765_v51, %v7221_v49  ;;  %v6829_v41 = vld [vmem:[#allocation3 + $0x240] sm:$0xf]  ;;  %v7667_v42 = vld [vmem:[#allocation3 + $0x258] sm:$0xf0]  ;;  %v6551_v30 = vld [vmem:[#allocation3 + $0x2c] sm:$0xf0] }
 0x5d1   :  { %v7615_v49 = vld [vmem:[#allocation3 + $0xbc] sm:$0xf]  ;;  %v7678_v31 = vld [vmem:[#allocation3 + $0x2b4] sm:$0xf] }
 0x5d2   :  { %4796 = vmatpush.bf16.msrb.mxu3 %v7018_v36  ;;  %4836 = vmatpush.bf16.msrb.mxu2 %v6770_v58  ;;  %v7625_v36 = vld [vmem:[#allocation3 + $0x108] sm:$0xf0]  ;;  %v7643_v58 = vld [vmem:[#allocation3 + $0x19c] sm:$0xf] }
 0x5d3   :  { %4845 = vmatpush.bf16.msra.mxu1 %v7106_v57  ;;  %4820 = vmatpush.bf16.msrb.mxu0 %v6630_v50  ;;  %v7082_v57 = vor.u32 %v7730_v46, %v7081_v0  ;;  %v7723_v50 = vld [vmem:[#allocation3 + $0x418] sm:$0xf0]  ;;  %v6750_v11 = vor.u32 %v7643_v58, %v6747_v59  ;;  %v6666_v0 = vor.u32 %v7622_v35, %v6663_v37  ;;  %v7597_v46 = vld [vmem:[#allocation3 + $0x28] sm:$0xf0]  ;;  %v7660_v58 = vld [vmem:[#allocation3 + $0x220] sm:$0xf0] }
 0x5d4   :  { %v7054_v63 = vor.u32 %v7723_v50, %v7053_v21  ;;  %v7608_v21 = vld [vmem:[#allocation3 + $0x84] sm:$0xf]  ;;  %v6641_v35 = vld [vmem:[#allocation3 + $0xc0] sm:$0xf]  ;;  %v7619_v37 = vld [vmem:[#allocation3 + $0xd8] sm:$0xf0] }
 0x5d5   :  { %4837 = vmatmul.bf16.vlgmr.msrb.gmra.mxu2 %v10566_v4 }
 0x5d6   :  { %4894 = vmatpush.bf16.msra.mxu2 %v7194_v7  ;;  %4797 = vmatpush.bf16.msrb.mxu3 %v6990_v1  ;;  %v6662_v7 = vor.u32 %v7625_v36, %v6661_v56  ;;  %v7636_v1 = vld [vmem:[#allocation3 + $0x164] sm:$0xf]  ;;  %v6725_v56 = vld [vmem:[#allocation3 + $0x168] sm:$0xf] }
 0x5d7   :  { %4846 = vmatpush.bf16.msra.mxu1 %v7078_v3  ;;  %4821 = vmatpush.bf16.msrb.mxu0 %v6602_v17  ;;  %v6719_v3 = vld [vmem:[#allocation3 + $0x17c] sm:$0xf0]  ;;  %v6634_v17 = vor.u32 %v7618_v62, %v6633_v61  ;;  %v7640_v36 = vld [vmem:[#allocation3 + $0x180] sm:$0xf0]  ;;  %v6697_v61 = vld [vmem:[#allocation3 + $0x130] sm:$0xf] }
 0x5d8   :  { %v6722_v19 = vor.u32 %v7636_v1, %v6719_v3  ;;  %v6726_v50 = vor.u32 %v7640_v36, %v6725_v56  ;;  %v7633_v62 = vld [vmem:[#allocation3 + $0x148] sm:$0xf0]  ;;  %v7664_v36 = vld [vmem:[#allocation3 + $0x244] sm:$0xf] }
 0x5d9   :  { %4798 = vmatmul.bf16.vlgmr.msrb.gmra.mxu3 %v10562_v6  ;;  %v7653_v1 = vld [vmem:[#allocation3 + $0x1e8] sm:$0xf0] }
 0x5da   :  { %4862 = vmatpush.bf16.msra.mxu3 %v7218_v8  ;;  %4895 = vmatpush.bf16.msra.mxu2 %v7166_v14  ;;  %v6914_v8 = vor.u32 %v7688_v5, %v6913_v60  ;;  %v6885_v14 = vld [vmem:[#allocation3 + $0x2b0] sm:$0xf]  ;;  %v7692_v60 = vld [vmem:[#allocation3 + $0x324] sm:$0xf]  ;;  %v6943_v5 = vld [vmem:[#allocation3 + $0x33c] sm:$0xf0] }
 0x5db   :  { %4847 = vmatpush.bf16.msra.mxu1 %v7050_v26  ;;  %4822 = vmatpush.bf16.msrb.mxu0 %v6574_v34  ;;  %v6886_v26 = vor.u32 %v7681_v18, %v6885_v14  ;;  %v6857_v34 = vld [vmem:[#allocation3 + $0x278] sm:$0xf]  ;;  %v6698_v14 = vor.u32 %v7633_v62, %v6697_v61  ;;  %v6579_v18 = vld [vmem:[#allocation3 + $0x64] sm:$0xf0]  ;;  %v7657_v61 = vld [vmem:[#allocation3 + $0x20c] sm:$0xf] }
 0x5dc   :  { %v6803_v62 = vld [vmem:[#allocation3 + $0x224] sm:$0xf0] }
 0x5de   :  { %4868 = vmatpush.bf16.msrb.mxu3 %v6746_v48  ;;  %4896 = vmatpush.bf16.msra.mxu2 %v7138_v28  ;;  %v6691_v48 = vld [vmem:[#allocation3 + $0x144] sm:$0xf0]  ;;  %v6606_v28 = vor.u32 %v7611_v12, %v6605_v20 }
 0x5df   :  { %4848 = vmatpush.bf16.msra.mxu1 %v7022_v38  ;;  %4823 = vmatpush.bf16.msrb.mxu0 %v6546_v40  ;;  %v6694_v32 = vor.u32 %v7629_v23, %v6691_v48  ;;  %v6858_v38 = vor.u32 %v7674_v29, %v6857_v34  ;;  %v7647_v40 = vld [vmem:[#allocation3 + $0x1b8] sm:$0xf0]  ;;  %v6915_v20 = vld [vmem:[#allocation3 + $0x304] sm:$0xf0]  ;;  %v7626_v23 = vld [vmem:[#allocation3 + $0x110] sm:$0xf0] }
 0x5e0   :  { %v6754_v51 = vor.u32 %v7647_v40, %v6753_v39  ;;  %v7748_v34 = vld [vmem:[#allocation3 + $0x4e4] sm:$0xf]  ;;  %v7741_v39 = vld [vmem:[#allocation3 + $0x4ac] sm:$0xf]  ;;  %v7139_v40 = vld [vmem:[#allocation3 + $0x4c4] sm:$0xf0] }
 0x5e2   :  { %4869 = vmatpush.bf16.msrb.mxu3 %v6718_v47  ;;  %4897 = vmatpush.bf16.msra.mxu2 %v7110_v16  ;;  %v6998_v47 = vor.u32 %v7709_v15, %v6997_v27  ;;  %v6578_v16 = vor.u32 %v7604_v2, %v6577_v33  ;;  %v7594_v15 = vld [vmem:[#allocation3 + $0x14] sm:$0xf]  ;;  %v6977_v33 = vld [vmem:[#allocation3 + $0x360] sm:$0xf]  ;;  %v7703_v2 = vld [vmem:[#allocation3 + $0x378] sm:$0xf0] }
 0x5e3   :  { %4881 = vmatpush.bf16.msra.mxu0 %v6970_v44  ;;  %4849 = vmatpush.bf16.msra.mxu1 %v6994_v55  ;;  %v6549_v44 = vld [vmem:[#allocation3 + $0x10] sm:$0xf]  ;;  %v6830_v55 = vor.u32 %v7667_v42, %v6829_v41  ;;  %v7671_v41 = vld [vmem:[#allocation3 + $0x27c] sm:$0xf]  ;;  %v6859_v42 = vld [vmem:[#allocation3 + $0x294] sm:$0xf0] }
 0x5e4   :  { %4824 = vmatmul.bf16.vlgmr.msrb.gmra.mxu0 %v10556_v25 }
 0x5e6   :  { %4870 = vmatpush.bf16.msrb.mxu3 %v6690_v52  ;;  %4898 = vmatpush.bf16.msra.mxu2 %v7082_v57  ;;  %v6635_v52 = vld [vmem:[#allocation3 + $0xd4] sm:$0xf0]  ;;  %v6550_v57 = vor.u32 %v7597_v46, %v6549_v44  ;;  %v6949_v44 = vld [vmem:[#allocation3 + $0x328] sm:$0xf]  ;;  %v7696_v46 = vld [vmem:[#allocation3 + $0x340] sm:$0xf0] }
 0x5e7   :  { %4914 = vmatpush.bf16.msrb.mxu1 %v7222_v53  ;;  %4882 = vmatpush.bf16.msra.mxu0 %v6942_v13  ;;  %v6801_v53 = vld [vmem:[#allocation3 + $0x208] sm:$0xf]  ;;  %v6638_v59 = vor.u32 %v7615_v49, %v6635_v52  ;;  %v6974_v13 = vor.u32 %v7699_v54, %v6971_v9  ;;  %v7142_v49 = vor.u32 %v7741_v39, %v7139_v40  ;;  %v7612_v52 = vld [vmem:[#allocation3 + $0xa0] sm:$0xf0]  ;;  %v7734_v9 = vld [vmem:[#allocation3 + $0x474] sm:$0xf] }
 0x5e8   :  { %4850 = vmatmul.bf16.vlgmr.msra.gmra.mxu1 %v10562_v6  ;;  %v6862_v54 = vor.u32 %v7671_v41, %v6859_v42  ;;  %v6950_v56 = vor.u32 %v7696_v46, %v6949_v44  ;;  %v7229_v39 = vld [vmem:[#allocation3 + $0x558] sm:$0xf]  ;;  %v7766_v40 = vld [vmem:[#allocation3 + $0x570] sm:$0xf0]  ;;  %v6809_v41 = vld [vmem:[#allocation3 + $0x210] sm:$0xf] }
 0x5e9   :  { %7234 = vmatmul.msk.bf16.vlgmr.msra.gmra.mxu3 %vm2596_vm0, %v10569_v43  ;;  %v7661_v42 = vld [vmem:[#allocation3 + $0x228] sm:$0xf0]  ;;  %v7145_v44 = vld [vmem:[#allocation3 + $0x4b0] sm:$0xf] }
 0x5ea   :  { %4871 = vmatpush.bf16.msrb.mxu3 %v6662_v7  ;;  %4899 = vmatpush.bf16.msra.mxu2 %v7054_v63  ;;  %v6607_v7 = vld [vmem:[#allocation3 + $0x9c] sm:$0xf0]  ;;  %v6773_v63 = vld [vmem:[#allocation3 + $0x1d0] sm:$0xf]  ;;  %v7745_v46 = vld [vmem:[#allocation3 + $0x4c8] sm:$0xf0] }
 0x5eb   :  { %4920 = vmatpush.bf16.msra.mxu1 %v6750_v11  ;;  %4883 = vmatpush.bf16.msra.mxu0 %v6914_v8  ;;  %v6802_v11 = vor.u32 %v7660_v58, %v6801_v53  ;;  %v6610_v3 = vor.u32 %v7608_v21, %v6607_v7  ;;  %v6946_v8 = vor.u32 %v7692_v60, %v6943_v5  ;;  %v6921_v58 = vld [vmem:[#allocation3 + $0x2f0] sm:$0xf]  ;;  %v7727_v60 = vld [vmem:[#allocation3 + $0x43c] sm:$0xf]  ;;  %v7083_v5 = vld [vmem:[#allocation3 + $0x454] sm:$0xf0] }
 0x5ec   :  { %v6774_v12 = vor.u32 %v7653_v1, %v6773_v63  ;;  %v6585_v21 = vld [vmem:[#allocation3 + $0x50] sm:$0xf]  ;;  %v6893_v1 = vld [vmem:[#allocation3 + $0x2b8] sm:$0xf] }
 0x5ee   :  { %4872 = vmatpush.bf16.msrb.mxu3 %v6634_v17  ;;  %4900 = vmatpush.bf16.msra.mxu2 %v7026_v22  ;;  %v7195_v17 = vld [vmem:[#allocation3 + $0x534] sm:$0xf0] }
 0x5ef   :  { %4921 = vmatpush.bf16.msra.mxu1 %v6722_v19  ;;  %4884 = vmatpush.bf16.msra.mxu0 %v6886_v26  ;;  %v7685_v19 = vld [vmem:[#allocation3 + $0x2ec] sm:$0xf]  ;;  %v6669_v22 = vld [vmem:[#allocation3 + $0xf8] sm:$0xf]  ;;  %v7198_v48 = vor.u32 %v7755_v24, %v7195_v17  ;;  %v6582_v26 = vor.u32 %v7601_v10, %v6579_v18  ;;  %v7598_v24 = vld [vmem:[#allocation3 + $0x30] sm:$0xf0]  ;;  %v6806_v17 = vor.u32 %v7657_v61, %v6803_v62 }
 0x5f0   :  { %v6918_v27 = vor.u32 %v7685_v19, %v6915_v20  ;;  %v6670_v29 = vor.u32 %v7626_v23, %v6669_v22  ;;  %v6557_v10 = vld [vmem:[#allocation3 + $0x18] sm:$0xf]  ;;  %v7055_v18 = vld [vmem:[#allocation3 + $0x41c] sm:$0xf0]  ;;  %v7650_v20 = vld [vmem:[#allocation3 + $0x1d4] sm:$0xf] }
 0x5f1   :  { %v6558_v22 = vor.u32 %v7598_v24, %v6557_v10  ;;  %v6865_v23 = vld [vmem:[#allocation3 + $0x280] sm:$0xf]  ;;  %v7005_v62 = vld [vmem:[#allocation3 + $0x398] sm:$0xf] }
 0x5f2   :  { %4873 = vmatpush.bf16.msrb.mxu3 %v6606_v28  ;;  %4901 = vmatpush.bf16.msra.mxu2 %v6998_v47  ;;  %v7167_v28 = vld [vmem:[#allocation3 + $0x4fc] sm:$0xf0] }
 0x5f3   :  { %4922 = vmatpush.bf16.msra.mxu1 %v6694_v32  ;;  %4885 = vmatpush.bf16.msra.mxu0 %v6858_v38  ;;  %v6887_v32 = vld [vmem:[#allocation3 + $0x2cc] sm:$0xf0]  ;;  %v7170_v47 = vor.u32 %v7748_v34, %v7167_v28  ;;  %v6554_v38 = vor.u32 %v7594_v15, %v6551_v30  ;;  %v7759_v15 = vld [vmem:[#allocation3 + $0x538] sm:$0xf0]  ;;  %v7713_v28 = vld [vmem:[#allocation3 + $0x3cc] sm:$0xf] }
 0x5f5   :  { %4902 = vmatmul.bf16.vlgmr.msra.gmra.mxu2 %v10562_v6 }
 0x5f6   :  { %4966 = vmatpush.bf16.msrb.mxu2 %v7226_v45  ;;  %4874 = vmatpush.bf16.msrb.mxu3 %v6578_v16  ;;  %v6890_v45 = vor.u32 %v7678_v31, %v6887_v32  ;;  %v6978_v16 = vor.u32 %v7703_v2, %v6977_v33  ;;  %v6837_v32 = vld [vmem:[#allocation3 + $0x248] sm:$0xf]  ;;  %v7668_v33 = vld [vmem:[#allocation3 + $0x260] sm:$0xf0] }
 0x5f7   :  { %4923 = vmatpush.bf16.msra.mxu1 %v6666_v0  ;;  %4886 = vmatpush.bf16.msra.mxu0 %v6830_v55  ;;  %v6642_v0 = vor.u32 %v7619_v37, %v6641_v35  ;;  %v7111_v55 = vld [vmem:[#allocation3 + $0x48c] sm:$0xf0]  ;;  %v7752_v35 = vld [vmem:[#allocation3 + $0x500] sm:$0xf0]  ;;  %v7706_v37 = vld [vmem:[#allocation3 + $0x394] sm:$0xf] }
 0x5f8   :  { %7235 = vmatmul.msk.bf16.vlgmr.msrb.gmra.mxu1 %vm2596_vm0, %v10569_v43 }
 0x5fa   :  { %4972 = vmatpush.bf16.msra.mxu2 %v6754_v51  ;;  %4875 = vmatpush.bf16.msrb.mxu3 %v6550_v57  ;;  %v6613_v51 = vld [vmem:[#allocation3 + $0x88] sm:$0xf]  ;;  %v6831_v57 = vld [vmem:[#allocation3 + $0x25c] sm:$0xf0] }
 0x5fb   :  { %4924 = vmatpush.bf16.msra.mxu1 %v6638_v59  ;;  %4887 = vmatpush.bf16.msra.mxu0 %v6802_v11  ;;  %v6614_v53 = vor.u32 %v7612_v52, %v6613_v51  ;;  %v7689_v59 = vld [vmem:[#allocation3 + $0x308] sm:$0xf0]  ;;  %v6834_v7 = vor.u32 %v7664_v36, %v6831_v57  ;;  %v6810_v51 = vor.u32 %v7661_v42, %v6809_v41 }
 0x5fc   :  { %v6922_v11 = vor.u32 %v7689_v59, %v6921_v58  ;;  %v7146_v52 = vor.u32 %v7745_v46, %v7145_v44  ;;  %v7731_v58 = vld [vmem:[#allocation3 + $0x458] sm:$0xf0] }
 0x5fd   :  { %4876 = vmatmul.bf16.vlgmr.msrb.gmra.mxu3 %v10556_v25 }
 0x5fe   :  { %4933 = vmatpush.bf16.msra.mxu3 %v6974_v13  ;;  %4973 = vmatpush.bf16.msra.mxu2 %v6726_v50  ;;  %v7114_v13 = vor.u32 %v7734_v9, %v7111_v55  ;;  %v7605_v50 = vld [vmem:[#allocation3 + $0x68] sm:$0xf0]  ;;  %v7117_v9 = vld [vmem:[#allocation3 + $0x478] sm:$0xf]  ;;  %v7738_v55 = vld [vmem:[#allocation3 + $0x490] sm:$0xf0] }
 0x5ff   :  { %4925 = vmatpush.bf16.msra.mxu1 %v6610_v3  ;;  %4888 = vmatpush.bf16.msra.mxu0 %v6774_v12  ;;  %v6586_v63 = vor.u32 %v7605_v50, %v6585_v21  ;;  %v7682_v3 = vld [vmem:[#allocation3 + $0x2d0] sm:$0xf0]  ;;  %v6775_v12 = vld [vmem:[#allocation3 + $0x1ec] sm:$0xf0]  ;;  %v7118_v57 = vor.u32 %v7738_v55, %v7117_v9  ;;  %v7724_v21 = vld [vmem:[#allocation3 + $0x420] sm:$0xf0] }
 0x600   :  { %v6894_v19 = vor.u32 %v7682_v3, %v6893_v1  ;;  %v6778_v34 = vor.u32 %v7650_v20, %v6775_v12 }
 0x602   :  { %4934 = vmatpush.bf16.msra.mxu3 %v6946_v8  ;;  %4974 = vmatpush.bf16.msra.mxu2 %v6698_v14  ;;  %v7086_v8 = vor.u32 %v7727_v60, %v7083_v5  ;;  %v7720_v14 = vld [vmem:[#allocation3 + $0x404] sm:$0xf]  ;;  %v7033_v5 = vld [vmem:[#allocation3 + $0x3d0] sm:$0xf] }
 0x603   :  { %4946 = vmatpush.bf16.msrb.mxu0 %v7198_v48  ;;  %4926 = vmatpush.bf16.msra.mxu1 %v6582_v26  ;;  %v7675_v48 = vld [vmem:[#allocation3 + $0x298] sm:$0xf0]  ;;  %v7058_v26 = vor.u32 %v7720_v14, %v7055_v18 }
 0x604   :  { %4889 = vmatmul.bf16.vlgmr.msra.gmra.mxu0 %v10566_v4  ;;  %v6866_v30 = vor.u32 %v7675_v48, %v6865_v23 }
 0x605   :  { %7236 = vmatmul.msk.bf16.vlgmr.msrb.gmra.mxu2 %vm2596_vm0, %v10569_v43 }
 0x606   :  { %4935 = vmatpush.bf16.msra.mxu3 %v6918_v27  ;;  %4975 = vmatpush.bf16.msra.mxu2 %v6670_v29  ;;  %v7201_v27 = vld [vmem:[#allocation3 + $0x520] sm:$0xf]  ;;  %v7027_v29 = vld [vmem:[#allocation3 + $0x3e4] sm:$0xf0] }
 0x607   :  { %4947 = vmatpush.bf16.msrb.mxu0 %v7170_v47  ;;  %4927 = vmatpush.bf16.msra.mxu1 %v6554_v38  ;;  %v7202_v31 = vor.u32 %v7759_v15, %v7201_v27  ;;  %v7030_v2 = vor.u32 %v7713_v28, %v7027_v29  ;;  %v7173_v47 = vld [vmem:[#allocation3 + $0x4e8] sm:$0xf]  ;;  %v6999_v38 = vld [vmem:[#allocation3 + $0x3ac] sm:$0xf0] }
 0x60a   :  { %4936 = vmatpush.bf16.msra.mxu3 %v6890_v45  ;;  %4976 = vmatpush.bf16.msra.mxu2 %v6642_v0  ;;  %v6838_v45 = vor.u32 %v7668_v33, %v6837_v32  ;;  %v7002_v0 = vor.u32 %v7706_v37, %v6999_v38 }
 0x60b   :  { %4985 = vmatpush.bf16.msrb.mxu1 %v6978_v16  ;;  %4948 = vmatpush.bf16.msrb.mxu0 %v7142_v49  ;;  %v7174_v16 = vor.u32 %v7752_v35, %v7173_v47  ;;  %v7230_v49 = vor.u32 %v7766_v40, %v7229_v39 }
 0x60c   :  { %4928 = vmatmul.bf16.vlgmr.msra.gmra.mxu1 %v10556_v25 }
 0x60e   :  { %4937 = vmatpush.bf16.msra.mxu3 %v6862_v54  ;;  %4977 = vmatpush.bf16.msra.mxu2 %v6614_v53  ;;  %v7654_v54 = vld [vmem:[#allocation3 + $0x1f0] sm:$0xf0]  ;;  %v7089_v53 = vld [vmem:[#allocation3 + $0x440] sm:$0xf] }
 0x60f   :  { %4986 = vmatpush.bf16.msrb.mxu1 %v6950_v56  ;;  %4949 = vmatpush.bf16.msrb.mxu0 %v7114_v13  ;;  %v7090_v59 = vor.u32 %v7731_v58, %v7089_v53  ;;  %v7061_v13 = vld [vmem:[#allocation3 + $0x408] sm:$0xf] }
 0x610   :  { %v7062_v60 = vor.u32 %v7724_v21, %v7061_v13 }
 0x612   :  { %4938 = vmatpush.bf16.msra.mxu3 %v6834_v7  ;;  %4978 = vmatpush.bf16.msra.mxu2 %v6586_v63  ;;  %v7710_v63 = vld [vmem:[#allocation3 + $0x3b0] sm:$0xf0] }
 0x613   :  { %4987 = vmatpush.bf16.msrb.mxu1 %v6922_v11  ;;  %4950 = vmatpush.bf16.msrb.mxu0 %v7086_v8  ;;  %v7717_v11 = vld [vmem:[#allocation3 + $0x3e8] sm:$0xf0]  ;;  %v10602_v8 = vld [vmem:[%s10622_s2 + $0xf] sm:$0xff]  ;;  %s7870_s2 = smov [#allocation7]  }
 0x614   :  { %v7034_v61 = vor.u32 %v7717_v11, %v7033_v5  ;;  %v3743_v24 = vperm.slane %v10602_v8, 0  ;;  %v3744_v29 = vperm.slane %v10602_v8, 1  ;;  %s5077_s28 = sshll.u32 %s7870_s2, 4  ;;  %v3746_v9 = vperm.slane %v10602_v8, 3  ;;  %s5078_s28 = int_to_ptr.vmem [resolvable:$true] %s5077_s28 }
 0x615   :  { %5082 = dma.vmem_to_hbm [thread:$0]  %s5078_s28, 256, %s5080_s8, [#allocation8]  }
 0x616   :  { %4939 = vmatpush.bf16.msra.mxu3 %v6806_v17  ;;  %4979 = vmatpush.bf16.msra.mxu2 %v6558_v22 }
 0x617   :  { %4988 = vmatpush.bf16.msrb.mxu1 %v6894_v19  ;;  %4951 = vmatpush.bf16.msrb.mxu0 %v7058_v26 }
 0x618   :  { %v4669_v56 = vpop.f32.mrf.mxu2 }
 0x619   :  { %4980 = vmatmul.bf16.vlgmr.msra.gmra.mxu2 %v10556_v25  ;;  %v6781_v25 = vld [vmem:[#allocation3 + $0x1d8] sm:$0xf]  ;;  %v4670_v14 = vadd.f32 %v4669_v56, %v3743_v24  ;;  %v3747_v24 = vperm.slane %v10602_v8, 4 }
 0x61a   :  { %4940 = vmatpush.bf16.msra.mxu3 %v6778_v34  ;;  %v6782_v36 = vor.u32 %v7654_v54, %v6781_v25 }
 0x61b   :  { %4989 = vmatpush.bf16.msrb.mxu1 %v6866_v30  ;;  %4952 = vmatpush.bf16.msrb.mxu0 %v7030_v2 }
 0x61d   :  { %4941 = vmatmul.bf16.vlgmr.msra.gmra.mxu3 %v10566_v4 }
 0x61e   :  { %4998 = vmatpush.bf16.msrb.mxu3 %v7202_v31 }
 0x61f   :  { %4990 = vmatpush.bf16.msrb.mxu1 %v6838_v45  ;;  %4953 = vmatpush.bf16.msrb.mxu0 %v7002_v0 }
 0x620   :  { %v4671_v50 = vpop.f32.mrf.mxu2 }
 0x622   :  { %4999 = vmatpush.bf16.msrb.mxu3 %v7174_v16  ;;  %4954 = vmatmul.bf16.vlgmr.msrb.gmra.mxu0 %v10562_v6  ;;  %v4695_v7 = vpop.f32.mrf.mxu1  ;;  %v3745_v16 = vperm.slane %v10602_v8, 2 }
 0x623   :  { %5018 = vmatpush.bf16.msra.mxu0 %v7230_v49  ;;  %4991 = vmatpush.bf16.msrb.mxu1 %v6810_v51 }
 0x626   :  { %5000 = vmatpush.bf16.msrb.mxu3 %v7146_v52 }
 0x627   :  { %4992 = vmatpush.bf16.msrb.mxu1 %v6782_v36 }
 0x628   :  { %v4721_v1 = vpop.f32.mrf.mxu2 }
 0x629   :  { %v4722_v33 = vadd.f32 %v4721_v1, %v3744_v29 }
 0x62a   :  { %5001 = vmatpush.bf16.msrb.mxu3 %v7118_v57  ;;  %4993 = vmatmul.bf16.vlgmr.msrb.gmra.mxu1 %v10566_v4  ;;  %v4697_v3 = vpop.f32.mrf.mxu1  ;;  %v7006_v4 = vor.u32 %v7710_v63, %v7005_v62 }
 0x62d   :  { %v4682_v10 = vpop.f32.mrf.mxu0 }
 0x62e   :  { %5002 = vmatpush.bf16.msrb.mxu3 %v7090_v59  ;;  %v4683_v18 = vadd.f32 %v4682_v10, %v4670_v14 }
 0x630   :  { %v4723_v17 = vpop.f32.mrf.mxu2  ;;  %v4696_v12 = vadd.f32 %v4695_v7, %v4683_v18 }
 0x632   :  { %5003 = vmatpush.bf16.msrb.mxu3 %v7062_v60  ;;  %7237 = vmatmul.msk.bf16.vlgmr.msra.gmra.mxu0 %vm2596_vm0, %v10569_v43 }
 0x635   :  { %v4684_v20 = vpop.f32.mrf.mxu0 }
 0x636   :  { %5004 = vmatpush.bf16.msrb.mxu3 %v7034_v61  ;;  %v4760_v19 = vpop.f32.mrf.mxu1 }
 0x638   :  { %v4773_v48 = vpop.f32.mrf.mxu2 }
 0x639   :  { %v4774_v42 = vadd.f32 %v4773_v48, %v3745_v16 }
 0x63a   :  { %5005 = vmatpush.bf16.msrb.mxu3 %v7006_v4 }
 0x63c   :  { %v4708_v22 = vpop.f32.mrf.mxu3 }
 0x63d   :  { %5006 = vmatmul.bf16.vlgmr.msrb.gmra.mxu3 %v10562_v6  ;;  %v4709_v23 = vadd.f32 %v4708_v22, %v4696_v12  ;;  %v4747_v43 = vpop.f32.mrf.mxu0 }
 0x63e   :  { %v4762_v27 = vpop.f32.mrf.mxu1 }
 0x63f   :  { %v5024_v26 = vmul.f32 0.5, %v4709_v23 }
 0x640   :  { %v4775_v34 = vpop.f32.mrf.mxu2 }
 0x641   :  { %7800 = vtanh.f32 %v5024_v26 }
 0x644   :  { %v4710_v15 = vpop.f32.mrf.mxu3 }
 0x645   :  { %v4749_v32 = vpop.f32.mrf.mxu0 }
 0x646   :  { %v4786_v30 = vpop.f32.mrf.mxu1 }
 0x647   :  { %v7801_v28 = vpop.eup %7800  ;;  %v4787_v46 = vadd.f32 %v4786_v30, %v4774_v42 }
 0x648   :  { %v5038_v31 = vmul.f32 0.5, %v7801_v28 }
 0x64a   :  { %v5045_v6 = vadd.f32 0.5, %v5038_v31 }
 0x64c   :  { %5052 = vst [vmem:[#allocation5] sm:$0xff] %v5045_v6  ;;  %v4734_v2 = vpop.f32.mrf.mxu3  ;;  %v3748_v6 = vperm.slane %v10602_v8, 5 }
 0x64d   :  { %v4735_v47 = vadd.f32 %v4734_v2, %v4722_v33  ;;  %v4812_v45 = vpop.f32.mrf.mxu0 }
 0x64e   :  { %v4788_v37 = vpop.f32.mrf.mxu1 }
 0x64f   :  { %v4748_v35 = vadd.f32 %v4747_v43, %v4735_v47 }
 0x651   :  { %v4761_v38 = vadd.f32 %v4760_v19, %v4748_v35 }
 0x653   :  { %v5025_v39 = vmul.f32 0.5, %v4761_v38 }
 0x654   :  { %v4736_v40 = vpop.f32.mrf.mxu3 }
 0x655   :  { %7802 = vtanh.f32 %v5025_v39  ;;  %v4814_v41 = vpop.f32.mrf.mxu0 }
 0x658   :  { %v4838_v0 = vpop.f32.mrf.mxu2 }
 0x65b   :  { %v7803_v44 = vpop.eup %7802 }
 0x65c   :  { %v5039_v49 = vmul.f32 0.5, %v7803_v44  ;;  %v4799_v51 = vpop.f32.mrf.mxu3 }
 0x65d   :  { %v4800_v25 = vadd.f32 %v4799_v51, %v4787_v46 }
 0x65e   :  { %v5046_v52 = vadd.f32 0.5, %v5039_v49 }
 0x65f   :  { %v4813_v54 = vadd.f32 %v4812_v45, %v4800_v25 }
 0x660   :  { %5053 = vst [vmem:[#allocation5 + $0x8] sm:$0xff] %v5046_v52  ;;  %v4840_v36 = vpop.f32.mrf.mxu2  ;;  %v3749_v52 = vperm.slane %v10602_v8, 6 }
 0x661   :  { %v4825_v55 = vpop.f32.mrf.mxu0  ;;  %v5026_v56 = vmul.f32 0.5, %v4813_v54 }
 0x662   :  { %v4826_v57 = vadd.f32 %v4825_v55, %v3746_v9 }
 0x663   :  { %7804 = vtanh.f32 %v5026_v56 }
 0x664   :  { %v4801_v58 = vpop.f32.mrf.mxu3  ;;  %v4839_v59 = vadd.f32 %v4838_v0, %v4826_v57 }
 0x665   :  { %v4851_v53 = vpop.f32.mrf.mxu1 }
 0x666   :  { %v4852_v7 = vadd.f32 %v4851_v53, %v4839_v59 }
 0x669   :  { %v4827_v13 = vpop.f32.mrf.mxu0  ;;  %v7805_v21 = vpop.eup %7804 }
 0x66a   :  { %v5040_v50 = vmul.f32 0.5, %v7805_v21 }
 0x66c   :  { %v5047_v5 = vadd.f32 0.5, %v5040_v50  ;;  %v4864_v11 = vpop.f32.mrf.mxu3 }
 0x66d   :  { %v4853_v60 = vpop.f32.mrf.mxu1  ;;  %v4865_v61 = vadd.f32 %v4864_v11, %v4852_v7 }
 0x66e   :  { %5054 = vst [vmem:[#allocation5 + $0x10] sm:$0xff] %v5047_v5 }
 0x66f   :  { %v5027_v62 = vmul.f32 0.5, %v4865_v61 }
 0x671   :  { %7806 = vtanh.f32 %v5027_v62 }
 0x674   :  { %v4866_v1 = vpop.f32.mrf.mxu3 }
 0x675   :  { %v4916_v63 = vpop.f32.mrf.mxu1 }
 0x677   :  { %v7807_v4 = vpop.eup %7806 }
 0x678   :  { %v4903_v3 = vpop.f32.mrf.mxu2  ;;  %v5041_v10 = vmul.f32 0.5, %v7807_v4 }
 0x67a   :  { %v5048_v17 = vadd.f32 0.5, %v5041_v10 }
 0x67c   :  { %5055 = vst [vmem:[#allocation5 + $0x18] sm:$0xff] %v5048_v17 }
 0x67d   :  { %v4918_v14 = vpop.f32.mrf.mxu1 }
 0x680   :  { %v4877_v18 = vpop.f32.mrf.mxu3  ;;  %v4905_v12 = vpop.f32.mrf.mxu2 }
 0x681   :  { %v4878_v19 = vadd.f32 %v4877_v18, %v3747_v24  ;;  %v4890_v20 = vpop.f32.mrf.mxu0 }
 0x683   :  { %v4891_v22 = vadd.f32 %v4890_v20, %v4878_v19 }
 0x685   :  { %v4904_v23 = vadd.f32 %v4903_v3, %v4891_v22 }
 0x687   :  { %v4917_v48 = vadd.f32 %v4916_v63, %v4904_v23 }
 0x688   :  { %v4879_v27 = vpop.f32.mrf.mxu3  ;;  %v4968_v34 = vpop.f32.mrf.mxu2 }
 0x689   :  { %v4929_v26 = vpop.f32.mrf.mxu1  ;;  %v5028_v43 = vmul.f32 0.5, %v4917_v48  ;;  %v4892_v15 = vpop.f32.mrf.mxu0 }
 0x68a   :  { %v4930_v2 = vadd.f32 %v4929_v26, %v3748_v6 }
 0x68b   :  { %7808 = vtanh.f32 %v5028_v43 }
 0x690   :  { %v4970_v31 = vpop.f32.mrf.mxu2 }
 0x691   :  { %v4931_v28 = vpop.f32.mrf.mxu1  ;;  %v7809_v29 = vpop.eup %7808 }
 0x692   :  { %v5042_v30 = vmul.f32 0.5, %v7809_v29 }
 0x694   :  { %v5049_v32 = vadd.f32 0.5, %v5042_v30 }
 0x696   :  { %5056 = vst [vmem:[#allocation5 + $0x20] sm:$0xff] %v5049_v32 }
 0x69c   :  { %v4981_v33 = vpop.f32.mrf.mxu2 }
 0x69d   :  { %v4982_v54 = vadd.f32 %v4981_v33, %v3749_v52 }
 0x69f   :  { %v4955_v37 = vpop.f32.mrf.mxu0 }
 0x6a0   :  { %v4942_v47 = vpop.f32.mrf.mxu3 }
 0x6a1   :  { %v4943_v35 = vadd.f32 %v4942_v47, %v4930_v2 }
 0x6a3   :  { %v4956_v38 = vadd.f32 %v4955_v37, %v4943_v35 }
 0x6a4   :  { %v4983_v39 = vpop.f32.mrf.mxu2 }
 0x6a5   :  { %v4969_v45 = vadd.f32 %v4968_v34, %v4956_v38 }
 0x6a7   :  { %v5029_v40 = vmul.f32 0.5, %v4969_v45  ;;  %v4994_v16 = vpop.f32.mrf.mxu1  ;;  %v4957_v42 = vpop.f32.mrf.mxu0 }
 0x6a8   :  { %v4944_v41 = vpop.f32.mrf.mxu3  ;;  %v4995_v9 = vadd.f32 %v4994_v16, %v4982_v54 }
 0x6a9   :  { %7810 = vtanh.f32 %v5029_v40 }
 0x6af   :  { %v7811_v0 = vpop.eup %7810  ;;  %v4996_v44 = vpop.f32.mrf.mxu1 }
 0x6b0   :  { %v5043_v46 = vmul.f32 0.5, %v7811_v0  ;;  %v5020_v49 = vpop.f32.mrf.mxu0 }
 0x6b2   :  { %v5050_v51 = vadd.f32 0.5, %v5043_v46 }
 0x6b4   :  { %5057 = vst [vmem:[#allocation5 + $0x28] sm:$0xff] %v5050_v51 }
 0x6b8   :  { %v5022_v25 = vpop.f32.mrf.mxu0 }
 0x6c0   :  { %v5007_v55 = vpop.f32.mrf.mxu3 }
 0x6c1   :  { %v5008_v56 = vadd.f32 %v5007_v55, %v4995_v9 }
 0x6c3   :  { %v5021_v36 = vadd.f32 %v5020_v49, %v5008_v56 }
 0x6c5   :  { %v5030_v57 = vmul.f32 0.5, %v5021_v36 }
 0x6c7   :  { %7812 = vtanh.f32 %v5030_v57 }
 0x6c8   :  { %v5009_v53 = vpop.f32.mrf.mxu3 }
 0x6cd   :  { %v7813_v58 = vpop.eup %7812 }
 0x6ce   :  { %v5044_v59 = vmul.f32 0.5, %v7813_v58 }
 0x6d0   :  { %v5051_v13 = vadd.f32 0.5, %v5044_v59 }
 0x6d2   :  { %5058 = vst [vmem:[#allocation5 + $0x30] sm:$0xff] %v5051_v13 }
 0x6d3   :  { %5071 = dma.vmem_to_hbm [thread:$0]  %s5067_s30, 896, %s5069_s13, [#allocation6]  }
 0x6d4   :  { %7866 = dma.done.wait [#allocation6], 896  }
 0x6d5   :  { %7867 = vsyncadd [#allocation6], 4294966400 }
 0x6d6   :  { %7868 = dma.done.wait [#allocation8], 256  }
 0x6d7   :  { %7869 = vsyncadd [#allocation8], 4294967040 }
 0x6d8   :  { %5091 = vsyncpa [#allocation6], 1 }
 0x6d9   :  { %5092 = vsyncpa [#allocation8], 1 }
 0x6da   :  { %5093 = vsyncmov [#allocation4] }
 0x6dd   :  { %s5094_s3 = vpop.sfrf %5093 }
 0x6de   :  { %p7238_p0 = scmp.ne.s32.totalorder %s5094_s3, 0 }
 0x6e0   :  { %5098 = shalt.err (%p7238_p0)  }
 0x6e1   :  { %5100 = vsyncmov [#allocation4 + $0x1] }
 0x6e4   :  { %s5101_s14 = vpop.sfrf %5100 }
 0x6e5   :  { %p7239_p1 = scmp.ne.s32.totalorder %s5101_s14, 0 }
 0x6e7   :  { %5105 = shalt.err (%p7239_p1)  }

</bundles_post_ra>
